<compile_context>
chip_gen: v5e
topology: v5e:2x2
jax: 0.10.0
libtpu: 0.0.40
codegen_flags: <defaults>
</compile_context>

<pallas_src>
import functools

import jax
import jax.numpy as jnp
from jax.experimental import pallas as pl
from jax.experimental.pallas import tpu as pltpu

EPS = 1e-5                      # nn.InstanceNorm2d default eps
LANE = 128


# ------------------------------ budgeting -----------------------------------

@functools.lru_cache(maxsize=1)
def _vmem_limit():
    """Scoped-VMEM budget: ~3/4 of physical (≈96 MiB on v5e/v6e, ≈48 MiB on v7x)."""
    cap = 64 * 1024 * 1024
    try:
        cap = int(pltpu.get_tpu_info().vmem_capacity_bytes)
    except Exception:
        pass
    return min(cap * 3 // 4, 112 * 1024 * 1024)


def _pick_tile_rows(height, width, cp, band_budget_bytes):
    """Largest divisor of H whose f32 halo band fits the per-buffer budget and
    whose flattened (rows*W) output block is 8-sublane friendly."""
    budget_rows = max(1, band_budget_bytes // (width * cp * 4) - 2)
    for cand in range(min(height, budget_rows), 0, -1):
        if height % cand == 0 and ((cand * width) % 8 == 0 or cand == height):
            return cand
    return height


def _pick_block_hw(hw, cp, budget_bytes):
    """Largest divisor of H*W (8-sublane friendly) whose f32 block fits budget."""
    cap = max(1, budget_bytes // (cp * 4))
    for cand in range(min(hw, cap), 0, -1):
        if hw % cand == 0 and (cand % 8 == 0 or cand == hw):
            return cand
    return hw


# ----------------------------- Pallas kernels -------------------------------

def _conv_stats_kernel(*refs, rows, width, height, cp, n_bands, hw, pre_norm_relu):
    """One row band of the fused pipeline:
         [conv2 only: InstanceNorm + ReLU of the loaded band, from conv1 stats]
      -> reflect columns in VMEM (rows were reflect-handled by the DMA indices)
      -> 3x3 conv as 3 MXU matmuls with K = 3*cp (dy folded into contraction)
      -> store un-normalised conv output as bf16
      -> accumulate band-centred InstanceNorm partial stats [sum, M2, n*mean^2].
    """
    if pre_norm_relu:
        x_hbm, in_stats_ref, w_ref, y_ref, stats_ref, xtile, sems = refs
    else:
        x_hbm, w_ref, y_ref, stats_ref, xtile, sems = refs

    n = pl.program_id(0)
    h = pl.program_id(1)
    slot = h % 2

    def start_band(slot_idx, h_idx):
        # Reflect the 1-row top/bottom halo at the image border via the DMA
        # source row index (row -1 -> 1, row H -> H-2); no XLA reflect-pad copy.
        r0 = h_idx * rows
        top = jnp.where(h_idx == 0, 1, r0 - 1)
        bot = jnp.where(h_idx == n_bands - 1, height - 2, r0 + rows)
        pltpu.make_async_copy(x_hbm.at[n, pl.ds(r0, rows)],
                              xtile.at[slot_idx, pl.ds(1, rows)],
                              sems.at[slot_idx, 0]).start()
        pltpu.make_async_copy(x_hbm.at[n, pl.ds(top, 1)],
                              xtile.at[slot_idx, pl.ds(0, 1)],
                              sems.at[slot_idx, 1]).start()
        pltpu.make_async_copy(x_hbm.at[n, pl.ds(bot, 1)],
                              xtile.at[slot_idx, pl.ds(rows + 1, 1)],
                              sems.at[slot_idx, 2]).start()

    def wait_band(slot_idx):
        pltpu.make_async_copy(x_hbm.at[n, pl.ds(0, rows)],
                              xtile.at[slot_idx, pl.ds(1, rows)],
                              sems.at[slot_idx, 0]).wait()
        pltpu.make_async_copy(x_hbm.at[n, pl.ds(0, 1)],
                              xtile.at[slot_idx, pl.ds(0, 1)],
                              sems.at[slot_idx, 1]).wait()
        pltpu.make_async_copy(x_hbm.at[n, pl.ds(0, 1)],
                              xtile.at[slot_idx, pl.ds(rows + 1, 1)],
                              sems.at[slot_idx, 2]).wait()

    # Prime the double buffer at the first band of each image (keeps the
    # pipeline self-contained per image, so the batch axis is megacore-safe).
    @pl.when(h == 0)
    def _prime():
        start_band(slot, h)

    # Prefetch the next band while this band is being computed.
    @pl.when(h + 1 < n_bands)
    def _prefetch():
        start_band(1 - slot, h + 1)

    @pl.when(h == 0)
    def _init_stats():
        stats_ref[...] = jnp.zeros_like(stats_ref)

    wait_band(slot)

    xb = xtile[slot].astype(jnp.float32)                 # (rows+2, width, cp)
    if pre_norm_relu:
        st = in_stats_ref[0]                             # (3, cp): [sum, M2, n*mean^2]
        mean = st[0:1, :] * (1.0 / hw)
        var = jnp.maximum((st[1:2, :] + st[2:3, :]) * (1.0 / hw) - mean * mean, 0.0)
        rstd = jax.lax.rsqrt(var + EPS)
        xb = jnp.maximum(xb * rstd.reshape(1, 1, cp)
                         + (-mean * rstd).reshape(1, 1, cp), 0.0)

    # Single bf16 cast of the band, then reflect the left/right columns in VMEM.
    xb16 = xb.astype(jnp.bfloat16)
    xpb = jnp.concatenate(
        [xb16[:, 1:2, :], xb16, xb16[:, width - 2:width - 1, :]],
        axis=1)                                          # (rows+2, width+2, cp)

    # 3x3 conv: fold the 3 dy taps into the contraction dim -> 3 matmuls, K=3*cp.
    acc = jnp.zeros((rows * width, cp), jnp.float32)
    for dx in range(3):
        op = jnp.concatenate(
            [xpb[dy:dy + rows, dx:dx + width, :] for dy in range(3)],
            axis=-1).reshape(rows * width, 3 * cp)
        acc = acc + jnp.dot(op, w_ref[dx], preferred_element_type=jnp.float32)

    y_ref[0] = acc.astype(y_ref.dtype)                   # bf16 intermediate in HBM

    # Band-centred partial stats (avoids E[x^2]-E[x]^2 cancellation in f32).
    band_n = float(rows * width)
    bsum = jnp.sum(acc, axis=0, keepdims=True)           # (1, cp)
    bmean = bsum * (1.0 / band_n)
    bm2 = jnp.sum(jnp.square(acc - bmean), axis=0, keepdims=True)
    bq = band_n * bmean * bmean
    stats_ref[0] += jnp.concatenate([bsum, bm2, bq], axis=0)


def _norm_residual_kernel(y_ref, stats_ref, x_ref, o_ref, *, hw):
    """out = x + InstanceNorm(y); the rstd / shift are derived from the raw
    partial stats on the VPU (no separate XLA stats kernel)."""
    st = stats_ref[0]                                    # (3, cp)
    mean = st[0:1, :] * (1.0 / hw)
    var = jnp.maximum((st[1:2, :] + st[2:3, :]) * (1.0 / hw) - mean * mean, 0.0)
    rstd = jax.lax.rsqrt(var + EPS)
    o_ref[0] = (x_ref[0]
                + y_ref[0].astype(jnp.float32) * rstd
                + (-mean * rstd))


# ------------------------------ call wrappers --------------------------------

def _conv_instnorm_stats(x_img, w_fold, in_stats, *, rows, height, width, cp):
    """x_img: (N, H, W, cp) activation left in HBM (f32 for conv1, bf16 for conv2).
    Returns y: (N, H*W, cp) bf16 un-normalised conv output and
    stats: (N, 3, cp) f32 = [sum, centred sumsq, n*band_mean^2] over H*W."""
    n_batch = x_img.shape[0]
    n_bands = height // rows
    pre = in_stats is not None

    kernel = functools.partial(
        _conv_stats_kernel, rows=rows, width=width, height=height, cp=cp,
        n_bands=n_bands, hw=float(height * width), pre_norm_relu=pre)

    in_specs = [pl.BlockSpec(memory_space=pl.ANY)]        # raw HBM ref, manual DMA
    args = [x_img]
    if pre:
        in_specs.append(pl.BlockSpec((1, 3, cp), lambda n, h: (n, 0, 0)))
        args.append(in_stats)
    # TODO(synk): for very large cp the constant (3, 3*cp, cp) weight block
    # should be single-buffered or channel-tiled to save VMEM.
    in_specs.append(pl.BlockSpec((3, 3 * cp, cp), lambda n, h: (0, 0, 0)))
    args.append(w_fold)

    band = rows * width
    y, stats = pl.pallas_call(
        kernel,
        grid=(n_batch, n_bands),
        in_specs=in_specs,
        out_specs=(pl.BlockSpec((1, band, cp), lambda n, h: (n, h, 0)),
                   pl.BlockSpec((1, 3, cp), lambda n, h: (n, 0, 0))),
        out_shape=(jax.ShapeDtypeStruct((n_batch, height * width, cp), jnp.bfloat16),
                   jax.ShapeDtypeStruct((n_batch, 3, cp), jnp.float32)),
        scratch_shapes=[pltpu.VMEM((2, rows + 2, width, cp), x_img.dtype),
                        pltpu.SemaphoreType.DMA((2, 3))],
        compiler_params=pltpu.CompilerParams(
            dimension_semantics=("parallel", "arbitrary"),
            vmem_limit_bytes=_vmem_limit()),
    )(*args)
    return y, stats


def _norm_residual(y, stats, x_res, *, hw, cp, block_hw):
    n_batch = y.shape[0]
    return pl.pallas_call(
        functools.partial(_norm_residual_kernel, hw=float(hw)),
        grid=(n_batch, hw // block_hw),
        in_specs=[pl.BlockSpec((1, block_hw, cp), lambda n, h: (n, h, 0)),
                  pl.BlockSpec((1, 3, cp), lambda n, h: (n, 0, 0)),
                  pl.BlockSpec((1, block_hw, cp), lambda n, h: (n, h, 0))],
        out_specs=pl.BlockSpec((1, block_hw, cp), lambda n, h: (n, h, 0)),
        out_shape=jax.ShapeDtypeStruct((n_batch, hw, cp), jnp.float32),
        compiler_params=pltpu.CompilerParams(
            dimension_semantics=("parallel", "parallel"),
            vmem_limit_bytes=_vmem_limit()),
    )(y, stats, x_res)


# ------------------------------- JAX glue ------------------------------------

def _weights_to_taps(w, cp):
    """PyTorch conv weight (Cout, Cin, 3, 3) -> (3, 3*cp, cp) bf16 with the 3 dy
    taps stacked along the contraction dim: w_fold[dx, dy*cp + ci, co] =
    w[co, ci, dy, dx]; channel axes zero-padded to cp."""
    c_out, c_in, kh, kw = w.shape
    taps = jnp.transpose(w, (3, 2, 1, 0))                 # (dx, dy, ci, co)
    taps = jnp.pad(taps, ((0, 0), (0, 0), (0, cp - c_in), (0, cp - c_out)))
    return taps.reshape(kw, kh * cp, cp).astype(jnp.bfloat16)


@functools.partial(jax.jit, static_argnames=("tile_rows",))
def resnet_block_forward(x_nchw, w1, b1, w2, b2, tile_rows=None):
    """x_nchw: (N, C, H, W) float32 — same layout as the PyTorch module.

    b1/b2 accepted for interface parity but unused: a per-channel conv bias
    followed by InstanceNorm2d(affine=False) cancels exactly.
    """
    del b1, b2
    n_batch, c, height, width = x_nchw.shape
    assert height >= 2 and width >= 2, "reflect padding needs H, W >= 2"
    hw = height * width
    cp = max(LANE, ((c + LANE - 1) // LANE) * LANE)       # lane-pad channels

    vmem_limit = _vmem_limit()
    band_budget = min(8 * 1024 * 1024, vmem_limit // 10)
    rows = tile_rows if tile_rows is not None else _pick_tile_rows(
        height, width, cp, band_budget)
    assert height % rows == 0, "tile_rows must divide H"
    assert (rows * width) % 8 == 0 or rows == height

    # NHWC, channels zero-padded to a lane multiple (a no-op when C % 128 == 0,
    # which is the realistic pix2pixHD case).
    # TODO(synk): fuse the channel zero-pad into the band DMA for tiny C.
    x_nhwc = jnp.transpose(x_nchw, (0, 2, 3, 1)).astype(jnp.float32)
    x_pad = jnp.pad(x_nhwc, ((0, 0), (0, 0), (0, 0), (0, cp - c)))   # (N,H,W,cp)

    w1_fold = _weights_to_taps(w1, cp)
    w2_fold = _weights_to_taps(w2, cp)

    # conv1: reflect pad handled by the band DMA + in-VMEM column reflection.
    y1, stats1 = _conv_instnorm_stats(x_pad, w1_fold, None,
                                      rows=rows, height=height, width=width, cp=cp)

    # conv2: InstanceNorm+ReLU of y1 fused into the kernel (per-channel affine
    # commutes with reflect padding); y1 stays bf16 in HBM and is read exactly
    # once — no XLA reflect-pad round trip.
    y1_img = y1.reshape(n_batch, height, width, cp)       # metadata-only reshape
    y2, stats2 = _conv_instnorm_stats(y1_img, w2_fold, stats1,
                                      rows=rows, height=height, width=width, cp=cp)

    # InstanceNorm of conv2's output + residual add, large lane-dense blocks.
    # TODO(synk): on v7x with N == 1, split the band axis in two "parallel"
    # halves (per-half partial stats) so both TensorCores are engaged.
    block_hw = _pick_block_hw(hw, cp, min(8 * 1024 * 1024, vmem_limit // 10))
    out = _norm_residual(y2, stats2, x_pad.reshape(n_batch, hw, cp),
                         hw=hw, cp=cp, block_hw=block_hw)

    out = out.reshape(n_batch, height, width, cp)[..., :c]
    return jnp.transpose(out, (0, 3, 1, 2))               # back to NCHW


# --------------------------- pure-JAX reference ------------------------------

def _ref_forward(x_nchw, w1, b1, w2, b2):
    n, c, height, width = x_nchw.shape
    x = jnp.transpose(x_nchw, (0, 2, 3, 1)).astype(jnp.float32)

    def conv_in(t, w, b):
        tp = jnp.pad(t, ((0, 0), (1, 1), (1, 1), (0, 0)), mode="reflect")
        cols = [tp[:, dy:dy + height, dx:dx + width, :]
                for dy in range(3) for dx in range(3)]
        patches = jnp.concatenate(cols, axis=-1)                      # (N,H,W,9C)
        wm = jnp.transpose(w, (2, 3, 1, 0)).reshape(9 * c, c)
        y = jnp.einsum("nhwk,kc->nhwc", patches, wm) + b.reshape(1, 1, 1, c)
        mean = jnp.mean(y, axis=(1, 2), keepdims=True)
        var = jnp.mean((y - mean) ** 2, axis=(1, 2), keepdims=True)
        return (y - mean) * jax.lax.rsqrt(var + EPS)

    h = jnp.maximum(conv_in(x, w1, b1), 0.0)
    h = conv_in(h, w2, b2)
    return jnp.transpose(x + h, (0, 3, 1, 2))


# ----------------------------------- main -------------------------------------

if __name__ == "__main__":
    N, C, H, W = 2, 4, 16, 16
    key = jax.random.PRNGKey(0)
    kx, kw1, kb1, kw2, kb2 = jax.random.split(key, 5)

    x = jax.random.normal(kx, (N, C, H, W), dtype=jnp.float32)
    # Deterministic synthetic parameters (Conv2d(dim, dim, kernel_size=3) x2).
    w1 = 0.2 * jax.random.normal(kw1, (C, C, 3, 3), dtype=jnp.float32)
    b1 = 0.1 * jax.random.normal(kb1, (C,), dtype=jnp.float32)
    w2 = 0.2 * jax.random.normal(kw2, (C, C, 3, 3), dtype=jnp.float32)
    b2 = 0.1 * jax.random.normal(kb2, (C,), dtype=jnp.float32)

    # tile_rows=8 -> two row bands per image, exercising the double-buffered
    # band DMA, the in-kernel reflect halo and the cross-band stats path.
    out = resnet_block_forward(x, w1, b1, w2, b2, tile_rows=8)
    out = jax.block_until_ready(out)

    ref = _ref_forward(x, w1, b1, w2, b2)
    assert out.shape == (N, C, H, W)
    max_err = jnp.max(jnp.abs(out - ref))
    # bf16 MXU operands + bf16 intermediates -> looser tolerance than pure f32.
    assert jnp.allclose(out, ref, atol=5e-2, rtol=5e-2), (
        f"mismatch vs reference (max abs err {max_err})")

    print("KERNEL_OK")
</pallas_src>

<mosaic_0001>
module attributes {stable_mosaic.version = 11 : i64} {
  func.func @_conv_stats_kernel(%arg0: i32, %arg1: i32, %arg2: memref<2x16x16x128xf32, #tpu.memory_space<any>>, %arg3: memref<3x384x128xbf16, #tpu.memory_space<vmem>>, %arg4: memref<1x128x128xbf16, #tpu.memory_space<vmem>>, %arg5: memref<1x3x128xf32, #tpu.memory_space<vmem>>, %arg6: memref<2x10x16x128xf32, #tpu.memory_space<vmem>>, %arg7: memref<2x3x!tpu.dma_semaphore, #tpu.memory_space<semaphore_mem>>) attributes {dimension_semantics = [#tpu.dimension_semantics<parallel>, #tpu.dimension_semantics<arbitrary>], iteration_bounds = array<i64: 2, 2>, scalar_prefetch = 0 : i64, scratch_operands = 2 : i64, tpu.core_type = #tpu.core_type<tc>, window_params = [{}, {pipeline_mode = #tpu.pipeline_mode<synchronous>, transform_indices = @transform_1, window_bounds = array<i64: 3, 384, 128>}, {transform_indices = @transform_2, window_bounds = array<i64: 1, 128, 128>}, {transform_indices = @transform_3, window_bounds = array<i64: 1, 3, 128>}]} {
    %c2_i32 = arith.constant 2 : i32
    %c0_i32 = arith.constant 0 : i32
    %0 = arith.cmpi eq, %c2_i32, %c0_i32 : i32
    %c1_i32 = arith.constant 1 : i32
    %1 = arith.select %0, %c1_i32, %c2_i32 : i32
    %2 = arith.remsi %arg1, %1 : i32
    %c0_i32_0 = arith.constant 0 : i32
    %3 = arith.cmpi ne, %2, %c0_i32_0 : i32
    %c0_i32_1 = arith.constant 0 : i32
    %4 = arith.cmpi slt, %2, %c0_i32_1 : i32
    %c0_i32_2 = arith.constant 0 : i32
    %5 = arith.cmpi slt, %1, %c0_i32_2 : i32
    %6 = arith.xori %4, %5 : i1
    %7 = arith.andi %6, %3 : i1
    %8 = arith.addi %2, %1 : i32
    %9 = arith.select %7, %8, %2 : i32
    %c0_i32_3 = arith.constant 0 : i32
    %10 = arith.cmpi eq, %arg1, %c0_i32_3 : i32
    %11 = arith.extui %10 : i1 to i32
    %c0_i32_4 = arith.constant 0 : i32
    %12 = arith.cmpi ne, %11, %c0_i32_4 : i32
    scf.if %12 {
      %c8_i32 = arith.constant 8 : i32
      %96 = arith.muli %arg1, %c8_i32 : i32
      %c0_i32_55 = arith.constant 0 : i32
      %97 = arith.cmpi eq, %arg1, %c0_i32_55 : i32
      %c1_i32_56 = arith.constant 1 : i32
      %98 = arith.subi %96, %c1_i32_56 : i32
      %c1_i32_57 = arith.constant 1 : i32
      %99 = arith.select %97, %c1_i32_57, %98 : i32
      %c1_i32_58 = arith.constant 1 : i32
      %100 = arith.cmpi eq, %arg1, %c1_i32_58 : i32
      %c8_i32_59 = arith.constant 8 : i32
      %101 = arith.addi %96, %c8_i32_59 : i32
      %c14_i32 = arith.constant 14 : i32
      %102 = arith.select %100, %c14_i32, %101 : i32
      %c0_i32_60 = arith.constant 0 : i32
      %c0_i32_61 = arith.constant 0 : i32
      %c0_i32_62 = arith.constant 0 : i32
      %103 = tpu.memref_slice %arg2[%arg0, %96, %c0_i32_61, %c0_i32_62] : memref<2x16x16x128xf32, #tpu.memory_space<any>> -> memref<1x8x16x128xf32, #tpu.memory_space<any>>
      %104 = tpu.memref_squeeze %103 : memref<1x8x16x128xf32, #tpu.memory_space<any>> -> memref<8x16x128xf32, #tpu.memory_space<any>>
      %c1_i32_63 = arith.constant 1 : i32
      %c0_i32_64 = arith.constant 0 : i32
      %c0_i32_65 = arith.constant 0 : i32
      %105 = tpu.memref_slice %arg6[%9, %c1_i32_63, %c0_i32_64, %c0_i32_65] : memref<2x10x16x128xf32, #tpu.memory_space<vmem>> -> memref<1x8x16x128xf32, #tpu.memory_space<vmem>>
      %106 = tpu.memref_squeeze %105 : memref<1x8x16x128xf32, #tpu.memory_space<vmem>> -> memref<8x16x128xf32, #tpu.memory_space<vmem>>
      %107 = tpu.memref_slice %arg7[%9, %c0_i32_60] : memref<2x3x!tpu.dma_semaphore, #tpu.memory_space<semaphore_mem>> -> memref<1x1x!tpu.dma_semaphore, #tpu.memory_space<semaphore_mem>>
      %108 = tpu.memref_squeeze %107 : memref<1x1x!tpu.dma_semaphore, #tpu.memory_space<semaphore_mem>> -> memref<!tpu.dma_semaphore, #tpu.memory_space<semaphore_mem>>
      tpu.enqueue_dma source(%104 : memref<8x16x128xf32, #tpu.memory_space<any>>) target(%106 : memref<8x16x128xf32, #tpu.memory_space<vmem>>) target_semaphore(%108 : memref<!tpu.dma_semaphore, #tpu.memory_space<semaphore_mem>>)
      %c1_i32_66 = arith.constant 1 : i32
      %c0_i32_67 = arith.constant 0 : i32
      %c0_i32_68 = arith.constant 0 : i32
      %109 = tpu.memref_slice %arg2[%arg0, %99, %c0_i32_67, %c0_i32_68] : memref<2x16x16x128xf32, #tpu.memory_space<any>> -> memref<1x1x16x128xf32, #tpu.memory_space<any>>
      %110 = tpu.memref_squeeze %109 : memref<1x1x16x128xf32, #tpu.memory_space<any>> -> memref<1x16x128xf32, #tpu.memory_space<any>>
      %c0_i32_69 = arith.constant 0 : i32
      %c0_i32_70 = arith.constant 0 : i32
      %c0_i32_71 = arith.constant 0 : i32
      %111 = tpu.memref_slice %arg6[%9, %c0_i32_69, %c0_i32_70, %c0_i32_71] : memref<2x10x16x128xf32, #tpu.memory_space<vmem>> -> memref<1x1x16x128xf32, #tpu.memory_space<vmem>>
      %112 = tpu.memref_squeeze %111 : memref<1x1x16x128xf32, #tpu.memory_space<vmem>> -> memref<1x16x128xf32, #tpu.memory_space<vmem>>
      %113 = tpu.memref_slice %arg7[%9, %c1_i32_66] : memref<2x3x!tpu.dma_semaphore, #tpu.memory_space<semaphore_mem>> -> memref<1x1x!tpu.dma_semaphore, #tpu.memory_space<semaphore_mem>>
      %114 = tpu.memref_squeeze %113 : memref<1x1x!tpu.dma_semaphore, #tpu.memory_space<semaphore_mem>> -> memref<!tpu.dma_semaphore, #tpu.memory_space<semaphore_mem>>
      tpu.enqueue_dma source(%110 : memref<1x16x128xf32, #tpu.memory_space<any>>) target(%112 : memref<1x16x128xf32, #tpu.memory_space<vmem>>) target_semaphore(%114 : memref<!tpu.dma_semaphore, #tpu.memory_space<semaphore_mem>>)
      %c2_i32_72 = arith.constant 2 : i32
      %c0_i32_73 = arith.constant 0 : i32
      %c0_i32_74 = arith.constant 0 : i32
      %115 = tpu.memref_slice %arg2[%arg0, %102, %c0_i32_73, %c0_i32_74] : memref<2x16x16x128xf32, #tpu.memory_space<any>> -> memref<1x1x16x128xf32, #tpu.memory_space<any>>
      %116 = tpu.memref_squeeze %115 : memref<1x1x16x128xf32, #tpu.memory_space<any>> -> memref<1x16x128xf32, #tpu.memory_space<any>>
      %c9_i32_75 = arith.constant 9 : i32
      %c0_i32_76 = arith.constant 0 : i32
      %c0_i32_77 = arith.constant 0 : i32
      %117 = tpu.memref_slice %arg6[%9, %c9_i32_75, %c0_i32_76, %c0_i32_77] : memref<2x10x16x128xf32, #tpu.memory_space<vmem>> -> memref<1x1x16x128xf32, #tpu.memory_space<vmem>>
      %118 = tpu.memref_squeeze %117 : memref<1x1x16x128xf32, #tpu.memory_space<vmem>> -> memref<1x16x128xf32, #tpu.memory_space<vmem>>
      %119 = tpu.memref_slice %arg7[%9, %c2_i32_72] : memref<2x3x!tpu.dma_semaphore, #tpu.memory_space<semaphore_mem>> -> memref<1x1x!tpu.dma_semaphore, #tpu.memory_space<semaphore_mem>>
      %120 = tpu.memref_squeeze %119 : memref<1x1x!tpu.dma_semaphore, #tpu.memory_space<semaphore_mem>> -> memref<!tpu.dma_semaphore, #tpu.memory_space<semaphore_mem>>
      tpu.enqueue_dma source(%116 : memref<1x16x128xf32, #tpu.memory_space<any>>) target(%118 : memref<1x16x128xf32, #tpu.memory_space<vmem>>) target_semaphore(%120 : memref<!tpu.dma_semaphore, #tpu.memory_space<semaphore_mem>>)
    } else {
    }
    %c1_i32_5 = arith.constant 1 : i32
    %13 = arith.addi %arg1, %c1_i32_5 : i32
    %c2_i32_6 = arith.constant 2 : i32
    %14 = arith.cmpi slt, %13, %c2_i32_6 : i32
    %15 = arith.extui %14 : i1 to i32
    %c0_i32_7 = arith.constant 0 : i32
    %16 = arith.cmpi ne, %15, %c0_i32_7 : i32
    scf.if %16 {
      %c1_i32_55 = arith.constant 1 : i32
      %96 = arith.subi %c1_i32_55, %9 : i32
      %c1_i32_56 = arith.constant 1 : i32
      %97 = arith.addi %arg1, %c1_i32_56 : i32
      %c8_i32 = arith.constant 8 : i32
      %98 = arith.muli %97, %c8_i32 : i32
      %c0_i32_57 = arith.constant 0 : i32
      %99 = arith.cmpi eq, %97, %c0_i32_57 : i32
      %c1_i32_58 = arith.constant 1 : i32
      %100 = arith.subi %98, %c1_i32_58 : i32
      %c1_i32_59 = arith.constant 1 : i32
      %101 = arith.select %99, %c1_i32_59, %100 : i32
      %c1_i32_60 = arith.constant 1 : i32
      %102 = arith.cmpi eq, %97, %c1_i32_60 : i32
      %c8_i32_61 = arith.constant 8 : i32
      %103 = arith.addi %98, %c8_i32_61 : i32
      %c14_i32 = arith.constant 14 : i32
      %104 = arith.select %102, %c14_i32, %103 : i32
      %c0_i32_62 = arith.constant 0 : i32
      %c0_i32_63 = arith.constant 0 : i32
      %c0_i32_64 = arith.constant 0 : i32
      %105 = tpu.memref_slice %arg2[%arg0, %98, %c0_i32_63, %c0_i32_64] : memref<2x16x16x128xf32, #tpu.memory_space<any>> -> memref<1x8x16x128xf32, #tpu.memory_space<any>>
      %106 = tpu.memref_squeeze %105 : memref<1x8x16x128xf32, #tpu.memory_space<any>> -> memref<8x16x128xf32, #tpu.memory_space<any>>
      %c1_i32_65 = arith.constant 1 : i32
      %c0_i32_66 = arith.constant 0 : i32
      %c0_i32_67 = arith.constant 0 : i32
      %107 = tpu.memref_slice %arg6[%96, %c1_i32_65, %c0_i32_66, %c0_i32_67] : memref<2x10x16x128xf32, #tpu.memory_space<vmem>> -> memref<1x8x16x128xf32, #tpu.memory_space<vmem>>
      %108 = tpu.memref_squeeze %107 : memref<1x8x16x128xf32, #tpu.memory_space<vmem>> -> memref<8x16x128xf32, #tpu.memory_space<vmem>>
      %109 = tpu.memref_slice %arg7[%96, %c0_i32_62] : memref<2x3x!tpu.dma_semaphore, #tpu.memory_space<semaphore_mem>> -> memref<1x1x!tpu.dma_semaphore, #tpu.memory_space<semaphore_mem>>
      %110 = tpu.memref_squeeze %109 : memref<1x1x!tpu.dma_semaphore, #tpu.memory_space<semaphore_mem>> -> memref<!tpu.dma_semaphore, #tpu.memory_space<semaphore_mem>>
      tpu.enqueue_dma source(%106 : memref<8x16x128xf32, #tpu.memory_space<any>>) target(%108 : memref<8x16x128xf32, #tpu.memory_space<vmem>>) target_semaphore(%110 : memref<!tpu.dma_semaphore, #tpu.memory_space<semaphore_mem>>)
      %c1_i32_68 = arith.constant 1 : i32
      %c0_i32_69 = arith.constant 0 : i32
      %c0_i32_70 = arith.constant 0 : i32
      %111 = tpu.memref_slice %arg2[%arg0, %101, %c0_i32_69, %c0_i32_70] : memref<2x16x16x128xf32, #tpu.memory_space<any>> -> memref<1x1x16x128xf32, #tpu.memory_space<any>>
      %112 = tpu.memref_squeeze %111 : memref<1x1x16x128xf32, #tpu.memory_space<any>> -> memref<1x16x128xf32, #tpu.memory_space<any>>
      %c0_i32_71 = arith.constant 0 : i32
      %c0_i32_72 = arith.constant 0 : i32
      %c0_i32_73 = arith.constant 0 : i32
      %113 = tpu.memref_slice %arg6[%96, %c0_i32_71, %c0_i32_72, %c0_i32_73] : memref<2x10x16x128xf32, #tpu.memory_space<vmem>> -> memref<1x1x16x128xf32, #tpu.memory_space<vmem>>
      %114 = tpu.memref_squeeze %113 : memref<1x1x16x128xf32, #tpu.memory_space<vmem>> -> memref<1x16x128xf32, #tpu.memory_space<vmem>>
      %115 = tpu.memref_slice %arg7[%96, %c1_i32_68] : memref<2x3x!tpu.dma_semaphore, #tpu.memory_space<semaphore_mem>> -> memref<1x1x!tpu.dma_semaphore, #tpu.memory_space<semaphore_mem>>
      %116 = tpu.memref_squeeze %115 : memref<1x1x!tpu.dma_semaphore, #tpu.memory_space<semaphore_mem>> -> memref<!tpu.dma_semaphore, #tpu.memory_space<semaphore_mem>>
      tpu.enqueue_dma source(%112 : memref<1x16x128xf32, #tpu.memory_space<any>>) target(%114 : memref<1x16x128xf32, #tpu.memory_space<vmem>>) target_semaphore(%116 : memref<!tpu.dma_semaphore, #tpu.memory_space<semaphore_mem>>)
      %c2_i32_74 = arith.constant 2 : i32
      %c0_i32_75 = arith.constant 0 : i32
      %c0_i32_76 = arith.constant 0 : i32
      %117 = tpu.memref_slice %arg2[%arg0, %104, %c0_i32_75, %c0_i32_76] : memref<2x16x16x128xf32, #tpu.memory_space<any>> -> memref<1x1x16x128xf32, #tpu.memory_space<any>>
      %118 = tpu.memref_squeeze %117 : memref<1x1x16x128xf32, #tpu.memory_space<any>> -> memref<1x16x128xf32, #tpu.memory_space<any>>
      %c9_i32_77 = arith.constant 9 : i32
      %c0_i32_78 = arith.constant 0 : i32
      %c0_i32_79 = arith.constant 0 : i32
      %119 = tpu.memref_slice %arg6[%96, %c9_i32_77, %c0_i32_78, %c0_i32_79] : memref<2x10x16x128xf32, #tpu.memory_space<vmem>> -> memref<1x1x16x128xf32, #tpu.memory_space<vmem>>
      %120 = tpu.memref_squeeze %119 : memref<1x1x16x128xf32, #tpu.memory_space<vmem>> -> memref<1x16x128xf32, #tpu.memory_space<vmem>>
      %121 = tpu.memref_slice %arg7[%96, %c2_i32_74] : memref<2x3x!tpu.dma_semaphore, #tpu.memory_space<semaphore_mem>> -> memref<1x1x!tpu.dma_semaphore, #tpu.memory_space<semaphore_mem>>
      %122 = tpu.memref_squeeze %121 : memref<1x1x!tpu.dma_semaphore, #tpu.memory_space<semaphore_mem>> -> memref<!tpu.dma_semaphore, #tpu.memory_space<semaphore_mem>>
      tpu.enqueue_dma source(%118 : memref<1x16x128xf32, #tpu.memory_space<any>>) target(%120 : memref<1x16x128xf32, #tpu.memory_space<vmem>>) target_semaphore(%122 : memref<!tpu.dma_semaphore, #tpu.memory_space<semaphore_mem>>)
    } else {
    }
    %c0_i32_8 = arith.constant 0 : i32
    %17 = arith.cmpi eq, %arg1, %c0_i32_8 : i32
    %18 = arith.extui %17 : i1 to i32
    %c0_i32_9 = arith.constant 0 : i32
    %19 = arith.cmpi ne, %18, %c0_i32_9 : i32
    scf.if %19 {
      %cst_55 = arith.constant 0.000000e+00 : f32
      %96 = vector.broadcast %cst_55 : f32 to vector<1x3x128xf32>
      %c0_56 = arith.constant 0 : index
      %c0_57 = arith.constant 0 : index
      %c0_58 = arith.constant 0 : index
      %97 = vector.load %arg5[%c0_56, %c0_57, %c0_58] : memref<1x3x128xf32, #tpu.memory_space<vmem>>, vector<1x3x128xf32>
      tpu.vector_store %arg5[%c0_56, %c0_57, %c0_58], %96 {strides = array<i32>} : memref<1x3x128xf32, #tpu.memory_space<vmem>>, vector<1x3x128xf32>,
    } else {
    }
    %c0_i32_10 = arith.constant 0 : i32
    %c0_i32_11 = arith.constant 0 : i32
    %c0_i32_12 = arith.constant 0 : i32
    %c0_i32_13 = arith.constant 0 : i32
    %20 = tpu.memref_slice %arg2[%arg0, %c0_i32_11, %c0_i32_12, %c0_i32_13] : memref<2x16x16x128xf32, #tpu.memory_space<any>> -> memref<1x8x16x128xf32, #tpu.memory_space<any>>
    %21 = tpu.memref_squeeze %20 : memref<1x8x16x128xf32, #tpu.memory_space<any>> -> memref<8x16x128xf32, #tpu.memory_space<any>>
    %c1_i32_14 = arith.constant 1 : i32
    %c0_i32_15 = arith.constant 0 : i32
    %c0_i32_16 = arith.constant 0 : i32
    %22 = tpu.memref_slice %arg6[%9, %c1_i32_14, %c0_i32_15, %c0_i32_16] : memref<2x10x16x128xf32, #tpu.memory_space<vmem>> -> memref<1x8x16x128xf32, #tpu.memory_space<vmem>>
    %23 = tpu.memref_squeeze %22 : memref<1x8x16x128xf32, #tpu.memory_space<vmem>> -> memref<8x16x128xf32, #tpu.memory_space<vmem>>
    %24 = tpu.memref_slice %arg7[%9, %c0_i32_10] : memref<2x3x!tpu.dma_semaphore, #tpu.memory_space<semaphore_mem>> -> memref<1x1x!tpu.dma_semaphore, #tpu.memory_space<semaphore_mem>>
    %25 = tpu.memref_squeeze %24 : memref<1x1x!tpu.dma_semaphore, #tpu.memory_space<semaphore_mem>> -> memref<!tpu.dma_semaphore, #tpu.memory_space<semaphore_mem>>
    tpu.wait_dma2 semaphore(%25 : memref<!tpu.dma_semaphore, #tpu.memory_space<semaphore_mem>>) src(%21 : memref<8x16x128xf32, #tpu.memory_space<any>>) dst(%23 : memref<8x16x128xf32, #tpu.memory_space<vmem>>)
    %c1_i32_17 = arith.constant 1 : i32
    %c0_i32_18 = arith.constant 0 : i32
    %c0_i32_19 = arith.constant 0 : i32
    %c0_i32_20 = arith.constant 0 : i32
    %26 = tpu.memref_slice %arg2[%arg0, %c0_i32_18, %c0_i32_19, %c0_i32_20] : memref<2x16x16x128xf32, #tpu.memory_space<any>> -> memref<1x1x16x128xf32, #tpu.memory_space<any>>
    %27 = tpu.memref_squeeze %26 : memref<1x1x16x128xf32, #tpu.memory_space<any>> -> memref<1x16x128xf32, #tpu.memory_space<any>>
    %c0_i32_21 = arith.constant 0 : i32
    %c0_i32_22 = arith.constant 0 : i32
    %c0_i32_23 = arith.constant 0 : i32
    %28 = tpu.memref_slice %arg6[%9, %c0_i32_21, %c0_i32_22, %c0_i32_23] : memref<2x10x16x128xf32, #tpu.memory_space<vmem>> -> memref<1x1x16x128xf32, #tpu.memory_space<vmem>>
    %29 = tpu.memref_squeeze %28 : memref<1x1x16x128xf32, #tpu.memory_space<vmem>> -> memref<1x16x128xf32, #tpu.memory_space<vmem>>
    %30 = tpu.memref_slice %arg7[%9, %c1_i32_17] : memref<2x3x!tpu.dma_semaphore, #tpu.memory_space<semaphore_mem>> -> memref<1x1x!tpu.dma_semaphore, #tpu.memory_space<semaphore_mem>>
    %31 = tpu.memref_squeeze %30 : memref<1x1x!tpu.dma_semaphore, #tpu.memory_space<semaphore_mem>> -> memref<!tpu.dma_semaphore, #tpu.memory_space<semaphore_mem>>
    tpu.wait_dma2 semaphore(%31 : memref<!tpu.dma_semaphore, #tpu.memory_space<semaphore_mem>>) src(%27 : memref<1x16x128xf32, #tpu.memory_space<any>>) dst(%29 : memref<1x16x128xf32, #tpu.memory_space<vmem>>)
    %c2_i32_24 = arith.constant 2 : i32
    %c0_i32_25 = arith.constant 0 : i32
    %c0_i32_26 = arith.constant 0 : i32
    %c0_i32_27 = arith.constant 0 : i32
    %32 = tpu.memref_slice %arg2[%arg0, %c0_i32_25, %c0_i32_26, %c0_i32_27] : memref<2x16x16x128xf32, #tpu.memory_space<any>> -> memref<1x1x16x128xf32, #tpu.memory_space<any>>
    %33 = tpu.memref_squeeze %32 : memref<1x1x16x128xf32, #tpu.memory_space<any>> -> memref<1x16x128xf32, #tpu.memory_space<any>>
    %c9_i32 = arith.constant 9 : i32
    %c0_i32_28 = arith.constant 0 : i32
    %c0_i32_29 = arith.constant 0 : i32
    %34 = tpu.memref_slice %arg6[%9, %c9_i32, %c0_i32_28, %c0_i32_29] : memref<2x10x16x128xf32, #tpu.memory_space<vmem>> -> memref<1x1x16x128xf32, #tpu.memory_space<vmem>>
    %35 = tpu.memref_squeeze %34 : memref<1x1x16x128xf32, #tpu.memory_space<vmem>> -> memref<1x16x128xf32, #tpu.memory_space<vmem>>
    %36 = tpu.memref_slice %arg7[%9, %c2_i32_24] : memref<2x3x!tpu.dma_semaphore, #tpu.memory_space<semaphore_mem>> -> memref<1x1x!tpu.dma_semaphore, #tpu.memory_space<semaphore_mem>>
    %37 = tpu.memref_squeeze %36 : memref<1x1x!tpu.dma_semaphore, #tpu.memory_space<semaphore_mem>> -> memref<!tpu.dma_semaphore, #tpu.memory_space<semaphore_mem>>
    tpu.wait_dma2 semaphore(%37 : memref<!tpu.dma_semaphore, #tpu.memory_space<semaphore_mem>>) src(%33 : memref<1x16x128xf32, #tpu.memory_space<any>>) dst(%35 : memref<1x16x128xf32, #tpu.memory_space<vmem>>)
    %38 = arith.index_cast %9 : i32 to index
    %c0 = arith.constant 0 : index
    %c0_30 = arith.constant 0 : index
    %c0_31 = arith.constant 0 : index
    %39 = vector.load %arg6[%38, %c0, %c0_30, %c0_31] : memref<2x10x16x128xf32, #tpu.memory_space<vmem>>, vector<1x10x16x128xf32>
    %40 = vector.shape_cast %39 : vector<1x10x16x128xf32> to vector<10x16x128xf32>
    %41 = arith.truncf %40 : vector<10x16x128xf32> to vector<10x16x128xbf16>
    %42 = vector.extract_strided_slice %41 {offsets = [0, 1, 0], sizes = [10, 1, 128], strides = [1, 1, 1]} : vector<10x16x128xbf16> to vector<10x1x128xbf16>
    %43 = vector.extract_strided_slice %41 {offsets = [0, 14, 0], sizes = [10, 1, 128], strides = [1, 1, 1]} : vector<10x16x128xbf16> to vector<10x1x128xbf16>
    %44 = tpu.concatenate %42, %41, %43 in 1 : vector<10x1x128xbf16>, vector<10x16x128xbf16>, vector<10x1x128xbf16> -> vector<10x18x128xbf16>
    %cst = arith.constant 0.000000e+00 : f32
    %45 = vector.broadcast %cst : f32 to vector<128x128xf32>
    %46 = vector.extract_strided_slice %44 {offsets = [0, 0, 0], sizes = [8, 16, 128], strides = [1, 1, 1]} : vector<10x18x128xbf16> to vector<8x16x128xbf16>
    %47 = vector.extract_strided_slice %44 {offsets = [1, 0, 0], sizes = [8, 16, 128], strides = [1, 1, 1]} : vector<10x18x128xbf16> to vector<8x16x128xbf16>
    %48 = vector.extract_strided_slice %44 {offsets = [2, 0, 0], sizes = [8, 16, 128], strides = [1, 1, 1]} : vector<10x18x128xbf16> to vector<8x16x128xbf16>
    %49 = tpu.concatenate %46, %47, %48 in 2 : vector<8x16x128xbf16>, vector<8x16x128xbf16>, vector<8x16x128xbf16> -> vector<8x16x384xbf16>
    %50 = vector.shape_cast %49 : vector<8x16x384xbf16> to vector<128x384xbf16>
    %c0_32 = arith.constant 0 : index
    %c0_33 = arith.constant 0 : index
    %c0_34 = arith.constant 0 : index
    %51 = vector.load %arg3[%c0_32, %c0_33, %c0_34] : memref<3x384x128xbf16, #tpu.memory_space<vmem>>, vector<1x384x128xbf16>
    %52 = vector.shape_cast %51 : vector<1x384x128xbf16> to vector<384x128xbf16>
    %cst_35 = arith.constant dense<0.000000e+00> : vector<128x128xf32>
    %53 = tpu.matmul %50, %52, %cst_35 {dimension_numbers = #tpu.dot_dimension_numbers<[1], [0], [0], [1], [0, 0, 1, 1], [], []>} : vector<128x384xbf16>, vector<384x128xbf16>, vector<128x128xf32> -> vector<128x128xf32>
    %54 = arith.addf %45, %53 : vector<128x128xf32>
    %55 = vector.extract_strided_slice %44 {offsets = [0, 1, 0], sizes = [8, 16, 128], strides = [1, 1, 1]} : vector<10x18x128xbf16> to vector<8x16x128xbf16>
    %56 = vector.extract_strided_slice %44 {offsets = [1, 1, 0], sizes = [8, 16, 128], strides = [1, 1, 1]} : vector<10x18x128xbf16> to vector<8x16x128xbf16>
    %57 = vector.extract_strided_slice %44 {offsets = [2, 1, 0], sizes = [8, 16, 128], strides = [1, 1, 1]} : vector<10x18x128xbf16> to vector<8x16x128xbf16>
    %58 = tpu.concatenate %55, %56, %57 in 2 : vector<8x16x128xbf16>, vector<8x16x128xbf16>, vector<8x16x128xbf16> -> vector<8x16x384xbf16>
    %59 = vector.shape_cast %58 : vector<8x16x384xbf16> to vector<128x384xbf16>
    %c1 = arith.constant 1 : index
    %c0_36 = arith.constant 0 : index
    %c0_37 = arith.constant 0 : index
    %60 = vector.load %arg3[%c1, %c0_36, %c0_37] : memref<3x384x128xbf16, #tpu.memory_space<vmem>>, vector<1x384x128xbf16>
    %61 = vector.shape_cast %60 : vector<1x384x128xbf16> to vector<384x128xbf16>
    %cst_38 = arith.constant dense<0.000000e+00> : vector<128x128xf32>
    %62 = tpu.matmul %59, %61, %cst_38 {dimension_numbers = #tpu.dot_dimension_numbers<[1], [0], [0], [1], [0, 0, 1, 1], [], []>} : vector<128x384xbf16>, vector<384x128xbf16>, vector<128x128xf32> -> vector<128x128xf32>
    %63 = arith.addf %54, %62 : vector<128x128xf32>
    %64 = vector.extract_strided_slice %44 {offsets = [0, 2, 0], sizes = [8, 16, 128], strides = [1, 1, 1]} : vector<10x18x128xbf16> to vector<8x16x128xbf16>
    %65 = vector.extract_strided_slice %44 {offsets = [1, 2, 0], sizes = [8, 16, 128], strides = [1, 1, 1]} : vector<10x18x128xbf16> to vector<8x16x128xbf16>
    %66 = vector.extract_strided_slice %44 {offsets = [2, 2, 0], sizes = [8, 16, 128], strides = [1, 1, 1]} : vector<10x18x128xbf16> to vector<8x16x128xbf16>
    %67 = tpu.concatenate %64, %65, %66 in 2 : vector<8x16x128xbf16>, vector<8x16x128xbf16>, vector<8x16x128xbf16> -> vector<8x16x384xbf16>
    %68 = vector.shape_cast %67 : vector<8x16x384xbf16> to vector<128x384xbf16>
    %c2 = arith.constant 2 : index
    %c0_39 = arith.constant 0 : index
    %c0_40 = arith.constant 0 : index
    %69 = vector.load %arg3[%c2, %c0_39, %c0_40] : memref<3x384x128xbf16, #tpu.memory_space<vmem>>, vector<1x384x128xbf16>
    %70 = vector.shape_cast %69 : vector<1x384x128xbf16> to vector<384x128xbf16>
    %cst_41 = arith.constant dense<0.000000e+00> : vector<128x128xf32>
    %71 = tpu.matmul %68, %70, %cst_41 {dimension_numbers = #tpu.dot_dimension_numbers<[1], [0], [0], [1], [0, 0, 1, 1], [], []>} : vector<128x384xbf16>, vector<384x128xbf16>, vector<128x128xf32> -> vector<128x128xf32>
    %72 = arith.addf %63, %71 : vector<128x128xf32>
    %73 = arith.truncf %72 : vector<128x128xf32> to vector<128x128xbf16>
    %c0_42 = arith.constant 0 : index
    %c0_43 = arith.constant 0 : index
    %c0_44 = arith.constant 0 : index
    %74 = vector.load %arg4[%c0_42, %c0_43, %c0_44] : memref<1x128x128xbf16, #tpu.memory_space<vmem>>, vector<1x128x128xbf16>
    %75 = vector.shape_cast %74 : vector<1x128x128xbf16> to vector<128x128xbf16>
    %76 = vector.shape_cast %73 : vector<128x128xbf16> to vector<1x128x128xbf16>
    tpu.vector_store %arg4[%c0_42, %c0_43, %c0_44], %76 {strides = array<i32>} : memref<1x128x128xbf16, #tpu.memory_space<vmem>>, vector<1x128x128xbf16>,
    %cst_45 = arith.constant dense<0.000000e+00> : vector<128xf32>
    %77 = vector.multi_reduction <add>, %72, %cst_45 [0] : vector<128x128xf32> to vector<128xf32>
    %78 = vector.shape_cast %77 : vector<128xf32> to vector<1x128xf32>
    %cst_46 = arith.constant 7.812500e-03 : f32
    %79 = vector.broadcast %cst_46 : f32 to vector<1x128xf32>
    %80 = arith.mulf %78, %79 : vector<1x128xf32>
    %81 = vector.broadcast %80 : vector<1x128xf32> to vector<128x128xf32>
    %82 = arith.subf %72, %81 : vector<128x128xf32>
    %83 = arith.mulf %82, %82 : vector<128x128xf32>
    %cst_47 = arith.constant dense<0.000000e+00> : vector<128xf32>
    %84 = vector.multi_reduction <add>, %83, %cst_47 [0] : vector<128x128xf32> to vector<128xf32>
    %85 = vector.shape_cast %84 : vector<128xf32> to vector<1x128xf32>
    %cst_48 = arith.constant 1.280000e+02 : f32
    %86 = vector.broadcast %cst_48 : f32 to vector<1x128xf32>
    %87 = arith.mulf %86, %80 : vector<1x128xf32>
    %88 = arith.mulf %87, %80 : vector<1x128xf32>
    %c0_49 = arith.constant 0 : index
    %c0_50 = arith.constant 0 : index
    %c0_51 = arith.constant 0 : index
    %89 = vector.load %arg5[%c0_49, %c0_50, %c0_51] : memref<1x3x128xf32, #tpu.memory_space<vmem>>, vector<1x3x128xf32>
    %90 = vector.shape_cast %89 : vector<1x3x128xf32> to vector<3x128xf32>
    %91 = tpu.concatenate %78, %85, %88 in 0 : vector<1x128xf32>, vector<1x128xf32>, vector<1x128xf32> -> vector<3x128xf32>
    %92 = arith.addf %90, %91 : vector<3x128xf32>
    %c0_52 = arith.constant 0 : index
    %c0_53 = arith.constant 0 : index
    %c0_54 = arith.constant 0 : index
    %93 = vector.load %arg5[%c0_52, %c0_53, %c0_54] : memref<1x3x128xf32, #tpu.memory_space<vmem>>, vector<1x3x128xf32>
    %94 = vector.shape_cast %93 : vector<1x3x128xf32> to vector<3x128xf32>
    %95 = vector.shape_cast %92 : vector<3x128xf32> to vector<1x3x128xf32>
    tpu.vector_store %arg5[%c0_52, %c0_53, %c0_54], %95 {strides = array<i32>} : memref<1x3x128xf32, #tpu.memory_space<vmem>>, vector<1x3x128xf32>,
    return
  }
  func.func @transform_1(%arg0: i32, %arg1: i32) -> (i32, i32, i32) {
    %c0_i32 = arith.constant 0 : i32
    %c0_i32_0 = arith.constant 0 : i32
    %c0_i32_1 = arith.constant 0 : i32
    %c0_i32_2 = arith.constant 0 : i32
    return %c0_i32, %c0_i32_0, %c0_i32_1 : i32, i32, i32
  }
  func.func @transform_2(%arg0: i32, %arg1: i32) -> (i32, i32, i32) {
    %c0_i32 = arith.constant 0 : i32
    %c0_i32_0 = arith.constant 0 : i32
    return %arg0, %arg1, %c0_i32 : i32, i32, i32
  }
  func.func @transform_3(%arg0: i32, %arg1: i32) -> (i32, i32, i32) {
    %c0_i32 = arith.constant 0 : i32
    %c0_i32_0 = arith.constant 0 : i32
    %c0_i32_1 = arith.constant 0 : i32
    return %arg0, %c0_i32, %c0_i32_0 : i32, i32, i32
  }
}

module attributes {stable_mosaic.version = 11 : i64} {
  func.func @_norm_residual_kernel(%arg0: i32, %arg1: i32, %arg2: memref<1x256x128xbf16, #tpu.memory_space<vmem>>, %arg3: memref<1x3x128xf32, #tpu.memory_space<vmem>>, %arg4: memref<1x256x128xf32, #tpu.memory_space<vmem>>, %arg5: memref<1x256x128xf32, #tpu.memory_space<vmem>>) attributes {dimension_semantics = [#tpu.dimension_semantics<parallel>, #tpu.dimension_semantics<parallel>], iteration_bounds = array<i64: 2, 1>, scalar_prefetch = 0 : i64, scratch_operands = 0 : i64, tpu.core_type = #tpu.core_type<tc>, window_params = [{transform_indices = @transform_0, window_bounds = array<i64: 1, 256, 128>}, {transform_indices = @transform_1, window_bounds = array<i64: 1, 3, 128>}, {transform_indices = @transform_2, window_bounds = array<i64: 1, 256, 128>}, {transform_indices = @transform_3, window_bounds = array<i64: 1, 256, 128>}]} {
    %c0 = arith.constant 0 : index
    %c0_0 = arith.constant 0 : index
    %c0_1 = arith.constant 0 : index
    %0 = vector.load %arg3[%c0, %c0_0, %c0_1] : memref<1x3x128xf32, #tpu.memory_space<vmem>>, vector<1x3x128xf32>
    %1 = vector.shape_cast %0 : vector<1x3x128xf32> to vector<3x128xf32>
    %2 = vector.extract_strided_slice %1 {offsets = [0, 0], sizes = [1, 128], strides = [1, 1]} : vector<3x128xf32> to vector<1x128xf32>
    %cst = arith.constant 3.906250e-03 : f32
    %3 = vector.broadcast %cst : f32 to vector<1x128xf32>
    %4 = arith.mulf %2, %3 : vector<1x128xf32>
    %5 = vector.extract_strided_slice %1 {offsets = [1, 0], sizes = [1, 128], strides = [1, 1]} : vector<3x128xf32> to vector<1x128xf32>
    %6 = vector.extract_strided_slice %1 {offsets = [2, 0], sizes = [1, 128], strides = [1, 1]} : vector<3x128xf32> to vector<1x128xf32>
    %7 = arith.addf %5, %6 : vector<1x128xf32>
    %cst_2 = arith.constant 3.906250e-03 : f32
    %8 = vector.broadcast %cst_2 : f32 to vector<1x128xf32>
    %9 = arith.mulf %7, %8 : vector<1x128xf32>
    %10 = arith.mulf %4, %4 : vector<1x128xf32>
    %11 = arith.subf %9, %10 : vector<1x128xf32>
    %cst_3 = arith.constant 0.000000e+00 : f32
    %12 = vector.broadcast %cst_3 : f32 to vector<1x128xf32>
    %13 = arith.maximumf %11, %12 : vector<1x128xf32>
    %cst_4 = arith.constant 9.99999974E-6 : f32
    %14 = vector.broadcast %cst_4 : f32 to vector<1x128xf32>
    %15 = arith.addf %13, %14 : vector<1x128xf32>
    %16 = math.rsqrt %15 : vector<1x128xf32>
    %c0_5 = arith.constant 0 : index
    %c0_6 = arith.constant 0 : index
    %c0_7 = arith.constant 0 : index
    %17 = vector.load %arg4[%c0_5, %c0_6, %c0_7] : memref<1x256x128xf32, #tpu.memory_space<vmem>>, vector<1x256x128xf32>
    %18 = vector.shape_cast %17 : vector<1x256x128xf32> to vector<256x128xf32>
    %c0_8 = arith.constant 0 : index
    %c0_9 = arith.constant 0 : index
    %c0_10 = arith.constant 0 : index
    %19 = vector.load %arg2[%c0_8, %c0_9, %c0_10] : memref<1x256x128xbf16, #tpu.memory_space<vmem>>, vector<1x256x128xbf16>
    %20 = vector.shape_cast %19 : vector<1x256x128xbf16> to vector<256x128xbf16>
    %21 = arith.extf %20 : vector<256x128xbf16> to vector<256x128xf32>
    %22 = vector.broadcast %16 : vector<1x128xf32> to vector<256x128xf32>
    %23 = arith.mulf %21, %22 : vector<256x128xf32>
    %24 = arith.addf %18, %23 : vector<256x128xf32>
    %cst_11 = arith.constant 0.000000e+00 : f32
    %25 = vector.broadcast %cst_11 : f32 to vector<1x128xf32>
    %26 = arith.subf %25, %4 : vector<1x128xf32>
    %27 = arith.mulf %26, %16 : vector<1x128xf32>
    %28 = vector.broadcast %27 : vector<1x128xf32> to vector<256x128xf32>
    %29 = arith.addf %24, %28 : vector<256x128xf32>
    %c0_12 = arith.constant 0 : index
    %c0_13 = arith.constant 0 : index
    %c0_14 = arith.constant 0 : index
    %30 = vector.load %arg5[%c0_12, %c0_13, %c0_14] : memref<1x256x128xf32, #tpu.memory_space<vmem>>, vector<1x256x128xf32>
    %31 = vector.shape_cast %30 : vector<1x256x128xf32> to vector<256x128xf32>
    %32 = vector.shape_cast %29 : vector<256x128xf32> to vector<1x256x128xf32>
    tpu.vector_store %arg5[%c0_12, %c0_13, %c0_14], %32 {strides = array<i32>} : memref<1x256x128xf32, #tpu.memory_space<vmem>>, vector<1x256x128xf32>,
    return
  }
  func.func @transform_0(%arg0: i32, %arg1: i32) -> (i32, i32, i32) {
    %c0_i32 = arith.constant 0 : i32
    %c0_i32_0 = arith.constant 0 : i32
    return %arg0, %arg1, %c0_i32 : i32, i32, i32
  }
  func.func @transform_1(%arg0: i32, %arg1: i32) -> (i32, i32, i32) {
    %c0_i32 = arith.constant 0 : i32
    %c0_i32_0 = arith.constant 0 : i32
    %c0_i32_1 = arith.constant 0 : i32
    return %arg0, %c0_i32, %c0_i32_0 : i32, i32, i32
  }
  func.func @transform_2(%arg0: i32, %arg1: i32) -> (i32, i32, i32) {
    %c0_i32 = arith.constant 0 : i32
    %c0_i32_0 = arith.constant 0 : i32
    return %arg0, %arg1, %c0_i32 : i32, i32, i32
  }
  func.func @transform_3(%arg0: i32, %arg1: i32) -> (i32, i32, i32) {
    %c0_i32 = arith.constant 0 : i32
    %c0_i32_0 = arith.constant 0 : i32
    return %arg0, %arg1, %c0_i32 : i32, i32, i32
  }
}

module attributes {stable_mosaic.version = 11 : i64} {
  func.func @_conv_stats_kernel(%arg0: i32, %arg1: i32, %arg2: memref<2x16x16x128xbf16, #tpu.memory_space<any>>, %arg3: memref<1x3x128xf32, #tpu.memory_space<vmem>>, %arg4: memref<3x384x128xbf16, #tpu.memory_space<vmem>>, %arg5: memref<1x128x128xbf16, #tpu.memory_space<vmem>>, %arg6: memref<1x3x128xf32, #tpu.memory_space<vmem>>, %arg7: memref<2x10x16x128xbf16, #tpu.memory_space<vmem>>, %arg8: memref<2x3x!tpu.dma_semaphore, #tpu.memory_space<semaphore_mem>>) attributes {dimension_semantics = [#tpu.dimension_semantics<parallel>, #tpu.dimension_semantics<arbitrary>], iteration_bounds = array<i64: 2, 2>, scalar_prefetch = 0 : i64, scratch_operands = 2 : i64, tpu.core_type = #tpu.core_type<tc>, window_params = [{}, {transform_indices = @transform_1, window_bounds = array<i64: 1, 3, 128>}, {pipeline_mode = #tpu.pipeline_mode<synchronous>, transform_indices = @transform_2, window_bounds = array<i64: 3, 384, 128>}, {transform_indices = @transform_3, window_bounds = array<i64: 1, 128, 128>}, {transform_indices = @transform_4, window_bounds = array<i64: 1, 3, 128>}]} {
    %c2_i32 = arith.constant 2 : i32
    %c0_i32 = arith.constant 0 : i32
    %0 = arith.cmpi eq, %c2_i32, %c0_i32 : i32
    %c1_i32 = arith.constant 1 : i32
    %1 = arith.select %0, %c1_i32, %c2_i32 : i32
    %2 = arith.remsi %arg1, %1 : i32
    %c0_i32_0 = arith.constant 0 : i32
    %3 = arith.cmpi ne, %2, %c0_i32_0 : i32
    %c0_i32_1 = arith.constant 0 : i32
    %4 = arith.cmpi slt, %2, %c0_i32_1 : i32
    %c0_i32_2 = arith.constant 0 : i32
    %5 = arith.cmpi slt, %1, %c0_i32_2 : i32
    %6 = arith.xori %4, %5 : i1
    %7 = arith.andi %6, %3 : i1
    %8 = arith.addi %2, %1 : i32
    %9 = arith.select %7, %8, %2 : i32
    %c0_i32_3 = arith.constant 0 : i32
    %10 = arith.cmpi eq, %arg1, %c0_i32_3 : i32
    %11 = arith.extui %10 : i1 to i32
    %c0_i32_4 = arith.constant 0 : i32
    %12 = arith.cmpi ne, %11, %c0_i32_4 : i32
    scf.if %12 {
      %c8_i32 = arith.constant 8 : i32
      %125 = arith.muli %arg1, %c8_i32 : i32
      %c0_i32_64 = arith.constant 0 : i32
      %126 = arith.cmpi eq, %arg1, %c0_i32_64 : i32
      %c1_i32_65 = arith.constant 1 : i32
      %127 = arith.subi %125, %c1_i32_65 : i32
      %c1_i32_66 = arith.constant 1 : i32
      %128 = arith.select %126, %c1_i32_66, %127 : i32
      %c1_i32_67 = arith.constant 1 : i32
      %129 = arith.cmpi eq, %arg1, %c1_i32_67 : i32
      %c8_i32_68 = arith.constant 8 : i32
      %130 = arith.addi %125, %c8_i32_68 : i32
      %c14_i32 = arith.constant 14 : i32
      %131 = arith.select %129, %c14_i32, %130 : i32
      %c0_i32_69 = arith.constant 0 : i32
      %c0_i32_70 = arith.constant 0 : i32
      %c0_i32_71 = arith.constant 0 : i32
      %132 = tpu.memref_slice %arg2[%arg0, %125, %c0_i32_70, %c0_i32_71] : memref<2x16x16x128xbf16, #tpu.memory_space<any>> -> memref<1x8x16x128xbf16, #tpu.memory_space<any>>
      %133 = tpu.memref_squeeze %132 : memref<1x8x16x128xbf16, #tpu.memory_space<any>> -> memref<8x16x128xbf16, #tpu.memory_space<any>>
      %c1_i32_72 = arith.constant 1 : i32
      %c0_i32_73 = arith.constant 0 : i32
      %c0_i32_74 = arith.constant 0 : i32
      %134 = tpu.memref_slice %arg7[%9, %c1_i32_72, %c0_i32_73, %c0_i32_74] : memref<2x10x16x128xbf16, #tpu.memory_space<vmem>> -> memref<1x8x16x128xbf16, #tpu.memory_space<vmem>>
      %135 = tpu.memref_squeeze %134 : memref<1x8x16x128xbf16, #tpu.memory_space<vmem>> -> memref<8x16x128xbf16, #tpu.memory_space<vmem>>
      %136 = tpu.memref_slice %arg8[%9, %c0_i32_69] : memref<2x3x!tpu.dma_semaphore, #tpu.memory_space<semaphore_mem>> -> memref<1x1x!tpu.dma_semaphore, #tpu.memory_space<semaphore_mem>>
      %137 = tpu.memref_squeeze %136 : memref<1x1x!tpu.dma_semaphore, #tpu.memory_space<semaphore_mem>> -> memref<!tpu.dma_semaphore, #tpu.memory_space<semaphore_mem>>
      tpu.enqueue_dma source(%133 : memref<8x16x128xbf16, #tpu.memory_space<any>>) target(%135 : memref<8x16x128xbf16, #tpu.memory_space<vmem>>) target_semaphore(%137 : memref<!tpu.dma_semaphore, #tpu.memory_space<semaphore_mem>>)
      %c1_i32_75 = arith.constant 1 : i32
      %c0_i32_76 = arith.constant 0 : i32
      %c0_i32_77 = arith.constant 0 : i32
      %138 = tpu.memref_slice %arg2[%arg0, %128, %c0_i32_76, %c0_i32_77] : memref<2x16x16x128xbf16, #tpu.memory_space<any>> -> memref<1x1x16x128xbf16, #tpu.memory_space<any>>
      %139 = tpu.memref_squeeze %138 : memref<1x1x16x128xbf16, #tpu.memory_space<any>> -> memref<1x16x128xbf16, #tpu.memory_space<any>>
      %c0_i32_78 = arith.constant 0 : i32
      %c0_i32_79 = arith.constant 0 : i32
      %c0_i32_80 = arith.constant 0 : i32
      %140 = tpu.memref_slice %arg7[%9, %c0_i32_78, %c0_i32_79, %c0_i32_80] : memref<2x10x16x128xbf16, #tpu.memory_space<vmem>> -> memref<1x1x16x128xbf16, #tpu.memory_space<vmem>>
      %141 = tpu.memref_squeeze %140 : memref<1x1x16x128xbf16, #tpu.memory_space<vmem>> -> memref<1x16x128xbf16, #tpu.memory_space<vmem>>
      %142 = tpu.memref_slice %arg8[%9, %c1_i32_75] : memref<2x3x!tpu.dma_semaphore, #tpu.memory_space<semaphore_mem>> -> memref<1x1x!tpu.dma_semaphore, #tpu.memory_space<semaphore_mem>>
      %143 = tpu.memref_squeeze %142 : memref<1x1x!tpu.dma_semaphore, #tpu.memory_space<semaphore_mem>> -> memref<!tpu.dma_semaphore, #tpu.memory_space<semaphore_mem>>
      tpu.enqueue_dma source(%139 : memref<1x16x128xbf16, #tpu.memory_space<any>>) target(%141 : memref<1x16x128xbf16, #tpu.memory_space<vmem>>) target_semaphore(%143 : memref<!tpu.dma_semaphore, #tpu.memory_space<semaphore_mem>>)
      %c2_i32_81 = arith.constant 2 : i32
      %c0_i32_82 = arith.constant 0 : i32
      %c0_i32_83 = arith.constant 0 : i32
      %144 = tpu.memref_slice %arg2[%arg0, %131, %c0_i32_82, %c0_i32_83] : memref<2x16x16x128xbf16, #tpu.memory_space<any>> -> memref<1x1x16x128xbf16, #tpu.memory_space<any>>
      %145 = tpu.memref_squeeze %144 : memref<1x1x16x128xbf16, #tpu.memory_space<any>> -> memref<1x16x128xbf16, #tpu.memory_space<any>>
      %c9_i32_84 = arith.constant 9 : i32
      %c0_i32_85 = arith.constant 0 : i32
      %c0_i32_86 = arith.constant 0 : i32
      %146 = tpu.memref_slice %arg7[%9, %c9_i32_84, %c0_i32_85, %c0_i32_86] : memref<2x10x16x128xbf16, #tpu.memory_space<vmem>> -> memref<1x1x16x128xbf16, #tpu.memory_space<vmem>>
      %147 = tpu.memref_squeeze %146 : memref<1x1x16x128xbf16, #tpu.memory_space<vmem>> -> memref<1x16x128xbf16, #tpu.memory_space<vmem>>
      %148 = tpu.memref_slice %arg8[%9, %c2_i32_81] : memref<2x3x!tpu.dma_semaphore, #tpu.memory_space<semaphore_mem>> -> memref<1x1x!tpu.dma_semaphore, #tpu.memory_space<semaphore_mem>>
      %149 = tpu.memref_squeeze %148 : memref<1x1x!tpu.dma_semaphore, #tpu.memory_space<semaphore_mem>> -> memref<!tpu.dma_semaphore, #tpu.memory_space<semaphore_mem>>
      tpu.enqueue_dma source(%145 : memref<1x16x128xbf16, #tpu.memory_space<any>>) target(%147 : memref<1x16x128xbf16, #tpu.memory_space<vmem>>) target_semaphore(%149 : memref<!tpu.dma_semaphore, #tpu.memory_space<semaphore_mem>>)
    } else {
    }
    %c1_i32_5 = arith.constant 1 : i32
    %13 = arith.addi %arg1, %c1_i32_5 : i32
    %c2_i32_6 = arith.constant 2 : i32
    %14 = arith.cmpi slt, %13, %c2_i32_6 : i32
    %15 = arith.extui %14 : i1 to i32
    %c0_i32_7 = arith.constant 0 : i32
    %16 = arith.cmpi ne, %15, %c0_i32_7 : i32
    scf.if %16 {
      %c1_i32_64 = arith.constant 1 : i32
      %125 = arith.subi %c1_i32_64, %9 : i32
      %c1_i32_65 = arith.constant 1 : i32
      %126 = arith.addi %arg1, %c1_i32_65 : i32
      %c8_i32 = arith.constant 8 : i32
      %127 = arith.muli %126, %c8_i32 : i32
      %c0_i32_66 = arith.constant 0 : i32
      %128 = arith.cmpi eq, %126, %c0_i32_66 : i32
      %c1_i32_67 = arith.constant 1 : i32
      %129 = arith.subi %127, %c1_i32_67 : i32
      %c1_i32_68 = arith.constant 1 : i32
      %130 = arith.select %128, %c1_i32_68, %129 : i32
      %c1_i32_69 = arith.constant 1 : i32
      %131 = arith.cmpi eq, %126, %c1_i32_69 : i32
      %c8_i32_70 = arith.constant 8 : i32
      %132 = arith.addi %127, %c8_i32_70 : i32
      %c14_i32 = arith.constant 14 : i32
      %133 = arith.select %131, %c14_i32, %132 : i32
      %c0_i32_71 = arith.constant 0 : i32
      %c0_i32_72 = arith.constant 0 : i32
      %c0_i32_73 = arith.constant 0 : i32
      %134 = tpu.memref_slice %arg2[%arg0, %127, %c0_i32_72, %c0_i32_73] : memref<2x16x16x128xbf16, #tpu.memory_space<any>> -> memref<1x8x16x128xbf16, #tpu.memory_space<any>>
      %135 = tpu.memref_squeeze %134 : memref<1x8x16x128xbf16, #tpu.memory_space<any>> -> memref<8x16x128xbf16, #tpu.memory_space<any>>
      %c1_i32_74 = arith.constant 1 : i32
      %c0_i32_75 = arith.constant 0 : i32
      %c0_i32_76 = arith.constant 0 : i32
      %136 = tpu.memref_slice %arg7[%125, %c1_i32_74, %c0_i32_75, %c0_i32_76] : memref<2x10x16x128xbf16, #tpu.memory_space<vmem>> -> memref<1x8x16x128xbf16, #tpu.memory_space<vmem>>
      %137 = tpu.memref_squeeze %136 : memref<1x8x16x128xbf16, #tpu.memory_space<vmem>> -> memref<8x16x128xbf16, #tpu.memory_space<vmem>>
      %138 = tpu.memref_slice %arg8[%125, %c0_i32_71] : memref<2x3x!tpu.dma_semaphore, #tpu.memory_space<semaphore_mem>> -> memref<1x1x!tpu.dma_semaphore, #tpu.memory_space<semaphore_mem>>
      %139 = tpu.memref_squeeze %138 : memref<1x1x!tpu.dma_semaphore, #tpu.memory_space<semaphore_mem>> -> memref<!tpu.dma_semaphore, #tpu.memory_space<semaphore_mem>>
      tpu.enqueue_dma source(%135 : memref<8x16x128xbf16, #tpu.memory_space<any>>) target(%137 : memref<8x16x128xbf16, #tpu.memory_space<vmem>>) target_semaphore(%139 : memref<!tpu.dma_semaphore, #tpu.memory_space<semaphore_mem>>)
      %c1_i32_77 = arith.constant 1 : i32
      %c0_i32_78 = arith.constant 0 : i32
      %c0_i32_79 = arith.constant 0 : i32
      %140 = tpu.memref_slice %arg2[%arg0, %130, %c0_i32_78, %c0_i32_79] : memref<2x16x16x128xbf16, #tpu.memory_space<any>> -> memref<1x1x16x128xbf16, #tpu.memory_space<any>>
      %141 = tpu.memref_squeeze %140 : memref<1x1x16x128xbf16, #tpu.memory_space<any>> -> memref<1x16x128xbf16, #tpu.memory_space<any>>
      %c0_i32_80 = arith.constant 0 : i32
      %c0_i32_81 = arith.constant 0 : i32
      %c0_i32_82 = arith.constant 0 : i32
      %142 = tpu.memref_slice %arg7[%125, %c0_i32_80, %c0_i32_81, %c0_i32_82] : memref<2x10x16x128xbf16, #tpu.memory_space<vmem>> -> memref<1x1x16x128xbf16, #tpu.memory_space<vmem>>
      %143 = tpu.memref_squeeze %142 : memref<1x1x16x128xbf16, #tpu.memory_space<vmem>> -> memref<1x16x128xbf16, #tpu.memory_space<vmem>>
      %144 = tpu.memref_slice %arg8[%125, %c1_i32_77] : memref<2x3x!tpu.dma_semaphore, #tpu.memory_space<semaphore_mem>> -> memref<1x1x!tpu.dma_semaphore, #tpu.memory_space<semaphore_mem>>
      %145 = tpu.memref_squeeze %144 : memref<1x1x!tpu.dma_semaphore, #tpu.memory_space<semaphore_mem>> -> memref<!tpu.dma_semaphore, #tpu.memory_space<semaphore_mem>>
      tpu.enqueue_dma source(%141 : memref<1x16x128xbf16, #tpu.memory_space<any>>) target(%143 : memref<1x16x128xbf16, #tpu.memory_space<vmem>>) target_semaphore(%145 : memref<!tpu.dma_semaphore, #tpu.memory_space<semaphore_mem>>)
      %c2_i32_83 = arith.constant 2 : i32
      %c0_i32_84 = arith.constant 0 : i32
      %c0_i32_85 = arith.constant 0 : i32
      %146 = tpu.memref_slice %arg2[%arg0, %133, %c0_i32_84, %c0_i32_85] : memref<2x16x16x128xbf16, #tpu.memory_space<any>> -> memref<1x1x16x128xbf16, #tpu.memory_space<any>>
      %147 = tpu.memref_squeeze %146 : memref<1x1x16x128xbf16, #tpu.memory_space<any>> -> memref<1x16x128xbf16, #tpu.memory_space<any>>
      %c9_i32_86 = arith.constant 9 : i32
      %c0_i32_87 = arith.constant 0 : i32
      %c0_i32_88 = arith.constant 0 : i32
      %148 = tpu.memref_slice %arg7[%125, %c9_i32_86, %c0_i32_87, %c0_i32_88] : memref<2x10x16x128xbf16, #tpu.memory_space<vmem>> -> memref<1x1x16x128xbf16, #tpu.memory_space<vmem>>
      %149 = tpu.memref_squeeze %148 : memref<1x1x16x128xbf16, #tpu.memory_space<vmem>> -> memref<1x16x128xbf16, #tpu.memory_space<vmem>>
      %150 = tpu.memref_slice %arg8[%125, %c2_i32_83] : memref<2x3x!tpu.dma_semaphore, #tpu.memory_space<semaphore_mem>> -> memref<1x1x!tpu.dma_semaphore, #tpu.memory_space<semaphore_mem>>
      %151 = tpu.memref_squeeze %150 : memref<1x1x!tpu.dma_semaphore, #tpu.memory_space<semaphore_mem>> -> memref<!tpu.dma_semaphore, #tpu.memory_space<semaphore_mem>>
      tpu.enqueue_dma source(%147 : memref<1x16x128xbf16, #tpu.memory_space<any>>) target(%149 : memref<1x16x128xbf16, #tpu.memory_space<vmem>>) target_semaphore(%151 : memref<!tpu.dma_semaphore, #tpu.memory_space<semaphore_mem>>)
    } else {
    }
    %c0_i32_8 = arith.constant 0 : i32
    %17 = arith.cmpi eq, %arg1, %c0_i32_8 : i32
    %18 = arith.extui %17 : i1 to i32
    %c0_i32_9 = arith.constant 0 : i32
    %19 = arith.cmpi ne, %18, %c0_i32_9 : i32
    scf.if %19 {
      %cst_64 = arith.constant 0.000000e+00 : f32
      %125 = vector.broadcast %cst_64 : f32 to vector<1x3x128xf32>
      %c0_65 = arith.constant 0 : index
      %c0_66 = arith.constant 0 : index
      %c0_67 = arith.constant 0 : index
      %126 = vector.load %arg6[%c0_65, %c0_66, %c0_67] : memref<1x3x128xf32, #tpu.memory_space<vmem>>, vector<1x3x128xf32>
      tpu.vector_store %arg6[%c0_65, %c0_66, %c0_67], %125 {strides = array<i32>} : memref<1x3x128xf32, #tpu.memory_space<vmem>>, vector<1x3x128xf32>,
    } else {
    }
    %c0_i32_10 = arith.constant 0 : i32
    %c0_i32_11 = arith.constant 0 : i32
    %c0_i32_12 = arith.constant 0 : i32
    %c0_i32_13 = arith.constant 0 : i32
    %20 = tpu.memref_slice %arg2[%arg0, %c0_i32_11, %c0_i32_12, %c0_i32_13] : memref<2x16x16x128xbf16, #tpu.memory_space<any>> -> memref<1x8x16x128xbf16, #tpu.memory_space<any>>
    %21 = tpu.memref_squeeze %20 : memref<1x8x16x128xbf16, #tpu.memory_space<any>> -> memref<8x16x128xbf16, #tpu.memory_space<any>>
    %c1_i32_14 = arith.constant 1 : i32
    %c0_i32_15 = arith.constant 0 : i32
    %c0_i32_16 = arith.constant 0 : i32
    %22 = tpu.memref_slice %arg7[%9, %c1_i32_14, %c0_i32_15, %c0_i32_16] : memref<2x10x16x128xbf16, #tpu.memory_space<vmem>> -> memref<1x8x16x128xbf16, #tpu.memory_space<vmem>>
    %23 = tpu.memref_squeeze %22 : memref<1x8x16x128xbf16, #tpu.memory_space<vmem>> -> memref<8x16x128xbf16, #tpu.memory_space<vmem>>
    %24 = tpu.memref_slice %arg8[%9, %c0_i32_10] : memref<2x3x!tpu.dma_semaphore, #tpu.memory_space<semaphore_mem>> -> memref<1x1x!tpu.dma_semaphore, #tpu.memory_space<semaphore_mem>>
    %25 = tpu.memref_squeeze %24 : memref<1x1x!tpu.dma_semaphore, #tpu.memory_space<semaphore_mem>> -> memref<!tpu.dma_semaphore, #tpu.memory_space<semaphore_mem>>
    tpu.wait_dma2 semaphore(%25 : memref<!tpu.dma_semaphore, #tpu.memory_space<semaphore_mem>>) src(%21 : memref<8x16x128xbf16, #tpu.memory_space<any>>) dst(%23 : memref<8x16x128xbf16, #tpu.memory_space<vmem>>)
    %c1_i32_17 = arith.constant 1 : i32
    %c0_i32_18 = arith.constant 0 : i32
    %c0_i32_19 = arith.constant 0 : i32
    %c0_i32_20 = arith.constant 0 : i32
    %26 = tpu.memref_slice %arg2[%arg0, %c0_i32_18, %c0_i32_19, %c0_i32_20] : memref<2x16x16x128xbf16, #tpu.memory_space<any>> -> memref<1x1x16x128xbf16, #tpu.memory_space<any>>
    %27 = tpu.memref_squeeze %26 : memref<1x1x16x128xbf16, #tpu.memory_space<any>> -> memref<1x16x128xbf16, #tpu.memory_space<any>>
    %c0_i32_21 = arith.constant 0 : i32
    %c0_i32_22 = arith.constant 0 : i32
    %c0_i32_23 = arith.constant 0 : i32
    %28 = tpu.memref_slice %arg7[%9, %c0_i32_21, %c0_i32_22, %c0_i32_23] : memref<2x10x16x128xbf16, #tpu.memory_space<vmem>> -> memref<1x1x16x128xbf16, #tpu.memory_space<vmem>>
    %29 = tpu.memref_squeeze %28 : memref<1x1x16x128xbf16, #tpu.memory_space<vmem>> -> memref<1x16x128xbf16, #tpu.memory_space<vmem>>
    %30 = tpu.memref_slice %arg8[%9, %c1_i32_17] : memref<2x3x!tpu.dma_semaphore, #tpu.memory_space<semaphore_mem>> -> memref<1x1x!tpu.dma_semaphore, #tpu.memory_space<semaphore_mem>>
    %31 = tpu.memref_squeeze %30 : memref<1x1x!tpu.dma_semaphore, #tpu.memory_space<semaphore_mem>> -> memref<!tpu.dma_semaphore, #tpu.memory_space<semaphore_mem>>
    tpu.wait_dma2 semaphore(%31 : memref<!tpu.dma_semaphore, #tpu.memory_space<semaphore_mem>>) src(%27 : memref<1x16x128xbf16, #tpu.memory_space<any>>) dst(%29 : memref<1x16x128xbf16, #tpu.memory_space<vmem>>)
    %c2_i32_24 = arith.constant 2 : i32
    %c0_i32_25 = arith.constant 0 : i32
    %c0_i32_26 = arith.constant 0 : i32
    %c0_i32_27 = arith.constant 0 : i32
    %32 = tpu.memref_slice %arg2[%arg0, %c0_i32_25, %c0_i32_26, %c0_i32_27] : memref<2x16x16x128xbf16, #tpu.memory_space<any>> -> memref<1x1x16x128xbf16, #tpu.memory_space<any>>
    %33 = tpu.memref_squeeze %32 : memref<1x1x16x128xbf16, #tpu.memory_space<any>> -> memref<1x16x128xbf16, #tpu.memory_space<any>>
    %c9_i32 = arith.constant 9 : i32
    %c0_i32_28 = arith.constant 0 : i32
    %c0_i32_29 = arith.constant 0 : i32
    %34 = tpu.memref_slice %arg7[%9, %c9_i32, %c0_i32_28, %c0_i32_29] : memref<2x10x16x128xbf16, #tpu.memory_space<vmem>> -> memref<1x1x16x128xbf16, #tpu.memory_space<vmem>>
    %35 = tpu.memref_squeeze %34 : memref<1x1x16x128xbf16, #tpu.memory_space<vmem>> -> memref<1x16x128xbf16, #tpu.memory_space<vmem>>
    %36 = tpu.memref_slice %arg8[%9, %c2_i32_24] : memref<2x3x!tpu.dma_semaphore, #tpu.memory_space<semaphore_mem>> -> memref<1x1x!tpu.dma_semaphore, #tpu.memory_space<semaphore_mem>>
    %37 = tpu.memref_squeeze %36 : memref<1x1x!tpu.dma_semaphore, #tpu.memory_space<semaphore_mem>> -> memref<!tpu.dma_semaphore, #tpu.memory_space<semaphore_mem>>
    tpu.wait_dma2 semaphore(%37 : memref<!tpu.dma_semaphore, #tpu.memory_space<semaphore_mem>>) src(%33 : memref<1x16x128xbf16, #tpu.memory_space<any>>) dst(%35 : memref<1x16x128xbf16, #tpu.memory_space<vmem>>)
    %38 = arith.index_cast %9 : i32 to index
    %c0 = arith.constant 0 : index
    %c0_30 = arith.constant 0 : index
    %c0_31 = arith.constant 0 : index
    %39 = vector.load %arg7[%38, %c0, %c0_30, %c0_31] : memref<2x10x16x128xbf16, #tpu.memory_space<vmem>>, vector<1x10x16x128xbf16>
    %40 = vector.shape_cast %39 : vector<1x10x16x128xbf16> to vector<10x16x128xbf16>
    %41 = arith.extf %40 : vector<10x16x128xbf16> to vector<10x16x128xf32>
    %c0_32 = arith.constant 0 : index
    %c0_33 = arith.constant 0 : index
    %c0_34 = arith.constant 0 : index
    %42 = vector.load %arg3[%c0_32, %c0_33, %c0_34] : memref<1x3x128xf32, #tpu.memory_space<vmem>>, vector<1x3x128xf32>
    %43 = vector.shape_cast %42 : vector<1x3x128xf32> to vector<3x128xf32>
    %44 = vector.extract_strided_slice %43 {offsets = [0, 0], sizes = [1, 128], strides = [1, 1]} : vector<3x128xf32> to vector<1x128xf32>
    %cst = arith.constant 3.906250e-03 : f32
    %45 = vector.broadcast %cst : f32 to vector<1x128xf32>
    %46 = arith.mulf %44, %45 : vector<1x128xf32>
    %47 = vector.extract_strided_slice %43 {offsets = [1, 0], sizes = [1, 128], strides = [1, 1]} : vector<3x128xf32> to vector<1x128xf32>
    %48 = vector.extract_strided_slice %43 {offsets = [2, 0], sizes = [1, 128], strides = [1, 1]} : vector<3x128xf32> to vector<1x128xf32>
    %49 = arith.addf %47, %48 : vector<1x128xf32>
    %cst_35 = arith.constant 3.906250e-03 : f32
    %50 = vector.broadcast %cst_35 : f32 to vector<1x128xf32>
    %51 = arith.mulf %49, %50 : vector<1x128xf32>
    %52 = arith.mulf %46, %46 : vector<1x128xf32>
    %53 = arith.subf %51, %52 : vector<1x128xf32>
    %cst_36 = arith.constant 0.000000e+00 : f32
    %54 = vector.broadcast %cst_36 : f32 to vector<1x128xf32>
    %55 = arith.maximumf %53, %54 : vector<1x128xf32>
    %cst_37 = arith.constant 9.99999974E-6 : f32
    %56 = vector.broadcast %cst_37 : f32 to vector<1x128xf32>
    %57 = arith.addf %55, %56 : vector<1x128xf32>
    %58 = math.rsqrt %57 : vector<1x128xf32>
    %59 = vector.shape_cast %58 : vector<1x128xf32> to vector<1x1x128xf32>
    %60 = vector.broadcast %59 : vector<1x1x128xf32> to vector<10x16x128xf32>
    %61 = arith.mulf %41, %60 : vector<10x16x128xf32>
    %cst_38 = arith.constant 0.000000e+00 : f32
    %62 = vector.broadcast %cst_38 : f32 to vector<1x128xf32>
    %63 = arith.subf %62, %46 : vector<1x128xf32>
    %64 = arith.mulf %63, %58 : vector<1x128xf32>
    %65 = vector.shape_cast %64 : vector<1x128xf32> to vector<1x1x128xf32>
    %66 = vector.broadcast %65 : vector<1x1x128xf32> to vector<10x16x128xf32>
    %67 = arith.addf %61, %66 : vector<10x16x128xf32>
    %cst_39 = arith.constant 0.000000e+00 : f32
    %68 = vector.broadcast %cst_39 : f32 to vector<10x16x128xf32>
    %69 = arith.maximumf %67, %68 : vector<10x16x128xf32>
    %70 = arith.truncf %69 : vector<10x16x128xf32> to vector<10x16x128xbf16>
    %71 = vector.extract_strided_slice %70 {offsets = [0, 1, 0], sizes = [10, 1, 128], strides = [1, 1, 1]} : vector<10x16x128xbf16> to vector<10x1x128xbf16>
    %72 = vector.extract_strided_slice %70 {offsets = [0, 14, 0], sizes = [10, 1, 128], strides = [1, 1, 1]} : vector<10x16x128xbf16> to vector<10x1x128xbf16>
    %73 = tpu.concatenate %71, %70, %72 in 1 : vector<10x1x128xbf16>, vector<10x16x128xbf16>, vector<10x1x128xbf16> -> vector<10x18x128xbf16>
    %cst_40 = arith.constant 0.000000e+00 : f32
    %74 = vector.broadcast %cst_40 : f32 to vector<128x128xf32>
    %75 = vector.extract_strided_slice %73 {offsets = [0, 0, 0], sizes = [8, 16, 128], strides = [1, 1, 1]} : vector<10x18x128xbf16> to vector<8x16x128xbf16>
    %76 = vector.extract_strided_slice %73 {offsets = [1, 0, 0], sizes = [8, 16, 128], strides = [1, 1, 1]} : vector<10x18x128xbf16> to vector<8x16x128xbf16>
    %77 = vector.extract_strided_slice %73 {offsets = [2, 0, 0], sizes = [8, 16, 128], strides = [1, 1, 1]} : vector<10x18x128xbf16> to vector<8x16x128xbf16>
    %78 = tpu.concatenate %75, %76, %77 in 2 : vector<8x16x128xbf16>, vector<8x16x128xbf16>, vector<8x16x128xbf16> -> vector<8x16x384xbf16>
    %79 = vector.shape_cast %78 : vector<8x16x384xbf16> to vector<128x384xbf16>
    %c0_41 = arith.constant 0 : index
    %c0_42 = arith.constant 0 : index
    %c0_43 = arith.constant 0 : index
    %80 = vector.load %arg4[%c0_41, %c0_42, %c0_43] : memref<3x384x128xbf16, #tpu.memory_space<vmem>>, vector<1x384x128xbf16>
    %81 = vector.shape_cast %80 : vector<1x384x128xbf16> to vector<384x128xbf16>
    %cst_44 = arith.constant dense<0.000000e+00> : vector<128x128xf32>
    %82 = tpu.matmul %79, %81, %cst_44 {dimension_numbers = #tpu.dot_dimension_numbers<[1], [0], [0], [1], [0, 0, 1, 1], [], []>} : vector<128x384xbf16>, vector<384x128xbf16>, vector<128x128xf32> -> vector<128x128xf32>
    %83 = arith.addf %74, %82 : vector<128x128xf32>
    %84 = vector.extract_strided_slice %73 {offsets = [0, 1, 0], sizes = [8, 16, 128], strides = [1, 1, 1]} : vector<10x18x128xbf16> to vector<8x16x128xbf16>
    %85 = vector.extract_strided_slice %73 {offsets = [1, 1, 0], sizes = [8, 16, 128], strides = [1, 1, 1]} : vector<10x18x128xbf16> to vector<8x16x128xbf16>
    %86 = vector.extract_strided_slice %73 {offsets = [2, 1, 0], sizes = [8, 16, 128], strides = [1, 1, 1]} : vector<10x18x128xbf16> to vector<8x16x128xbf16>
    %87 = tpu.concatenate %84, %85, %86 in 2 : vector<8x16x128xbf16>, vector<8x16x128xbf16>, vector<8x16x128xbf16> -> vector<8x16x384xbf16>
    %88 = vector.shape_cast %87 : vector<8x16x384xbf16> to vector<128x384xbf16>
    %c1 = arith.constant 1 : index
    %c0_45 = arith.constant 0 : index
    %c0_46 = arith.constant 0 : index
    %89 = vector.load %arg4[%c1, %c0_45, %c0_46] : memref<3x384x128xbf16, #tpu.memory_space<vmem>>, vector<1x384x128xbf16>
    %90 = vector.shape_cast %89 : vector<1x384x128xbf16> to vector<384x128xbf16>
    %cst_47 = arith.constant dense<0.000000e+00> : vector<128x128xf32>
    %91 = tpu.matmul %88, %90, %cst_47 {dimension_numbers = #tpu.dot_dimension_numbers<[1], [0], [0], [1], [0, 0, 1, 1], [], []>} : vector<128x384xbf16>, vector<384x128xbf16>, vector<128x128xf32> -> vector<128x128xf32>
    %92 = arith.addf %83, %91 : vector<128x128xf32>
    %93 = vector.extract_strided_slice %73 {offsets = [0, 2, 0], sizes = [8, 16, 128], strides = [1, 1, 1]} : vector<10x18x128xbf16> to vector<8x16x128xbf16>
    %94 = vector.extract_strided_slice %73 {offsets = [1, 2, 0], sizes = [8, 16, 128], strides = [1, 1, 1]} : vector<10x18x128xbf16> to vector<8x16x128xbf16>
    %95 = vector.extract_strided_slice %73 {offsets = [2, 2, 0], sizes = [8, 16, 128], strides = [1, 1, 1]} : vector<10x18x128xbf16> to vector<8x16x128xbf16>
    %96 = tpu.concatenate %93, %94, %95 in 2 : vector<8x16x128xbf16>, vector<8x16x128xbf16>, vector<8x16x128xbf16> -> vector<8x16x384xbf16>
    %97 = vector.shape_cast %96 : vector<8x16x384xbf16> to vector<128x384xbf16>
    %c2 = arith.constant 2 : index
    %c0_48 = arith.constant 0 : index
    %c0_49 = arith.constant 0 : index
    %98 = vector.load %arg4[%c2, %c0_48, %c0_49] : memref<3x384x128xbf16, #tpu.memory_space<vmem>>, vector<1x384x128xbf16>
    %99 = vector.shape_cast %98 : vector<1x384x128xbf16> to vector<384x128xbf16>
    %cst_50 = arith.constant dense<0.000000e+00> : vector<128x128xf32>
    %100 = tpu.matmul %97, %99, %cst_50 {dimension_numbers = #tpu.dot_dimension_numbers<[1], [0], [0], [1], [0, 0, 1, 1], [], []>} : vector<128x384xbf16>, vector<384x128xbf16>, vector<128x128xf32> -> vector<128x128xf32>
    %101 = arith.addf %92, %100 : vector<128x128xf32>
    %102 = arith.truncf %101 : vector<128x128xf32> to vector<128x128xbf16>
    %c0_51 = arith.constant 0 : index
    %c0_52 = arith.constant 0 : index
    %c0_53 = arith.constant 0 : index
    %103 = vector.load %arg5[%c0_51, %c0_52, %c0_53] : memref<1x128x128xbf16, #tpu.memory_space<vmem>>, vector<1x128x128xbf16>
    %104 = vector.shape_cast %103 : vector<1x128x128xbf16> to vector<128x128xbf16>
    %105 = vector.shape_cast %102 : vector<128x128xbf16> to vector<1x128x128xbf16>
    tpu.vector_store %arg5[%c0_51, %c0_52, %c0_53], %105 {strides = array<i32>} : memref<1x128x128xbf16, #tpu.memory_space<vmem>>, vector<1x128x128xbf16>,
    %cst_54 = arith.constant dense<0.000000e+00> : vector<128xf32>
    %106 = vector.multi_reduction <add>, %101, %cst_54 [0] : vector<128x128xf32> to vector<128xf32>
    %107 = vector.shape_cast %106 : vector<128xf32> to vector<1x128xf32>
    %cst_55 = arith.constant 7.812500e-03 : f32
    %108 = vector.broadcast %cst_55 : f32 to vector<1x128xf32>
    %109 = arith.mulf %107, %108 : vector<1x128xf32>
    %110 = vector.broadcast %109 : vector<1x128xf32> to vector<128x128xf32>
    %111 = arith.subf %101, %110 : vector<128x128xf32>
    %112 = arith.mulf %111, %111 : vector<128x128xf32>
    %cst_56 = arith.constant dense<0.000000e+00> : vector<128xf32>
    %113 = vector.multi_reduction <add>, %112, %cst_56 [0] : vector<128x128xf32> to vector<128xf32>
    %114 = vector.shape_cast %113 : vector<128xf32> to vector<1x128xf32>
    %cst_57 = arith.constant 1.280000e+02 : f32
    %115 = vector.broadcast %cst_57 : f32 to vector<1x128xf32>
    %116 = arith.mulf %115, %109 : vector<1x128xf32>
    %117 = arith.mulf %116, %109 : vector<1x128xf32>
    %c0_58 = arith.constant 0 : index
    %c0_59 = arith.constant 0 : index
    %c0_60 = arith.constant 0 : index
    %118 = vector.load %arg6[%c0_58, %c0_59, %c0_60] : memref<1x3x128xf32, #tpu.memory_space<vmem>>, vector<1x3x128xf32>
    %119 = vector.shape_cast %118 : vector<1x3x128xf32> to vector<3x128xf32>
    %120 = tpu.concatenate %107, %114, %117 in 0 : vector<1x128xf32>, vector<1x128xf32>, vector<1x128xf32> -> vector<3x128xf32>
    %121 = arith.addf %119, %120 : vector<3x128xf32>
    %c0_61 = arith.constant 0 : index
    %c0_62 = arith.constant 0 : index
    %c0_63 = arith.constant 0 : index
    %122 = vector.load %arg6[%c0_61, %c0_62, %c0_63] : memref<1x3x128xf32, #tpu.memory_space<vmem>>, vector<1x3x128xf32>
    %123 = vector.shape_cast %122 : vector<1x3x128xf32> to vector<3x128xf32>
    %124 = vector.shape_cast %121 : vector<3x128xf32> to vector<1x3x128xf32>
    tpu.vector_store %arg6[%c0_61, %c0_62, %c0_63], %124 {strides = array<i32>} : memref<1x3x128xf32, #tpu.memory_space<vmem>>, vector<1x3x128xf32>,
    return
  }
  func.func @transform_1(%arg0: i32, %arg1: i32) -> (i32, i32, i32) {
    %c0_i32 = arith.constant 0 : i32
    %c0_i32_0 = arith.constant 0 : i32
    %c0_i32_1 = arith.constant 0 : i32
    return %arg0, %c0_i32, %c0_i32_0 : i32, i32, i32
  }
  func.func @transform_2(%arg0: i32, %arg1: i32) -> (i32, i32, i32) {
    %c0_i32 = arith.constant 0 : i32
    %c0_i32_0 = arith.constant 0 : i32
    %c0_i32_1 = arith.constant 0 : i32
    %c0_i32_2 = arith.constant 0 : i32
    return %c0_i32, %c0_i32_0, %c0_i32_1 : i32, i32, i32
  }
  func.func @transform_3(%arg0: i32, %arg1: i32) -> (i32, i32, i32) {
    %c0_i32 = arith.constant 0 : i32
    %c0_i32_0 = arith.constant 0 : i32
    return %arg0, %arg1, %c0_i32 : i32, i32, i32
  }
  func.func @transform_4(%arg0: i32, %arg1: i32) -> (i32, i32, i32) {
    %c0_i32 = arith.constant 0 : i32
    %c0_i32_0 = arith.constant 0 : i32
    %c0_i32_1 = arith.constant 0 : i32
    return %arg0, %c0_i32, %c0_i32_0 : i32, i32, i32
  }
}

</mosaic_0001>

<bundles_post_ra>
// kernel: resnet_block_forward.5
= control target key start
LH: loop header
LB: loop body
LE: loop exit
PB: predicated region body
PF: predicated region fallthrough
CT: control target
= control target key end

     0   :  { %s801_s12 = smov 0   ;;  %s803_s13 = smov 0   ;;  %s1039_s0 = inlined_call_operand.vmem [shape: bf16[2,256,128], index: 0, kind: input, shape index: {}]   ;;  %s1040_s1 = inlined_call_operand.vmem [shape: f32[2,3,128], index: 1, kind: input, shape index: {}]   ;;  %s1041_s2 = inlined_call_operand.vmem [shape: f32[2,256,128], index: 2, kind: input, shape index: {}]   ;;  %s1042_s3 = inlined_call_operand.vmem [shape: f32[2,256,128], index: 3, kind: output, shape index: {}]  }
   0x1   :  { %s805_s14 = smov 0  }
   0x2 LB: > { %s25_s15 = sadd.s32 1, %s775_s13  ;;  %p639_p0 = scmp.ge.s32.totalorder %s779_s14, 1  ;;  %s779_s14 = sphi %s805_s14, %s13_s14   ;;  %s775_s13 = sphi %s803_s13, %s1046_s13   ;;  %s771_s12 = sphi %s801_s12, %s1045_s12  }
   0x3   : > { %p27_p1 = scmp.ge.s32.totalorder %s25_s15, 2  ;;  %p184_p2 = scmp.lt.s32.totalorder %s779_s14, 3 }
   0x5   : > { %s1048_s15 = smov (%p27_p1, %s25_s15), 0  ;;  %p185_p3 = pnand %p639_p0, %p184_p2 }
   0x6   : > { %p230_p4 = scmp.lt.s32.totalorder (!%p185_p3), %s771_s12, 1 }
   0x7   : > { %188 = sbr.rel (%p185_p3) target bundleno = 86 (0x56), region = 32 }
   0xc   : > { %s1050_s12 = smov (!%p230_p4, %s771_s12), 1 }
   0xd   : > { %s642_s16 = sshll.u32 %s1050_s12, 2  ;;  %s649_s20 = sshll.u32 %s1050_s12, 7 }
   0xe   : > { %s242_s19 = scalar_lea.vmem %s1040_s1, %s642_s16  ;;  %s829_s23 = scalar_lea.vmem %s1039_s0, %s649_s20 }
   0xf   : > { %v263_v0 = vld [vmem:[%s242_s19] sm:$0x7]  ;;  %v716_v15 = vld [vmem:[%s829_s23 + $0x8] sm:$0xff]   ;;  %s650_s24 = sshll.u32 %s1050_s12, 8  ;;  %v717_v16 = vld [vmem:[%s829_s23 + $0x10] sm:$0xff]  }
  0x10   : > { %v264_v1 = vmul.f32 0.00390625, %v263_v0  ;;  %v266_v2 = vrot.slane %v263_v0, 1  ;;  %v653_v14 = vld [vmem:[%s829_s23] sm:$0xff]   ;;  %v718_v18 = vld [vmem:[%s829_s23 + $0x18] sm:$0xff]   ;;  %v658_v23 = vunpack.c.l.bf16 %v716_v15  ;;  %v844_v24 = vld [vmem:[%s829_s23 + $0x28] sm:$0xff]   ;;  %s851_s27 = scalar_lea.vmem %s1041_s2, %s650_s24  ;;  %v659_v27 = vunpack.c.h.bf16 %v716_v15  ;;  %s900_s30 = scalar_lea.vmem %s1042_s3, %s650_s24 }
  0x11   : > { %v837_v19 = vld [vmem:[%s829_s23 + $0x20] sm:$0xff]   ;;  %v654_v21 = vunpack.c.l.bf16 %v653_v14  ;;  %v655_v22 = vunpack.c.h.bf16 %v653_v14  ;;  %v662_v28 = vunpack.c.l.bf16 %v717_v16  ;;  %v854_v29 = vld [vmem:[%s829_s23 + $0x30] sm:$0xff]   ;;  %v663_v30 = vunpack.c.h.bf16 %v717_v16  ;;  %v858_v34 = vld [vmem:[%s829_s23 + $0x38] sm:$0xff]  }
  0x12   : > { %v268_v3 = vadd.f32 %v266_v2, %v263_v0  ;;  %v270_v4 = vmul.f32 %v264_v1, %v264_v1  ;;  %v448_v26 = vsub.f32 0.0, %v264_v1  ;;  %v666_v31 = vunpack.c.l.bf16 %v718_v18  ;;  %v861_v35 = vld [vmem:[%s829_s23 + $0x40] sm:$0xff]   ;;  %v288_v45 = vld [vmem:[%s851_s27 + $0x8] sm:$0xff]  ;;  %v289_v46 = vld [vmem:[%s851_s27 + $0x10] sm:$0xff] }
  0x13   : > { %v667_v32 = vunpack.c.h.bf16 %v718_v18  ;;  %v670_v33 = vunpack.c.l.bf16 %v837_v19  ;;  %v671_v37 = vunpack.c.h.bf16 %v837_v19  ;;  %v674_v38 = vunpack.c.l.bf16 %v844_v24  ;;  %v287_v40 = vld [vmem:[%s851_s27] sm:$0xff]  ;;  %v290_v47 = vld [vmem:[%s851_s27 + $0x18] sm:$0xff]  ;;  %v292_v57 = vld [vmem:[%s851_s27 + $0x28] sm:$0xff] }
  0x14   : > { %v269_v5 = vmul.f32 0.00390625, %v268_v3  ;;  %v272_v6 = vrot.slane %v270_v4, 7  ;;  %v675_v39 = vunpack.c.h.bf16 %v844_v24  ;;  %v678_v43 = vunpack.c.l.bf16 %v854_v29  ;;  %v291_v56 = vld [vmem:[%s851_s27 + $0x20] sm:$0xff]  ;;  %v293_v58 = vld [vmem:[%s851_s27 + $0x30] sm:$0xff]  ;;  %v893_v3 = vld [vmem:[%s829_s23 + $0x48] sm:$0xff]  }
  0x15   : > { %v679_v44 = vunpack.c.h.bf16 %v854_v29  ;;  %v682_v48 = vunpack.c.l.bf16 %v858_v34  ;;  %v683_v49 = vunpack.c.h.bf16 %v858_v34  ;;  %v686_v50 = vunpack.c.l.bf16 %v861_v35  ;;  %v295_v16 = vld [vmem:[%s851_s27 + $0x40] sm:$0xff]  ;;  %v297_v18 = vld [vmem:[%s851_s27 + $0x50] sm:$0xff]  ;;  %v298_v24 = vld [vmem:[%s851_s27 + $0x58] sm:$0xff] }
  0x16   : > { %v274_v7 = vsub.f32 %v269_v5, %v272_v6  ;;  %v687_v51 = vunpack.c.h.bf16 %v861_v35  ;;  %v690_v19 = vunpack.c.l.bf16 %v893_v3 }
  0x18   : > { %v275_v8 = vmax.f32 %v274_v7, 0.0 }
  0x1a   : > { %v276_v9 = vadd.f32 1e-05, %v275_v8  ;;  %v294_v8 = vld [vmem:[%s851_s27 + $0x38] sm:$0xff] }
  0x1c   : > { %755 = vrsqrt.f32 %v276_v9  ;;  %vm283_vm0 = vweird.f32 %v276_v9 }
  0x22   : > { %v756_v10 = vpop.eup %755 }
  0x23   : > { %v278_v11 = vmul.f32 %v756_v10, %v276_v9  ;;  %vm284_vm1 = vweird.f32 %v756_v10 }
  0x24   : > { %vm839_vm2 = vmor %vm283_vm0, %vm284_vm1 }
  0x25   : > { %v279_v12 = vmul.f32 %v756_v10, %v278_v11 }
  0x27   : > { %v280_v13 = vmul.f32 0.5, %v279_v12 }
  0x29   : > { %v281_v17 = vsub.f32 1.5, %v280_v13 }
  0x2b   : > { %v282_v25 = vmul.f32 %v756_v10, %v281_v17  ;;  %v296_v17 = vld [vmem:[%s851_s27 + $0x48] sm:$0xff] }
  0x2d   : > { %v286_v36 = vsel %vm839_vm2, %v756_v10, %v282_v25  ;;  %v725_v25 = vld [vmem:[%s829_s23 + $0x50] sm:$0xff]  }
  0x2e   : > { %v869_v41 = vperm.slane %v286_v36, 1  ;;  %v450_v42 = vrot.slane %v286_v36, 1 }
  0x30   : > { %v384_v52 = vmul.f32 %v654_v21, %v869_v41  ;;  %v452_v53 = vmul.f32 %v450_v42, %v448_v26  ;;  %v385_v54 = vmul.f32 %v655_v22, %v869_v41  ;;  %v386_v55 = vmul.f32 %v658_v23, %v869_v41 }
  0x31   : > { %v387_v59 = vmul.f32 %v659_v27, %v869_v41  ;;  %v388_v60 = vmul.f32 %v662_v28, %v869_v41  ;;  %v389_v61 = vmul.f32 %v663_v30, %v869_v41  ;;  %v390_v62 = vmul.f32 %v666_v31, %v869_v41  ;;  %v299_v27 = vld [vmem:[%s851_s27 + $0x60] sm:$0xff] }
  0x32   : > { %v416_v63 = vadd.f32 %v384_v52, %v287_v40  ;;  %v890_v0 = vperm.slane %v452_v53, 0  ;;  %v417_v1 = vadd.f32 %v385_v54, %v288_v45  ;;  %v418_v2 = vadd.f32 %v386_v55, %v289_v46  ;;  %v726_v40 = vld [vmem:[%s829_s23 + $0x58] sm:$0xff]  }
  0x33   : > { %v419_v4 = vadd.f32 %v387_v59, %v290_v47  ;;  %v420_v5 = vadd.f32 %v388_v60, %v291_v56  ;;  %v421_v6 = vadd.f32 %v389_v61, %v292_v57  ;;  %v422_v7 = vadd.f32 %v390_v62, %v293_v58  ;;  %v302_v47 = vld [vmem:[%s851_s27 + $0x78] sm:$0xff]  ;;  %v303_v56 = vld [vmem:[%s851_s27 + $0x80] sm:$0xff] }
  0x34   : > { %v454_v9 = vadd.f32 %v890_v0, %v416_v63  ;;  %v455_v10 = vadd.f32 %v890_v0, %v417_v1  ;;  %v456_v11 = vadd.f32 %v890_v0, %v418_v2  ;;  %v391_v12 = vmul.f32 %v667_v32, %v869_v41  ;;  %v727_v58 = vld [vmem:[%s829_s23 + $0x60] sm:$0xff]   ;;  %v305_v1 = vld [vmem:[%s851_s27 + $0x90] sm:$0xff] }
  0x35   : > { %v457_v13 = vadd.f32 %v890_v0, %v419_v4  ;;  %v458_v14 = vadd.f32 %v890_v0, %v420_v5  ;;  %v459_v15 = vadd.f32 %v890_v0, %v421_v6  ;;  %v392_v21 = vmul.f32 %v670_v33, %v869_v41 }
  0x36   : > { %486 = vst [vmem:[%s900_s30] sm:$0xff] %v454_v9  ;;  %v423_v20 = vadd.f32 %v391_v12, %v294_v8  ;;  %v393_v22 = vmul.f32 %v671_v37, %v869_v41  ;;  %v394_v23 = vmul.f32 %v674_v38, %v869_v41  ;;  %v395_v26 = vmul.f32 %v675_v39, %v869_v41  ;;  %v300_v37 = vld [vmem:[%s851_s27 + $0x68] sm:$0xff]  ;;  %v301_v38 = vld [vmem:[%s851_s27 + $0x70] sm:$0xff]  ;;  %v307_v9 = vld [vmem:[%s851_s27 + $0xa0] sm:$0xff] }
  0x37   : > { %487 = vst [vmem:[%s900_s30 + $0x8] sm:$0xff] %v455_v10  ;;  %v396_v28 = vmul.f32 %v678_v43, %v869_v41  ;;  %v397_v29 = vmul.f32 %v679_v44, %v869_v41  ;;  %v398_v30 = vmul.f32 %v682_v48, %v869_v41  ;;  %v460_v31 = vadd.f32 %v890_v0, %v422_v7  ;;  %v729_v12 = vld [vmem:[%s829_s23 + $0x70] sm:$0xff]  }
  0x38   : > { %488 = vst [vmem:[%s900_s30 + $0x10] sm:$0xff] %v456_v11  ;;  %v424_v32 = vadd.f32 %v392_v21, %v295_v16  ;;  %v425_v33 = vadd.f32 %v393_v22, %v296_v17  ;;  %v426_v36 = vadd.f32 %v394_v23, %v297_v18  ;;  %v461_v39 = vadd.f32 %v890_v0, %v423_v20  ;;  %v309_v20 = vld [vmem:[%s851_s27 + $0xb0] sm:$0xff]  ;;  %v730_v23 = vld [vmem:[%s829_s23 + $0x78] sm:$0xff]  }
  0x39   : > { %489 = vst [vmem:[%s900_s30 + $0x18] sm:$0xff] %v457_v13  ;;  %v427_v42 = vadd.f32 %v395_v26, %v298_v24  ;;  %v691_v43 = vunpack.c.h.bf16 %v893_v3  ;;  %v694_v44 = vunpack.c.l.bf16 %v725_v25  ;;  %v428_v46 = vadd.f32 %v396_v28, %v299_v27  ;;  %v310_v26 = vld [vmem:[%s851_s27 + $0xb8] sm:$0xff] }
  0x3a   : > { %490 = vst [vmem:[%s900_s30 + $0x20] sm:$0xff] %v458_v14  ;;  %v462_v45 = vadd.f32 %v890_v0, %v424_v32  ;;  %v399_v48 = vmul.f32 %v683_v49, %v869_v41  ;;  %v695_v52 = vunpack.c.h.bf16 %v725_v25  ;;  %v463_v53 = vadd.f32 %v890_v0, %v425_v33  ;;  %v304_v49 = vld [vmem:[%s851_s27 + $0x88] sm:$0xff] }
  0x3b   : > { %491 = vst [vmem:[%s900_s30 + $0x28] sm:$0xff] %v459_v15  ;;  %v429_v54 = vadd.f32 %v397_v29, %v300_v37  ;;  %v430_v55 = vadd.f32 %v398_v30, %v301_v38  ;;  %v698_v57 = vunpack.c.l.bf16 %v726_v40  ;;  %v464_v59 = vadd.f32 %v890_v0, %v426_v36  ;;  %v308_v15 = vld [vmem:[%s851_s27 + $0xa8] sm:$0xff] }
  0x3c   : > { %492 = vst [vmem:[%s900_s30 + $0x30] sm:$0xff] %v460_v31  ;;  %v400_v34 = vmul.f32 %v686_v50, %v869_v41  ;;  %v401_v60 = vmul.f32 %v687_v51, %v869_v41  ;;  %v402_v61 = vmul.f32 %v690_v19, %v869_v41  ;;  %v465_v62 = vadd.f32 %v890_v0, %v427_v42  ;;  %v728_v50 = vld [vmem:[%s829_s23 + $0x68] sm:$0xff]   ;;  %v306_v51 = vld [vmem:[%s851_s27 + $0x98] sm:$0xff]  ;;  %v311_v31 = vld [vmem:[%s851_s27 + $0xc0] sm:$0xff] }
  0x3d   : > { %493 = vst [vmem:[%s900_s30 + $0x38] sm:$0xff] %v461_v39  ;;  %v431_v63 = vadd.f32 %v399_v48, %v302_v47  ;;  %v403_v2 = vmul.f32 %v691_v43, %v869_v41  ;;  %v699_v3 = vunpack.c.h.bf16 %v726_v40  ;;  %v466_v35 = vadd.f32 %v890_v0, %v428_v46  ;;  %v312_v38 = vld [vmem:[%s851_s27 + $0xc8] sm:$0xff] }
  0x3e   : > { %494 = vst [vmem:[%s900_s30 + $0x40] sm:$0xff] %v462_v45  ;;  %v432_v4 = vadd.f32 %v400_v34, %v303_v56  ;;  %v404_v5 = vmul.f32 %v694_v44, %v869_v41  ;;  %v702_v6 = vunpack.c.l.bf16 %v727_v58  ;;  %v467_v7 = vadd.f32 %v890_v0, %v429_v54  ;;  %v313_v44 = vld [vmem:[%s851_s27 + $0xd0] sm:$0xff]  ;;  %v315_v56 = vld [vmem:[%s851_s27 + $0xe0] sm:$0xff]  ;;  %v316_v34 = vld [vmem:[%s851_s27 + $0xe8] sm:$0xff] }
  0x3f   : > { %495 = vst [vmem:[%s900_s30 + $0x48] sm:$0xff] %v463_v53  ;;  %v433_v8 = vadd.f32 %v401_v60, %v304_v49  ;;  %v405_v10 = vmul.f32 %v695_v52, %v869_v41  ;;  %v703_v11 = vunpack.c.h.bf16 %v727_v58  ;;  %v468_v13 = vadd.f32 %v890_v0, %v430_v55  ;;  %v314_v52 = vld [vmem:[%s851_s27 + $0xd8] sm:$0xff] }
  0x40   : > { %496 = vst [vmem:[%s900_s30 + $0x50] sm:$0xff] %v464_v59  ;;  %v434_v14 = vadd.f32 %v402_v61, %v305_v1  ;;  %v406_v16 = vmul.f32 %v698_v57, %v869_v41  ;;  %v706_v17 = vunpack.c.l.bf16 %v728_v50  ;;  %v469_v18 = vadd.f32 %v890_v0, %v431_v63 }
  0x41   : > { %497 = vst [vmem:[%s900_s30 + $0x58] sm:$0xff] %v465_v62  ;;  %v435_v19 = vadd.f32 %v403_v2, %v306_v51  ;;  %v407_v21 = vmul.f32 %v699_v3, %v869_v41  ;;  %v707_v22 = vunpack.c.h.bf16 %v728_v50  ;;  %v470_v24 = vadd.f32 %v890_v0, %v432_v4  ;;  %v317_v62 = vld [vmem:[%s851_s27 + $0xf0] sm:$0xff]  ;;  %v318_v3 = vld [vmem:[%s851_s27 + $0xf8] sm:$0xff] }
  0x42   : > { %498 = vst [vmem:[%s900_s30 + $0x60] sm:$0xff] %v466_v35  ;;  %v436_v25 = vadd.f32 %v404_v5, %v307_v9  ;;  %v408_v27 = vmul.f32 %v702_v6, %v869_v41  ;;  %v710_v28 = vunpack.c.l.bf16 %v729_v12  ;;  %v471_v29 = vadd.f32 %v890_v0, %v433_v8 }
  0x43   : > { %499 = vst [vmem:[%s900_s30 + $0x68] sm:$0xff] %v467_v7  ;;  %v437_v30 = vadd.f32 %v405_v10, %v308_v15  ;;  %v409_v32 = vmul.f32 %v703_v11, %v869_v41  ;;  %v711_v33 = vunpack.c.h.bf16 %v729_v12  ;;  %v472_v36 = vadd.f32 %v890_v0, %v434_v14 }
  0x44   : > { %500 = vst [vmem:[%s900_s30 + $0x70] sm:$0xff] %v468_v13  ;;  %v438_v37 = vadd.f32 %v406_v16, %v309_v20  ;;  %v410_v40 = vmul.f32 %v706_v17, %v869_v41  ;;  %v714_v39 = vunpack.c.l.bf16 %v730_v23  ;;  %v473_v42 = vadd.f32 %v890_v0, %v435_v19 }
  0x45   : > { %501 = vst [vmem:[%s900_s30 + $0x78] sm:$0xff] %v469_v18  ;;  %v439_v43 = vadd.f32 %v407_v21, %v310_v26  ;;  %v411_v45 = vmul.f32 %v707_v22, %v869_v41  ;;  %v715_v46 = vunpack.c.h.bf16 %v730_v23  ;;  %v474_v47 = vadd.f32 %v890_v0, %v436_v25 }
  0x46   : > { %502 = vst [vmem:[%s900_s30 + $0x80] sm:$0xff] %v470_v24  ;;  %v440_v48 = vadd.f32 %v408_v27, %v311_v31  ;;  %v412_v53 = vmul.f32 %v710_v28, %v869_v41  ;;  %v475_v54 = vadd.f32 %v890_v0, %v437_v30  ;;  %v441_v55 = vadd.f32 %v409_v32, %v312_v38 }
  0x47   : > { %503 = vst [vmem:[%s900_s30 + $0x88] sm:$0xff] %v471_v29  ;;  %v413_v57 = vmul.f32 %v711_v33, %v869_v41  ;;  %v476_v58 = vadd.f32 %v890_v0, %v438_v37  ;;  %v442_v59 = vadd.f32 %v410_v40, %v313_v44  ;;  %v414_v49 = vmul.f32 %v714_v39, %v869_v41 }
  0x48   : > { %504 = vst [vmem:[%s900_s30 + $0x90] sm:$0xff] %v472_v36  ;;  %v477_v60 = vadd.f32 %v890_v0, %v439_v43  ;;  %v443_v61 = vadd.f32 %v411_v45, %v314_v52  ;;  %v415_v63 = vmul.f32 %v715_v46, %v869_v41  ;;  %v478_v1 = vadd.f32 %v890_v0, %v440_v48 }
  0x49   : > { %505 = vst [vmem:[%s900_s30 + $0x98] sm:$0xff] %v473_v42  ;;  %v444_v2 = vadd.f32 %v412_v53, %v315_v56  ;;  %v479_v50 = vadd.f32 %v890_v0, %v441_v55  ;;  %v445_v35 = vadd.f32 %v413_v57, %v316_v34  ;;  %v480_v4 = vadd.f32 %v890_v0, %v442_v59 }
  0x4a   : > { %506 = vst [vmem:[%s900_s30 + $0xa0] sm:$0xff] %v474_v47  ;;  %v446_v41 = vadd.f32 %v414_v49, %v317_v62  ;;  %v481_v51 = vadd.f32 %v890_v0, %v443_v61  ;;  %v447_v5 = vadd.f32 %v415_v63, %v318_v3 }
  0x4b   : > { %507 = vst [vmem:[%s900_s30 + $0xa8] sm:$0xff] %v475_v54  ;;  %v482_v6 = vadd.f32 %v890_v0, %v444_v2  ;;  %v483_v7 = vadd.f32 %v890_v0, %v445_v35 }
  0x4c   : > { %508 = vst [vmem:[%s900_s30 + $0xb0] sm:$0xff] %v476_v58  ;;  %v484_v8 = vadd.f32 %v890_v0, %v446_v41  ;;  %v485_v9 = vadd.f32 %v890_v0, %v447_v5 }
  0x4d   : > { %509 = vst [vmem:[%s900_s30 + $0xb8] sm:$0xff] %v477_v60 }
  0x4e   : > { %510 = vst [vmem:[%s900_s30 + $0xc0] sm:$0xff] %v478_v1 }
  0x4f   : > { %511 = vst [vmem:[%s900_s30 + $0xc8] sm:$0xff] %v479_v50 }
  0x50   : > { %512 = vst [vmem:[%s900_s30 + $0xd0] sm:$0xff] %v480_v4 }
  0x51   : > { %513 = vst [vmem:[%s900_s30 + $0xd8] sm:$0xff] %v481_v51 }
  0x52   : > { %514 = vst [vmem:[%s900_s30 + $0xe0] sm:$0xff] %v482_v6 }
  0x53   : > { %515 = vst [vmem:[%s900_s30 + $0xe8] sm:$0xff] %v483_v7 }
  0x54   : > { %516 = vst [vmem:[%s900_s30 + $0xf0] sm:$0xff] %v484_v8 }
  0x55   : > { %517 = vst [vmem:[%s900_s30 + $0xf8] sm:$0xff] %v485_v9 }
  0x56 PF: > { %s13_s14 = sadd.s32 1, %s779_s14   ;;  %s1045_s12 = smov %s775_s13 }
  0x57   : > { %p10_p5 = scmp.ge.s32.totalorder %s13_s14, 4   ;;  %s1046_s13 = smov %s1048_s15 }
  0x59   :  { %12 = sbr.rel (!%p10_p5) target bundleno = 2 (0x2), region = 68 }

// kernel: resnet_block_forward.3
= control target key start
LH: loop header
LB: loop body
LE: loop exit
PB: predicated region body
PF: predicated region fallthrough
CT: control target
= control target key end

     0   :  { %s3049_s12 = smov 0   ;;  %s3051_s13 = smov 0   ;;  %s3854_s0 = inlined_call_operand.vmem [shape: f32[2,16,16,128], index: 0, kind: input, shape index: {}]   ;;  %s3855_s1 = inlined_call_operand.vmem [shape: bf16[3,384,128], index: 1, kind: input, shape index: {}]   ;;  %s3856_s2 = inlined_call_operand.vmem [shape: bf16[2,256,128], index: 2, kind: output, shape index: {0}]   ;;  %s3857_s3 = inlined_call_operand.vmem [shape: f32[2,3,128], index: 3, kind: output, shape index: {1}]  }
   0x1   :  { %s3053_s14 = smov 0   ;;  %s3055_s15 = smov 0  }
   0x2   :  { %s3057_s16 = smov 0  }
   0x3 LB: > { %s23_s17 = sadd.s32 1, %s3018_s14  ;;  %s26_s18 = sadd.s32 1, %s3022_s15  ;;  %s3026_s16 = sphi %s3057_s16, %s14_s16   ;;  %s3022_s15 = sphi %s3055_s15, %s3863_s15   ;;  %s3018_s14 = sphi %s3053_s14, %s3862_s14   ;;  %s3014_s13 = sphi %s3051_s13, %s3861_s13   ;;  %s3010_s12 = sphi %s3049_s12, %s3860_s12  }
   0x4   : > { %p24_p0 = scmp.ge.s32.totalorder %s23_s17, 2  ;;  %p2326_p1 = scmp.ge.s32.totalorder %s3026_s16, 1 }
   0x5   : > { %p120_p2 = scmp.lt.s32.totalorder %s3026_s16, 5 }
   0x6   : > { %s3865_s17 = smov (%p24_p0, %s23_s17), 0  ;;  %s3867_s18 = smov (!%p24_p0, %s26_s18), %s3022_s15 }
   0x7   : > { %p121_p3 = pnand %p2326_p1, %p120_p2  ;;  %p28_p4 = scmp.ge.s32.totalorder %s3867_s18, 2 }
   0x8   : > { %s2327_s19 = sshll.u32 (!%p121_p3), %s3010_s12, 4  ;;  %p146_p5 = scmp.lt.s32.totalorder (!%p121_p3), %s3014_s13, 1 }
   0x9   : > { %s3869_s18 = smov (%p28_p4, %s3867_s18), 0  ;;  %124 = sbr.rel (%p121_p3) target bundleno = 639 (0x27f), region = 24 }
   0xa   : > { %p148_p6 = scmp.lt.s32.totalorder (!%p121_p3), %s2327_s19, 31  ;;  %p159_p7 = scmp.lt.s32.totalorder (!%p121_p3), %s3010_s12, 0 }
   0xb   : > { %s160_s28 = ssub.s32 (!%p121_p3), 0, %s3010_s12  ;;  %p2334_p9 = scmp.ne.s32.totalorder (!%p121_p3), %s3010_s12, 0 }
   0xc   : > { %s2331_s5 = smin.u32 (!%p121_p3), %s3010_s12, %s160_s28 }
   0xd   : > { %s162_s6 = sand.u32 (!%p121_p3), 1, %s2331_s5  }
   0xe   : > { %s147_s20 = scalar_select %p146_p5, %s3014_s13, 1 }
   0xf   : > { %s3871_s19 = smov (!%p148_p6, %s2327_s19), 31  ;;  %s163_s7 = ssub.s32 0, %s162_s6 }
  0x10   : > { %s2328_s21 = sshll.u32 %s147_s20, 5  ;;  %s2330_s22 = sshll.u32 %s147_s20, 2 }
  0x11   : > { %s151_s23 = sadd.s32 %s2328_s21, %s3871_s19  ;;  %s3090_s26 = scalar_lea.vmem %s3857_s3, %s2330_s22 }
  0x12   : > { %s2329_s27 = sshll.u32 %s151_s23, 2  ;;  %s3873_s7 = smov (!%p159_p7, %s163_s7), %s162_s6 }
  0x13   : > { %s3096_s4 = scalar_lea.vmem %s3856_s2, %s2329_s27  ;;  %p2333_p8 = scmp.lt.s32.totalorder %s3873_s7, 0 }
  0x14   : > { %s169_s8 = sadd.s32 2, %s3873_s7  ;;  %174 = sbr.rel (%p2334_p9) target bundleno = 55 (0x37), region = 28 }
  0x15   : > { %s3875_s8 = smov (!%p2333_p8, %s169_s8), %s3873_s7  ;;  %s2335_s9 = sshll.u32 (!%p2334_p9), %s3010_s12, 3 }
  0x16   : > { %p176_p10 = scmp.eq.s32.totalorder (!%p2334_p9), %s3010_s12, 1  ;;  %s177_s10 = sadd.s32 (!%p2334_p9), 8, %s2335_s9 }
  0x17   : > { %s2795_s11 = sshll.u32 (!%p2334_p9), %s3010_s12, 7  ;;  %s3110_s19 = sshll.u32 (!%p2334_p9), %s3014_s13, 8 }
  0x18   : > { %s183_s20 = smul.u32 (!%p2334_p9), 160, %s3875_s8  ;;  %s181_s21 = sadd.s32 (!%p2334_p9), %s2795_s11, %s3110_s19 }
  0x19   : > { %s3877_s10 = smov (%p176_p10, %s177_s10), 14  ;;  %s186_s22 = smul.u32 3, %s3875_s8 }
  0x1a   : > { %s3118_s25 = scalar_lea.vmem %s3854_s0, %s181_s21  ;;  %s3123_s27 = scalar_lea.vmem [#allocation2], %s183_s20 }
  0x1b   : > { %v198_v0 = vld [vmem:[%s3118_s25] sm:$0xff]  ;;  %v200_v1 = vld [vmem:[%s3118_s25 + $0x8] sm:$0xff]  ;;  %v202_v2 = vld [vmem:[%s3118_s25 + $0x10] sm:$0xff]  ;;  %s187_s28 = scalar_lea.sflag [#allocation3], %s186_s22 }
  0x1c   : > { %2338 = vst [vmem:[%s3123_s27 + $0x10] sm:$0xff] %v198_v0  ;;  %v204_v3 = vld [vmem:[%s3118_s25 + $0x18] sm:$0xff]  ;;  %v206_v4 = vld [vmem:[%s3118_s25 + $0x20] sm:$0xff]  ;;  %v208_v5 = vld [vmem:[%s3118_s25 + $0x28] sm:$0xff] }
  0x1d   : > { %2339 = vst [vmem:[%s3123_s27 + $0x18] sm:$0xff] %v200_v1  ;;  %v210_v6 = vld [vmem:[%s3118_s25 + $0x30] sm:$0xff]  ;;  %v212_v7 = vld [vmem:[%s3118_s25 + $0x38] sm:$0xff]  ;;  %v214_v8 = vld [vmem:[%s3118_s25 + $0x40] sm:$0xff] }
  0x1e   : > { %2340 = vst [vmem:[%s3123_s27 + $0x20] sm:$0xff] %v202_v2  ;;  %v216_v9 = vld [vmem:[%s3118_s25 + $0x48] sm:$0xff]  ;;  %v218_v10 = vld [vmem:[%s3118_s25 + $0x50] sm:$0xff]  ;;  %v220_v11 = vld [vmem:[%s3118_s25 + $0x58] sm:$0xff] }
  0x1f   : > { %2341 = vst [vmem:[%s3123_s27 + $0x28] sm:$0xff] %v204_v3  ;;  %v222_v12 = vld [vmem:[%s3118_s25 + $0x60] sm:$0xff]  ;;  %v224_v13 = vld [vmem:[%s3118_s25 + $0x68] sm:$0xff]  ;;  %v226_v14 = vld [vmem:[%s3118_s25 + $0x70] sm:$0xff] }
  0x20   : > { %2342 = vst [vmem:[%s3123_s27 + $0x30] sm:$0xff] %v206_v4  ;;  %v228_v15 = vld [vmem:[%s3118_s25 + $0x78] sm:$0xff] }
  0x21   : > { %2343 = vst [vmem:[%s3123_s27 + $0x38] sm:$0xff] %v208_v5 }
  0x22   : > { %2344 = vst [vmem:[%s3123_s27 + $0x40] sm:$0xff] %v210_v6 }
  0x23   : > { %2345 = vst [vmem:[%s3123_s27 + $0x48] sm:$0xff] %v212_v7 }
  0x24   : > { %2346 = vst [vmem:[%s3123_s27 + $0x50] sm:$0xff] %v214_v8 }
  0x25   : > { %2347 = vst [vmem:[%s3123_s27 + $0x58] sm:$0xff] %v216_v9 }
  0x26   : > { %2348 = vst [vmem:[%s3123_s27 + $0x60] sm:$0xff] %v218_v10 }
  0x27   : > { %2349 = vst [vmem:[%s3123_s27 + $0x68] sm:$0xff] %v220_v11 }
  0x28   : > { %2350 = vst [vmem:[%s3123_s27 + $0x70] sm:$0xff] %v222_v12 }
  0x29   : > { %2351 = vst [vmem:[%s3123_s27 + $0x78] sm:$0xff] %v224_v13 }
  0x2a   : > { %2352 = vst [vmem:[%s3123_s27 + $0x80] sm:$0xff] %v226_v14 }
  0x2b   : > { %2353 = vst [vmem:[%s3123_s27 + $0x88] sm:$0xff] %v228_v15 }
  0x2c   : > { %235 = vsyncadd %s187_s28, 2048  ;;  %s2196_s5 = scalar_lea.vmem %s3854_s0, %s3110_s19  ;;  %s2202_s6 = scalar_lea.sflag %s187_s28, 1 [#allocation3] }
  0x2d   : > { %v2355_v16 = vld [vmem:[%s2196_s5 + $0x10] sm:$0xff]  ;;  %v2356_v17 = vld [vmem:[%s2196_s5 + $0x18] sm:$0xff] }
  0x2e   : > { %252 = vst [vmem:[%s3123_s27] sm:$0xff] %v2355_v16 }
  0x2f   : > { %254 = vst [vmem:[%s3123_s27 + $0x8] sm:$0xff] %v2356_v17 }
  0x30   : > { %260 = vsyncadd %s2202_s6, 256  ;;  %s2357_s7 = sshll.u32 %s3877_s10, 4  ;;  %s2212_s9 = scalar_lea.sflag %s187_s28, 2 [#allocation3] }
  0x31   : > { %s262_s11 = sadd.s32 %s2357_s7, %s3110_s19 }
  0x32   : > { %s263_s22 = scalar_lea.vmem %s3854_s0, %s262_s11 }
  0x33   : > { %v278_v18 = vld [vmem:[%s263_s22] sm:$0xff]  ;;  %v280_v19 = vld [vmem:[%s263_s22 + $0x8] sm:$0xff] }
  0x34   : > { %2358 = vst [vmem:[%s3123_s27 + $0x90] sm:$0xff] %v278_v18 }
  0x35   : > { %2359 = vst [vmem:[%s3123_s27 + $0x98] sm:$0xff] %v280_v19 }
  0x36   : > { %287 = vsyncadd %s2212_s9, 256 }
  0x37 PF: > { %s288_s23 = sadd.s32 1, %s3010_s12 }
  0x38   : > { %p2360_p11 = scmp.ge.s32.totalorder %s288_s23, 2 }
  0x39   : > { %s293_s10 = ssub.s32 (!%p2360_p11), 1, %s3875_s8  ;;  %s2796_s19 = sshll.u32 (!%p2360_p11), %s3010_s12, 3 }
  0x3a   : > { %292 = sbr.rel (%p2360_p11) target bundleno = 95 (0x5f), region = 89  ;;  %s2797_s24 = sadd.s32 (!%p2360_p11), 8, %s2796_s19 }
  0x3b   : > { %p295_p12 = scmp.eq.s32.totalorder (!%p2360_p11), %s288_s23, 0  ;;  %s2362_s25 = sadd.s32 (!%p2360_p11), 4294967295, %s2797_s24 }
  0x3c   : > { %p298_p13 = scmp.eq.s32.totalorder (!%p2360_p11), %s288_s23, 1  ;;  %s299_s28 = sadd.s32 (!%p2360_p11), 8, %s2797_s24 }
  0x3d   : > { %s3175_s27 = sshll.u32 (!%p2360_p11), %s3014_s13, 8  ;;  %s2364_s29 = sshll.u32 (!%p2360_p11), %s3010_s12, 7 }
  0x3e   : > { %s305_s30 = smul.u32 (!%p2360_p11), 160, %s293_s10  ;;  %s2215_s5 = sadd.s32 (!%p2360_p11), %s2364_s29, %s3175_s27 }
  0x3f   : > { %s3879_s25 = smov (%p295_p12, %s2362_s25), 1  ;;  %s3881_s28 = smov (%p298_p13, %s299_s28), 14 }
  0x40   : > { %s3181_s6 = smul.u32 3, %s293_s10  ;;  %s3186_s11 = scalar_lea.vmem %s3854_s0, %s2215_s5 }
  0x41   : > { %v2366_v20 = vld [vmem:[%s3186_s11 + $0x80] sm:$0xff]  ;;  %v2368_v21 = vld [vmem:[%s3186_s11 + $0x88] sm:$0xff]  ;;  %v2370_v22 = vld [vmem:[%s3186_s11 + $0x90] sm:$0xff]  ;;  %s3191_s13 = scalar_lea.vmem [#allocation2], %s305_s30 }
  0x42   : > { %2367 = vst [vmem:[%s3191_s13 + $0x10] sm:$0xff] %v2366_v20  ;;  %v2372_v23 = vld [vmem:[%s3186_s11 + $0x98] sm:$0xff]  ;;  %v2374_v24 = vld [vmem:[%s3186_s11 + $0xa0] sm:$0xff]  ;;  %v2376_v25 = vld [vmem:[%s3186_s11 + $0xa8] sm:$0xff]  ;;  %s309_s20 = scalar_lea.sflag [#allocation3], %s3181_s6 }
  0x43   : > { %2369 = vst [vmem:[%s3191_s13 + $0x18] sm:$0xff] %v2368_v21  ;;  %v2378_v26 = vld [vmem:[%s3186_s11 + $0xb0] sm:$0xff]  ;;  %v2380_v27 = vld [vmem:[%s3186_s11 + $0xb8] sm:$0xff]  ;;  %v2382_v28 = vld [vmem:[%s3186_s11 + $0xc0] sm:$0xff] }
  0x44   : > { %2371 = vst [vmem:[%s3191_s13 + $0x20] sm:$0xff] %v2370_v22  ;;  %v2384_v29 = vld [vmem:[%s3186_s11 + $0xc8] sm:$0xff]  ;;  %v2386_v30 = vld [vmem:[%s3186_s11 + $0xd0] sm:$0xff]  ;;  %v2388_v31 = vld [vmem:[%s3186_s11 + $0xd8] sm:$0xff] }
  0x45   : > { %2373 = vst [vmem:[%s3191_s13 + $0x28] sm:$0xff] %v2372_v23  ;;  %v2390_v32 = vld [vmem:[%s3186_s11 + $0xe0] sm:$0xff]  ;;  %v2392_v33 = vld [vmem:[%s3186_s11 + $0xe8] sm:$0xff]  ;;  %v2394_v34 = vld [vmem:[%s3186_s11 + $0xf0] sm:$0xff] }
  0x46   : > { %2375 = vst [vmem:[%s3191_s13 + $0x30] sm:$0xff] %v2374_v24  ;;  %v2396_v35 = vld [vmem:[%s3186_s11 + $0xf8] sm:$0xff] }
  0x47   : > { %2377 = vst [vmem:[%s3191_s13 + $0x38] sm:$0xff] %v2376_v25 }
  0x48   : > { %2379 = vst [vmem:[%s3191_s13 + $0x40] sm:$0xff] %v2378_v26 }
  0x49   : > { %2381 = vst [vmem:[%s3191_s13 + $0x48] sm:$0xff] %v2380_v27 }
  0x4a   : > { %2383 = vst [vmem:[%s3191_s13 + $0x50] sm:$0xff] %v2382_v28 }
  0x4b   : > { %2385 = vst [vmem:[%s3191_s13 + $0x58] sm:$0xff] %v2384_v29 }
  0x4c   : > { %2387 = vst [vmem:[%s3191_s13 + $0x60] sm:$0xff] %v2386_v30 }
  0x4d   : > { %2389 = vst [vmem:[%s3191_s13 + $0x68] sm:$0xff] %v2388_v31 }
  0x4e   : > { %2391 = vst [vmem:[%s3191_s13 + $0x70] sm:$0xff] %v2390_v32 }
  0x4f   : > { %2393 = vst [vmem:[%s3191_s13 + $0x78] sm:$0xff] %v2392_v33 }
  0x50   : > { %2395 = vst [vmem:[%s3191_s13 + $0x80] sm:$0xff] %v2394_v34 }
  0x51   : > { %2397 = vst [vmem:[%s3191_s13 + $0x88] sm:$0xff] %v2396_v35 }
  0x52   : > { %357 = vsyncadd %s309_s20, 2048  ;;  %s2398_s21 = sshll.u32 %s3879_s25, 4  ;;  %s2231_s22 = scalar_lea.sflag %s309_s20, 1 [#allocation3] }
  0x53   : > { %s359_s23 = sadd.s32 %s2398_s21, %s3175_s27 }
  0x54   : > { %s360_s24 = scalar_lea.vmem %s3854_s0, %s359_s23 }
  0x55   : > { %v374_v36 = vld [vmem:[%s360_s24] sm:$0xff]  ;;  %v376_v37 = vld [vmem:[%s360_s24 + $0x8] sm:$0xff] }
  0x56   : > { %375 = vst [vmem:[%s3191_s13] sm:$0xff] %v374_v36 }
  0x57   : > { %377 = vst [vmem:[%s3191_s13 + $0x8] sm:$0xff] %v376_v37 }
  0x58   : > { %383 = vsyncadd %s2231_s22, 256  ;;  %s2399_s29 = sshll.u32 %s3881_s28, 4  ;;  %s2241_s30 = scalar_lea.sflag %s309_s20, 2 [#allocation3] }
  0x59   : > { %s385_s5 = sadd.s32 %s2399_s29, %s3175_s27 }
  0x5a   : > { %s386_s7 = scalar_lea.vmem %s3854_s0, %s385_s5 }
  0x5b   : > { %v401_v38 = vld [vmem:[%s386_s7] sm:$0xff]  ;;  %v403_v39 = vld [vmem:[%s386_s7 + $0x8] sm:$0xff] }
  0x5c   : > { %2400 = vst [vmem:[%s3191_s13 + $0x90] sm:$0xff] %v401_v38 }
  0x5d   : > { %2401 = vst [vmem:[%s3191_s13 + $0x98] sm:$0xff] %v403_v39 }
  0x5e   : > { %410 = vsyncadd %s2241_s30, 256 }
  0x5f PF: > { %413 = sbr.rel (%p2334_p9) target bundleno = 102 (0x66), region = 150 }
  0x64   : > { %v3028_v40 = vmov 0.0  }
  0x65   : > { %414 = vst [vmem:[%s3090_s26] sm:$0x7] %v3028_v40 }
  0x66 PF: > { %s415_s28 = smul.u32 3, %s3875_s8 }
  0x68   : > { %s416_s27 = scalar_lea.sflag [#allocation3], %s415_s28 }
  0x69   : > { %3002 = dma.done.wait %s416_s27, 2048 }
  0x6a   : > { %3003 = vsyncadd %s416_s27, 4294965248  ;;  %s2246_s9 = scalar_lea.sflag %s416_s27, 1 [#allocation3] }
  0x6b   : > { %3004 = dma.done.wait %s2246_s9, 256 }
  0x6c   : > { %3005 = vsyncadd %s2246_s9, 4294967040  ;;  %s2249_s11 = scalar_lea.sflag %s416_s27, 2 [#allocation3] }
  0x6d   : > { %3006 = dma.done.wait %s2249_s11, 256 }
  0x6e   : > { %3007 = vsyncadd %s2249_s11, 4294967040  ;;  %s431_s13 = smul.u32 160, %s3875_s8  ;;  %v2829_v41 = vld [vmem:[%s3855_s1 + $0xf8] sm:$0xff]  ;;  %v2828_v42 = vld [vmem:[%s3855_s1 + $0xf0] sm:$0xff]  ;;  %vm723_vm0 = vcmask 1040384   ;;  %vm1576_vm4 = vcmask 1046528  }
  0x6f   : > { %1118 = vmatpush.bf16.msra.mxu0 %v2829_v41  ;;  %2917 = vmatpush.bf16.msra.mxu1 %v2829_v41  ;;  %v2827_v59 = vld [vmem:[%s3855_s1 + $0xe8] sm:$0xff]  ;;  %vm724_vm1 = vsmask.f32 256  ;;  %v2826_v11 = vld [vmem:[%s3855_s1 + $0xe0] sm:$0xff]  ;;  %vm794_vm2 = vsmask.f32 7424 }
  0x70   : > { %s3248_s23 = scalar_lea.vmem [#allocation2], %s431_s13  ;;  %2918 = vmatpush.bf16.msra.mxu2 %v2829_v41  ;;  %2919 = vmatpush.bf16.msra.mxu3 %v2829_v41  ;;  %vm3266_vm3 = vmand %vm723_vm0, %vm724_vm1  ;;  %v2825_v29 = vld [vmem:[%s3855_s1 + $0xd8] sm:$0xff]  ;;  %vm2085_vm5 = vcmask 1041408  }
  0x71   : > { %v433_v43 = vld [vmem:[%s3248_s23] sm:$0xff]  ;;  %v434_v44 = vld [vmem:[%s3248_s23 + $0x8] sm:$0xff] }
  0x72   : > { %v453_v45 = vpack.c.bf16 %v433_v43, %v433_v43  ;;  %v437_v46 = vld [vmem:[%s3248_s23 + $0x20] sm:$0xff]  ;;  %v438_v47 = vld [vmem:[%s3248_s23 + $0x28] sm:$0xff]  ;;  %v454_v48 = vpack.c.bf16 %v434_v44, %v434_v44 }
  0x73   : > { %v457_v49 = vpack.c.bf16 %v437_v46, %v437_v46  ;;  %v458_v50 = vpack.c.bf16 %v438_v47, %v438_v47  ;;  %v441_v51 = vld [vmem:[%s3248_s23 + $0x40] sm:$0xff]  ;;  %v442_v52 = vld [vmem:[%s3248_s23 + $0x48] sm:$0xff]  ;;  %1119 = vmatpush.bf16.msra.mxu0 %v2828_v42  ;;  %2920 = vmatpush.bf16.msra.mxu1 %v2828_v42  ;;  %v2824_v46 = vld [vmem:[%s3855_s1 + $0xd0] sm:$0xff] }
  0x74   : > { %v445_v53 = vld [vmem:[%s3248_s23 + $0x60] sm:$0xff]  ;;  %v483_v54 = vunpack.c.l.b16 %v453_v45  ;;  %v461_v55 = vpack.c.bf16 %v441_v51, %v441_v51  ;;  %v462_v56 = vpack.c.bf16 %v442_v52, %v442_v52  ;;  %v446_v57 = vld [vmem:[%s3248_s23 + $0x68] sm:$0xff]  ;;  %v553_v60 = vunpack.c.l.b16 %v454_v48  ;;  %2921 = vmatpush.bf16.msra.mxu2 %v2828_v42  ;;  %2922 = vmatpush.bf16.msra.mxu3 %v2828_v42 }
  0x75   : > { %v465_v58 = vpack.c.bf16 %v445_v53, %v445_v53  ;;  %v485_v61 = vunpack.c.l.b16 %v457_v49  ;;  %v555_v62 = vunpack.c.l.b16 %v458_v50  ;;  %v466_v2 = vpack.c.bf16 %v446_v57, %v446_v57 }
  0x76   : > { %v493_v63 = vpack.c.b16 %v483_v54, %v483_v54  ;;  %v487_v0 = vunpack.c.l.b16 %v461_v55  ;;  %v557_v1 = vunpack.c.l.b16 %v462_v56  ;;  %v563_v3 = vpack.c.b16 %v553_v60, %v483_v54  ;;  %v435_v55 = vld [vmem:[%s3248_s23 + $0x10] sm:$0xff] }
  0x77   : > { %v663_v4 = vpack.c.b16 %v553_v60, %v553_v60  ;;  %v495_v5 = vpack.c.b16 %v485_v61, %v485_v61  ;;  %v565_v6 = vpack.c.b16 %v555_v62, %v485_v61  ;;  %v665_v7 = vpack.c.b16 %v555_v62, %v555_v62  ;;  %1120 = vmatpush.bf16.msra.mxu0 %v2827_v59  ;;  %v436_v60 = vld [vmem:[%s3248_s23 + $0x18] sm:$0xff] }
  0x78   : > { %v497_v8 = vpack.c.b16 %v487_v0, %v487_v0  ;;  %v567_v9 = vpack.c.b16 %v557_v1, %v487_v0  ;;  %v489_v10 = vunpack.c.l.b16 %v465_v58  ;;  %2923 = vmatpush.bf16.msra.mxu1 %v2827_v59  ;;  %v504_v12 = vshrl.u32 %v493_v63, 16  ;;  %2924 = vmatpush.bf16.msra.mxu2 %v2827_v59 }
  0x79   : > { %v574_v13 = vshrl.u32 %v563_v3, 16  ;;  %v577_v14 = vshll.u32 %v563_v3, 16  ;;  %v674_v15 = vshll.u32 %v663_v4, 16  ;;  %2925 = vmatpush.bf16.msra.mxu3 %v2827_v59  ;;  %v510_v16 = vshrl.u32 %v495_v5, 16 }
  0x7a   : > { %v588_v17 = vshrl.u32 %v565_v6, 16  ;;  %v591_v18 = vshll.u32 %v565_v6, 16  ;;  %v682_v19 = vshll.u32 %v665_v7, 16  ;;  %v602_v22 = vshrl.u32 %v567_v9, 16  ;;  %v439_v6 = vld [vmem:[%s3248_s23 + $0x30] sm:$0xff]  ;;  %v440_v7 = vld [vmem:[%s3248_s23 + $0x38] sm:$0xff] }
  0x7b   : > { %v576_v20 = vrot.slane %v574_v13, 7  ;;  %v676_v21 = vrot.slane %v674_v15, 3  ;;  %v605_v23 = vshll.u32 %v567_v9, 16  ;;  %v516_v27 = vshrl.u32 %v497_v8, 16  ;;  %1121 = vmatpush.bf16.msra.mxu0 %v2826_v11 }
  0x7c   : > { %v590_v25 = vrot.slane %v588_v17, 7  ;;  %v684_v26 = vrot.slane %v682_v19, 3  ;;  %v667_v28 = vpack.c.b16 %v557_v1, %v557_v1  ;;  %2926 = vmatpush.bf16.msra.mxu1 %v2826_v11  ;;  %v604_v32 = vrot.slane %v602_v22, 7  ;;  %2927 = vmatpush.bf16.msra.mxu2 %v2826_v11  ;;  %v2823_v1 = vld [vmem:[%s3855_s1 + $0xc8] sm:$0xff] }
  0x7d   : > { %v579_v30 = vor.u32 %v577_v14, %v576_v20  ;;  %v3275_v31 = vsel %vm3266_vm3, %v576_v20, %v676_v21  ;;  %v499_v33 = vpack.c.b16 %v489_v10, %v489_v10  ;;  %2928 = vmatpush.bf16.msra.mxu3 %v2826_v11  ;;  %v559_v37 = vunpack.c.l.b16 %v466_v2  ;;  %v2822_v21 = vld [vmem:[%s3855_s1 + $0xc0] sm:$0xff] }
  0x7e   : > { %v803_v34 = vshll.u32 %v3275_v31, 16  ;;  %v593_v35 = vor.u32 %v591_v18, %v590_v25  ;;  %v3280_v36 = vsel %vm3266_vm3, %v590_v25, %v684_v26  ;;  %v607_v40 = vor.u32 %v605_v23, %v604_v32 }
  0x7f   : > { %v3284_v38 = vsel %vm3266_vm3, %v504_v12, %v579_v30  ;;  %v827_v39 = vshll.u32 %v3280_v36, 16  ;;  %v690_v41 = vshll.u32 %v667_v28, 16  ;;  %1122 = vmatpush.bf16.msra.mxu0 %v2825_v29  ;;  %v522_v53 = vshrl.u32 %v499_v33, 16  ;;  %v443_v12 = vld [vmem:[%s3248_s23 + $0x50] sm:$0xff]  ;;  %v444_v30 = vld [vmem:[%s3248_s23 + $0x58] sm:$0xff] }
  0x80   : > { %v796_v42 = vshrl.u32 %v3284_v38, 16  ;;  %v798_v43 = vshll.u32 %v3284_v38, 16  ;;  %v805_v44 = vrot.slane %v803_v34, 1  ;;  %v3291_v45 = vsel %vm3266_vm3, %v510_v16, %v593_v35  ;;  %2929 = vmatpush.bf16.msra.mxu1 %v2825_v29  ;;  %2930 = vmatpush.bf16.msra.mxu2 %v2825_v29  ;;  %v2845_v35 = vld [vmem:[%s3855_s1 + $0x178] sm:$0xff] }
  0x81   : > { %v820_v47 = vshrl.u32 %v3291_v45, 16  ;;  %v822_v48 = vshll.u32 %v3291_v45, 16  ;;  %v829_v49 = vrot.slane %v827_v39, 1  ;;  %v692_v50 = vrot.slane %v690_v41, 3  ;;  %2931 = vmatpush.bf16.msra.mxu3 %v2825_v29 }
  0x82   : > { %v800_v51 = vrot.slane %v798_v43, 1  ;;  %v3300_v52 = vsel %vm3266_vm3, %v516_v27, %v607_v40  ;;  %v569_v54 = vpack.c.b16 %v559_v37, %v489_v10  ;;  %v669_v4 = vpack.c.b16 %v559_v37, %v559_v37  ;;  %v2805_v37 = vld [vmem:[%s3855_s1 + $0x38] sm:$0xff] }
  0x83   : > { %v824_v56 = vrot.slane %v822_v48, 1  ;;  %v3305_v57 = vsel %vm3266_vm3, %v604_v32, %v692_v50  ;;  %v844_v58 = vshrl.u32 %v3300_v52, 16  ;;  %v846_v59 = vshll.u32 %v3300_v52, 16  ;;  %1123 = vmatpush.bf16.msra.mxu0 %v2824_v46 }
  0x84   : > { %v801_v61 = vor.u32 %v800_v51, %v796_v42  ;;  %v851_v62 = vshll.u32 %v3305_v57, 16  ;;  %v616_v63 = vshrl.u32 %v569_v54, 16  ;;  %v619_v0 = vshll.u32 %v569_v54, 16  ;;  %2932 = vmatpush.bf16.msra.mxu1 %v2824_v46  ;;  %2933 = vmatpush.bf16.msra.mxu2 %v2824_v46  ;;  %v2813_v51 = vld [vmem:[%s3855_s1 + $0x78] sm:$0xff] }
  0x85   : > { %v825_v2 = vor.u32 %v824_v56, %v820_v47  ;;  %v848_v3 = vrot.slane %v846_v59, 1  ;;  %v455_v5 = vpack.c.bf16 %v435_v55, %v435_v55  ;;  %2934 = vmatpush.bf16.msra.mxu3 %v2824_v46  ;;  %v456_v11 = vpack.c.bf16 %v436_v60, %v436_v60  ;;  %v2837_v46 = vld [vmem:[%s3855_s1 + $0x138] sm:$0xff]  ;;  %v2804_v59 = vld [vmem:[%s3855_s1 + $0x30] sm:$0xff] }
  0x86   : > { %v806_v8 = vsel %vm794_vm2, %v801_v61, %v805_v44  ;;  %v853_v9 = vrot.slane %v851_v62, 1  ;;  %v618_v10 = vrot.slane %v616_v63, 7  ;;  %v698_v15 = vshll.u32 %v669_v4, 16 }
  0x87   : > { %v3319_v13 = vsel %vm794_vm2, %v825_v2, %v829_v49  ;;  %v849_v14 = vor.u32 %v848_v3, %v844_v58  ;;  %v484_v16 = vunpack.c.l.b16 %v455_v5  ;;  %v554_v18 = vunpack.c.l.b16 %v456_v11  ;;  %1124 = vmatpush.bf16.msra.mxu0 %v2823_v1  ;;  %v2844_v58 = vld [vmem:[%s3855_s1 + $0x170] sm:$0xff]  ;;  %v448_v11 = vld [vmem:[%s3248_s23 + $0x78] sm:$0xff] }
  0x88   : > { %v621_v17 = vor.u32 %v619_v0, %v618_v10  ;;  %v459_v19 = vpack.c.bf16 %v439_v6, %v439_v6  ;;  %v460_v20 = vpack.c.bf16 %v440_v7, %v440_v7  ;;  %2935 = vmatpush.bf16.msra.mxu1 %v2823_v1  ;;  %v700_v23 = vrot.slane %v698_v15, 3  ;;  %2936 = vmatpush.bf16.msra.mxu2 %v2823_v1  ;;  %v2836_v3 = vld [vmem:[%s3855_s1 + $0x130] sm:$0xff] }
  0x89   : > { %v3325_v22 = vsel %vm794_vm2, %v849_v14, %v853_v9  ;;  %v494_v25 = vpack.c.b16 %v484_v16, %v484_v16  ;;  %v463_v26 = vpack.c.bf16 %v443_v12, %v443_v12  ;;  %2937 = vmatpush.bf16.msra.mxu3 %v2823_v1  ;;  %v564_v28 = vpack.c.b16 %v554_v18, %v484_v16  ;;  %v447_v5 = vld [vmem:[%s3248_s23 + $0x70] sm:$0xff]  ;;  %v2843_v12 = vld [vmem:[%s3855_s1 + $0x168] sm:$0xff] }
  0x8a   : > { %v3329_v27 = vsel %vm3266_vm3, %v522_v53, %v621_v17  ;;  %v664_v29 = vpack.c.b16 %v554_v18, %v554_v18  ;;  %v3334_v32 = vsel %vm3266_vm3, %v618_v10, %v700_v23  ;;  %v486_v39 = vunpack.c.l.b16 %v459_v19  ;;  %v2812_v6 = vld [vmem:[%s3855_s1 + $0x70] sm:$0xff]  ;;  %v2803_v14 = vld [vmem:[%s3855_s1 + $0x28] sm:$0xff] }
  0x8b   : > { %v868_v33 = vshrl.u32 %v3329_v27, 16  ;;  %v870_v34 = vshll.u32 %v3329_v27, 16  ;;  %v875_v40 = vshll.u32 %v3334_v32, 16  ;;  %v581_v41 = vshrl.u32 %v564_v28, 16  ;;  %1125 = vmatpush.bf16.msra.mxu0 %v2822_v21 }
  0x8c   : > { %v584_v42 = vshll.u32 %v564_v28, 16  ;;  %v678_v43 = vshll.u32 %v664_v29, 16  ;;  %2938 = vmatpush.bf16.msra.mxu1 %v2822_v21  ;;  %v507_v47 = vshrl.u32 %v494_v25, 16  ;;  %v556_v48 = vunpack.c.l.b16 %v460_v20  ;;  %2939 = vmatpush.bf16.msra.mxu2 %v2822_v21  ;;  %v2835_v25 = vld [vmem:[%s3855_s1 + $0x128] sm:$0xff] }
  0x8d   : > { %v872_v44 = vrot.slane %v870_v34, 1  ;;  %v464_v49 = vpack.c.bf16 %v444_v30, %v444_v30  ;;  %2940 = vmatpush.bf16.msra.mxu3 %v2822_v21  ;;  %v877_v50 = vrot.slane %v875_v40, 1  ;;  %v583_v53 = vrot.slane %v581_v41, 7  ;;  %v2842_v40 = vld [vmem:[%s3855_s1 + $0x160] sm:$0xff] }
  0x8e   : > { %v680_v54 = vrot.slane %v678_v43, 3  ;;  %v496_v55 = vpack.c.b16 %v486_v39, %v486_v39  ;;  %v566_v60 = vpack.c.b16 %v556_v48, %v486_v39  ;;  %v666_v61 = vpack.c.b16 %v556_v48, %v556_v48  ;;  %1126 = vmatmul.bf16.vlgmr.msra.gmra.mxu0 %v806_v8  ;;  %v2802_v41 = vld [vmem:[%s3855_s1 + $0x20] sm:$0xff] }
  0x8f   : > { %v873_v56 = vor.u32 %v872_v44, %v868_v33  ;;  %1136 = vmatmul.bf16.vlgmr.msra.gmra.mxu1 %v3319_v13  ;;  %v586_v62 = vor.u32 %v584_v42, %v583_v53  ;;  %v488_v0 = vunpack.c.l.b16 %v463_v26  ;;  %v558_v1 = vunpack.c.l.b16 %v464_v49  ;;  %1146 = vmatmul.bf16.vlgmr.msra.gmra.mxu2 %v3325_v22  ;;  %v2811_v33 = vld [vmem:[%s3855_s1 + $0x68] sm:$0xff] }
  0x90   : > { %1216 = vmatpush.bf16.msrb.mxu2 %v2845_v35  ;;  %v3360_v63 = vsel %vm3266_vm3, %v583_v53, %v680_v54  ;;  %1167 = vmatpush.bf16.msrb.mxu1 %v2837_v46  ;;  %v595_v4 = vshrl.u32 %v566_v60, 16  ;;  %v513_v8 = vshrl.u32 %v496_v55, 16  ;;  %v598_v9 = vshll.u32 %v566_v60, 16 }
  0x91   : > { %1409 = vmatpush.bf16.msrb.mxu3 %v2805_v37  ;;  %v3364_v2 = vsel %vm794_vm2, %v873_v56, %v877_v50  ;;  %1458 = vmatpush.bf16.msrb.mxu0 %v2813_v51  ;;  %v3376_v7 = vsel %vm3266_vm3, %v507_v47, %v586_v62  ;;  %v686_v10 = vshll.u32 %v666_v61, 16  ;;  %v815_v16 = vshll.u32 %v3360_v63, 16  ;;  %v2834_v51 = vld [vmem:[%s3855_s1 + $0x120] sm:$0xff] }
  0x92   : > { %1156 = vmatmul.bf16.vlgmr.msra.gmra.mxu3 %v3364_v2  ;;  %v810_v15 = vshll.u32 %v3376_v7, 16  ;;  %v597_v17 = vrot.slane %v595_v4, 7  ;;  %v498_v18 = vpack.c.b16 %v488_v0, %v488_v0  ;;  %v568_v20 = vpack.c.b16 %v558_v1, %v488_v0  ;;  %v2810_v56 = vld [vmem:[%s3855_s1 + $0x60] sm:$0xff]  ;;  %v2841_v4 = vld [vmem:[%s3855_s1 + $0x158] sm:$0xff] }
  0x93   : > { %v688_v19 = vrot.slane %v686_v10, 3  ;;  %v668_v21 = vpack.c.b16 %v558_v1, %v558_v1  ;;  %v467_v23 = vpack.c.bf16 %v447_v5, %v447_v5  ;;  %v808_v26 = vshrl.u32 %v3376_v7, 16  ;;  %v2801_v5 = vld [vmem:[%s3855_s1 + $0x18] sm:$0xff] }
  0x94   : > { %1217 = vmatpush.bf16.msrb.mxu2 %v2844_v58  ;;  %1168 = vmatpush.bf16.msrb.mxu1 %v2836_v3  ;;  %v812_v28 = vrot.slane %v810_v15, 1  ;;  %v600_v29 = vor.u32 %v598_v9, %v597_v17  ;;  %v468_v30 = vpack.c.bf16 %v448_v11, %v448_v11  ;;  %v609_v35 = vshrl.u32 %v568_v20, 16 }
  0x95   : > { %1410 = vmatpush.bf16.msrb.mxu3 %v2804_v59  ;;  %1459 = vmatpush.bf16.msrb.mxu0 %v2812_v6  ;;  %v3396_v34 = vsel %vm3266_vm3, %v597_v17, %v688_v19  ;;  %v612_v37 = vshll.u32 %v568_v20, 16  ;;  %v694_v39 = vshll.u32 %v668_v21, 16  ;;  %v519_v44 = vshrl.u32 %v498_v18, 16  ;;  %v2809_v18 = vld [vmem:[%s3855_s1 + $0x58] sm:$0xff] }
  0x96   : > { %v3406_v42 = vsel %vm3266_vm3, %v513_v8, %v600_v29  ;;  %v839_v43 = vshll.u32 %v3396_v34, 16  ;;  %v490_v46 = vunpack.c.l.b16 %v467_v23  ;;  %v611_v49 = vrot.slane %v609_v35, 7 }
  0x97   : > { %v832_v47 = vshrl.u32 %v3406_v42, 16  ;;  %v834_v48 = vshll.u32 %v3406_v42, 16  ;;  %v696_v50 = vrot.slane %v694_v39, 3  ;;  %v813_v53 = vor.u32 %v812_v28, %v808_v26  ;;  %v2800_v26 = vld [vmem:[%s3855_s1 + $0x10] sm:$0xff] }
  0x98   : > { %1218 = vmatpush.bf16.msrb.mxu2 %v2843_v12  ;;  %1169 = vmatpush.bf16.msrb.mxu1 %v2835_v25  ;;  %v817_v54 = vrot.slane %v815_v16, 1  ;;  %v560_v55 = vunpack.c.l.b16 %v468_v30  ;;  %v841_v59 = vrot.slane %v839_v43, 1  ;;  %v614_v60 = vor.u32 %v612_v37, %v611_v49  ;;  %v2840_v25 = vld [vmem:[%s3855_s1 + $0x150] sm:$0xff]  ;;  %v2839_v43 = vld [vmem:[%s3855_s1 + $0x148] sm:$0xff] }
  0x99   : > { %1411 = vmatpush.bf16.msrb.mxu3 %v2803_v14  ;;  %1460 = vmatpush.bf16.msrb.mxu0 %v2811_v33  ;;  %v836_v58 = vrot.slane %v834_v48, 1  ;;  %v3419_v61 = vsel %vm3266_vm3, %v611_v49, %v696_v50  ;;  %v500_v0 = vpack.c.b16 %v490_v46, %v490_v46  ;;  %v2833_v14 = vld [vmem:[%s3855_s1 + $0x118] sm:$0xff]  ;;  %v2832_v33 = vld [vmem:[%s3855_s1 + $0x110] sm:$0xff]  ;;  %v2831_v48 = vld [vmem:[%s3855_s1 + $0x108] sm:$0xff] }
  0x9a   : > { %v863_v62 = vshll.u32 %v3419_v61, 16  ;;  %v570_v1 = vpack.c.b16 %v560_v55, %v490_v46  ;;  %v670_v3 = vpack.c.b16 %v560_v55, %v560_v55  ;;  %v3430_v8 = vsel %vm3266_vm3, %v519_v44, %v614_v60  ;;  %v2808_v37 = vld [vmem:[%s3855_s1 + $0x50] sm:$0xff]  ;;  %v2799_v44 = vld [vmem:[%s3855_s1 + $0x8] sm:$0xff]  ;;  %v2798_v55 = vld [vmem:[%s3855_s1] sm:$0xff] }
  0x9b   : > { %v837_v6 = vor.u32 %v836_v58, %v832_v47  ;;  %v3433_v9 = vsel %vm794_vm2, %v813_v53, %v817_v54  ;;  %v856_v10 = vshrl.u32 %v3430_v8, 16  ;;  %v858_v11 = vshll.u32 %v3430_v8, 16  ;;  %v2838_v53 = vld [vmem:[%s3855_s1 + $0x140] sm:$0xff] }
  0x9c   : > { %1219 = vmatpush.bf16.msrb.mxu2 %v2842_v40  ;;  %1170 = vmatpush.bf16.msrb.mxu1 %v2834_v51  ;;  %v623_v12 = vshrl.u32 %v570_v1, 16  ;;  %v626_v16 = vshll.u32 %v570_v1, 16  ;;  %v702_v17 = vshll.u32 %v670_v3, 16  ;;  %v865_v20 = vrot.slane %v863_v62, 1  ;;  %v2807_v51 = vld [vmem:[%s3855_s1 + $0x48] sm:$0xff]  ;;  %v2830_v58 = vld [vmem:[%s3855_s1 + $0x100] sm:$0xff] }
  0x9d   : > { %1412 = vmatpush.bf16.msrb.mxu3 %v2802_v41  ;;  %1461 = vmatpush.bf16.msrb.mxu0 %v2810_v56  ;;  %v3441_v15 = vsel %vm794_vm2, %v837_v6, %v841_v59  ;;  %v860_v19 = vrot.slane %v858_v11, 1  ;;  %v525_v21 = vshrl.u32 %v500_v0, 16  ;;  %v2853_v56 = vld [vmem:[%s3855_s1 + $0x1b8] sm:$0xff]  ;;  %v2806_v62 = vld [vmem:[%s3855_s1 + $0x40] sm:$0xff]  ;;  %v2852_v3 = vld [vmem:[%s3855_s1 + $0x1b0] sm:$0xff] }
  0x9e   : > { %v625_v23 = vrot.slane %v623_v12, 7  ;;  %1131 = vmatmul.bf16.gmra.mxu0 %v3433_v9  ;;  %v704_v28 = vrot.slane %v702_v17, 3  ;;  %v2861_v59 = vld [vmem:[%s3855_s1 + $0x1f8] sm:$0xff]  ;;  %v2868_v6 = vld [vmem:[%s3855_s1 + $0x230] sm:$0xff]  ;;  %v2859_v11 = vld [vmem:[%s3855_s1 + $0x1e8] sm:$0xff] }
  0x9f   : > { %1141 = vmatmul.bf16.gmra.mxu1 %v3441_v15  ;;  %v861_v29 = vor.u32 %v860_v19, %v856_v10  ;;  %v2821_v0 = vld [vmem:[%s3855_s1 + $0xb8] sm:$0xff]  ;;  %v2851_v10 = vld [vmem:[%s3855_s1 + $0x1a8] sm:$0xff]  ;;  %v2818_v17 = vld [vmem:[%s3855_s1 + $0xa0] sm:$0xff] }
  0xa0   : > { %1220 = vmatpush.bf16.msrb.mxu2 %v2841_v4  ;;  %v628_v30 = vor.u32 %v626_v16, %v625_v23  ;;  %1171 = vmatpush.bf16.msrb.mxu1 %v2833_v14  ;;  %v3459_v35 = vsel %vm3266_vm3, %v625_v23, %v704_v28  ;;  %v2869_v1 = vld [vmem:[%s3855_s1 + $0x238] sm:$0xff]  ;;  %v2860_v4 = vld [vmem:[%s3855_s1 + $0x1f0] sm:$0xff]  ;;  %v2867_v12 = vld [vmem:[%s3855_s1 + $0x228] sm:$0xff] }
  0xa1   : > { %1413 = vmatpush.bf16.msrb.mxu3 %v2801_v5  ;;  %1462 = vmatpush.bf16.msrb.mxu0 %v2809_v18  ;;  %v3465_v39 = vsel %vm794_vm2, %v861_v29, %v865_v20  ;;  %v887_v41 = vshll.u32 %v3459_v35, 16  ;;  %v2820_v5 = vld [vmem:[%s3855_s1 + $0xb0] sm:$0xff]  ;;  %v2850_v14 = vld [vmem:[%s3855_s1 + $0x1a0] sm:$0xff]  ;;  %v2849_v18 = vld [vmem:[%s3855_s1 + $0x198] sm:$0xff] }
  0xa2   : > { %v3469_v40 = vsel %vm3266_vm3, %v525_v21, %v628_v30  ;;  %1151 = vmatmul.bf16.gmra.mxu2 %v3465_v39  ;;  %v2858_v16 = vld [vmem:[%s3855_s1 + $0x1e0] sm:$0xff]  ;;  %v2857_v19 = vld [vmem:[%s3855_s1 + $0x1d8] sm:$0xff]  ;;  %v450_v23 = vld [vmem:[%s3248_s23 + $0x88] sm:$0xff] }
  0xa3   : > { %v880_v46 = vshrl.u32 %v3469_v40, 16  ;;  %v882_v47 = vshll.u32 %v3469_v40, 16  ;;  %v889_v50 = vrot.slane %v887_v41, 1  ;;  %v2817_v20 = vld [vmem:[%s3855_s1 + $0x98] sm:$0xff]  ;;  %v449_v21 = vld [vmem:[%s3248_s23 + $0x80] sm:$0xff]  ;;  %v2848_v28 = vld [vmem:[%s3855_s1 + $0x190] sm:$0xff] }
  0xa4   : > { %1221 = vmatpush.bf16.msrb.mxu2 %v2840_v25  ;;  %1172 = vmatpush.bf16.msrb.mxu1 %v2832_v33  ;;  %v469_v25 = vpack.c.bf16 %v449_v21, %v449_v21  ;;  %v2816_v29 = vld [vmem:[%s3855_s1 + $0x90] sm:$0xff] }
  0xa5   : > { %1414 = vmatpush.bf16.msrb.mxu3 %v2800_v26  ;;  %v884_v49 = vrot.slane %v882_v47, 1  ;;  %1463 = vmatpush.bf16.msrb.mxu0 %v2808_v37  ;;  %v470_v26 = vpack.c.bf16 %v450_v23, %v450_v23  ;;  %v2864_v30 = vld [vmem:[%s3855_s1 + $0x210] sm:$0xff] }
  0xa6   : > { %v491_v33 = vunpack.c.l.b16 %v469_v25 }
  0xa7   : > { %v885_v54 = vor.u32 %v884_v49, %v880_v46  ;;  %v561_v37 = vunpack.c.l.b16 %v470_v26  ;;  %v452_v46 = vld [vmem:[%s3248_s23 + $0x98] sm:$0xff] }
  0xa8   : > { %1222 = vmatpush.bf16.msrb.mxu2 %v2839_v43  ;;  %1173 = vmatpush.bf16.msrb.mxu1 %v2831_v48  ;;  %v501_v47 = vpack.c.b16 %v491_v33, %v491_v33 }
  0xa9   : > { %1415 = vmatpush.bf16.msrb.mxu3 %v2799_v44  ;;  %v3503_v60 = vsel %vm794_vm2, %v885_v54, %v889_v50  ;;  %1464 = vmatpush.bf16.msrb.mxu0 %v2807_v51  ;;  %v571_v41 = vpack.c.b16 %v561_v37, %v491_v33  ;;  %v451_v44 = vld [vmem:[%s3248_s23 + $0x90] sm:$0xff]  ;;  %v671_v50 = vpack.c.b16 %v561_v37, %v561_v37  ;;  %v2855_v54 = vld [vmem:[%s3855_s1 + $0x1c8] sm:$0xff] }
  0xaa   : > { %1161 = vmatmul.bf16.gmra.mxu3 %v3503_v60  ;;  %v471_v51 = vpack.c.bf16 %v451_v44, %v451_v44 }
  0xab   : > { %v630_v43 = vshrl.u32 %v571_v41, 16  ;;  %v633_v49 = vshll.u32 %v571_v41, 16 }
  0xac   : > { %1223 = vmatpush.bf16.msrb.mxu2 %v2838_v53  ;;  %1174 = vmatpush.bf16.msrb.mxu1 %v2830_v58  ;;  %v472_v53 = vpack.c.bf16 %v452_v46, %v452_v46  ;;  %v528_v58 = vshrl.u32 %v501_v47, 16 }
  0xad   : > { %1416 = vmatpush.bf16.msrb.mxu3 %v2798_v55  ;;  %1465 = vmatpush.bf16.msrb.mxu0 %v2806_v62  ;;  %v632_v48 = vrot.slane %v630_v43, 7  ;;  %v2815_v55 = vld [vmem:[%s3855_s1 + $0x88] sm:$0xff]  ;;  %v706_v62 = vshll.u32 %v671_v50, 16 }
  0xaf   : > { %1175 = vmatmul.bf16.vlgmr.msrb.gmra.mxu1 %v3433_v9  ;;  %v2819_v9 = vld [vmem:[%s3855_s1 + $0xa8] sm:$0xff] }
  0xb0   : > { %1810 = vmatpush.bf16.msra.mxu2 %v2853_v56  ;;  %1507 = vmatpush.bf16.msra.mxu1 %v2821_v0  ;;  %v2863_v56 = vld [vmem:[%s3855_s1 + $0x208] sm:$0xff]  ;;  %v492_v0 = vunpack.c.l.b16 %v471_v51 }
  0xb1   : > { %1859 = vmatpush.bf16.msra.mxu3 %v2861_v59  ;;  %1908 = vmatpush.bf16.msra.mxu0 %v2869_v1  ;;  %v635_v59 = vor.u32 %v633_v49, %v632_v48  ;;  %v562_v1 = vunpack.c.l.b16 %v472_v53 }
  0xb2   : > { %1466 = vmatmul.bf16.vlgmr.msrb.gmra.mxu0 %v3376_v7  ;;  %1224 = vmatmul.bf16.vlgmr.msrb.gmra.mxu2 %v3319_v13 }
  0xb4   : > { %1811 = vmatpush.bf16.msra.mxu2 %v2852_v3  ;;  %1508 = vmatpush.bf16.msra.mxu1 %v2820_v5  ;;  %v708_v3 = vrot.slane %v706_v62, 3  ;;  %v572_v5 = vpack.c.b16 %v562_v1, %v492_v0 }
  0xb5   : > { %1860 = vmatpush.bf16.msra.mxu3 %v2860_v4  ;;  %1909 = vmatpush.bf16.msra.mxu0 %v2868_v6  ;;  %v3615_v4 = vsel %vm3266_vm3, %v528_v58, %v635_v59 }
  0xb6   : > { %v894_v6 = vshll.u32 %v3615_v4, 16 }
  0xb8   : > { %1812 = vmatpush.bf16.msra.mxu2 %v2851_v10  ;;  %1509 = vmatpush.bf16.msra.mxu1 %v2819_v9  ;;  %v3621_v10 = vsel %vm3266_vm3, %v632_v48, %v708_v3  ;;  %v892_v9 = vshrl.u32 %v3615_v4, 16  ;;  %v1578_v3 = vrot.slane %v3275_v31, 1  ;;  %v1580_v31 = vrot.slane %v3376_v7, 1 }
  0xb9   : > { %1861 = vmatpush.bf16.msra.mxu3 %v2859_v11  ;;  %1910 = vmatpush.bf16.msra.mxu0 %v2867_v12  ;;  %v637_v11 = vshrl.u32 %v572_v5, 16  ;;  %v899_v12 = vshll.u32 %v3621_v10, 16 }
  0xba   : > { %1417 = vmatmul.bf16.vlgmr.msrb.gmra.mxu3 %v3284_v38 }
  0xbb   : > { %v901_v23 = vrot.slane %v899_v12, 1 }
  0xbc   : > { %1813 = vmatpush.bf16.msra.mxu2 %v2850_v14  ;;  %1510 = vmatpush.bf16.msra.mxu1 %v2818_v17  ;;  %v502_v14 = vpack.c.b16 %v492_v0, %v492_v0  ;;  %v640_v17 = vshll.u32 %v572_v5, 16  ;;  %v1583_v0 = vrot.slane %v3291_v45, 1  ;;  %v1577_v5 = vrot.slane %v3284_v38, 1 }
  0xbd   : > { %1862 = vmatpush.bf16.msra.mxu3 %v2858_v16  ;;  %v639_v16 = vrot.slane %v637_v11, 7 }
  0xbe   : > { %v531_v25 = vshrl.u32 %v502_v14, 16 }
  0xbf   : > { %1180 = vmatmul.bf16.gmra.mxu1 %v3319_v13  ;;  %v2866_v13 = vld [vmem:[%s3855_s1 + $0x220] sm:$0xff]  ;;  %v642_v26 = vor.u32 %v640_v17, %v639_v16 }
  0xc0   : > { %1911 = vmatpush.bf16.msra.mxu0 %v2866_v13  ;;  %1814 = vmatpush.bf16.msra.mxu2 %v2849_v18  ;;  %v672_v13 = vpack.c.b16 %v562_v1, %v562_v1  ;;  %v2846_v18 = vld [vmem:[%s3855_s1 + $0x180] sm:$0xff]  ;;  %v1584_v1 = vrot.slane %v3280_v36, 1  ;;  %v1579_v36 = vsel %vm1576_vm4, %v1577_v5, %v1578_v3 }
  0xc1   : > { %1863 = vmatpush.bf16.msra.mxu3 %v2857_v19  ;;  %1511 = vmatpush.bf16.msra.mxu1 %v2817_v20  ;;  %v2854_v19 = vld [vmem:[%s3855_s1 + $0x1c0] sm:$0xff]  ;;  %v3645_v37 = vsel %vm3266_vm3, %v531_v25, %v642_v26 }
  0xc2   : > { %1471 = vmatmul.bf16.gmra.mxu0 %v3291_v45  ;;  %1229 = vmatmul.bf16.gmra.mxu2 %v3441_v15  ;;  %v906_v44 = vshll.u32 %v3645_v37, 16  ;;  %v904_v47 = vshrl.u32 %v3645_v37, 16 }
  0xc4   : > { %1815 = vmatpush.bf16.msra.mxu2 %v2848_v28  ;;  %v710_v28 = vshll.u32 %v672_v13, 16  ;;  %v908_v48 = vrot.slane %v906_v44, 1 }
  0xc5   : > { %1512 = vmatpush.bf16.msra.mxu1 %v2816_v29  ;;  %v2862_v29 = vld [vmem:[%s3855_s1 + $0x200] sm:$0xff] }
  0xc6   : > { %v712_v33 = vrot.slane %v710_v28, 3 }
  0xc9   : > { %1513 = vmatpush.bf16.msra.mxu1 %v2815_v55 }
  0xca   : > { %1422 = vmatmul.bf16.gmra.mxu3 %v3376_v7 }
  0xcf   : > { %1185 = vmatmul.bf16.gmra.mxu1 %v3441_v15  ;;  %v2865_v15 = vld [vmem:[%s3855_s1 + $0x218] sm:$0xff] }
  0xd0   : > { %1912 = vmatpush.bf16.msra.mxu0 %v2865_v15 }
  0xd2   : > { %1476 = vmatmul.bf16.gmra.mxu0 %v3406_v42  ;;  %1234 = vmatmul.bf16.gmra.mxu2 %v3325_v22 }
  0xd4   : > { %1913 = vmatpush.bf16.msra.mxu0 %v2864_v30 }
  0xd8   : > { %1914 = vmatpush.bf16.msra.mxu0 %v2863_v56 }
  0xda   : > { %1427 = vmatmul.bf16.gmra.mxu3 %v3291_v45 }
  0xdc   : > { %1915 = vmatpush.bf16.msra.mxu0 %v2862_v29 }
  0xdf   : > { %1190 = vmatmul.bf16.gmra.mxu1 %v3325_v22  ;;  %v2856_v22 = vld [vmem:[%s3855_s1 + $0x1d0] sm:$0xff] }
  0xe0   : > { %1864 = vmatpush.bf16.msra.mxu3 %v2856_v22  ;;  %v2814_v22 = vld [vmem:[%s3855_s1 + $0x80] sm:$0xff] }
  0xe1   : > { %1514 = vmatpush.bf16.msra.mxu1 %v2814_v22 }
  0xe2   : > { %1481 = vmatmul.bf16.gmra.mxu0 %v3300_v52  ;;  %1239 = vmatmul.bf16.gmra.mxu2 %v3465_v39 }
  0xe4   : > { %1865 = vmatpush.bf16.msra.mxu3 %v2855_v54 }
  0xe8   : > { %1866 = vmatpush.bf16.msra.mxu3 %v2854_v19 }
  0xea   : > { %1432 = vmatmul.bf16.gmra.mxu3 %v3406_v42 }
  0xef   : > { %1195 = vmatmul.bf16.gmra.mxu1 %v3465_v39  ;;  %v2847_v39 = vld [vmem:[%s3855_s1 + $0x188] sm:$0xff] }
  0xf0   : > { %1816 = vmatpush.bf16.msra.mxu2 %v2847_v39  ;;  %v909_v39 = vor.u32 %v908_v48, %v904_v47 }
  0xf2   : > { %1486 = vmatmul.bf16.gmra.mxu0 %v3430_v8  ;;  %1244 = vmatmul.bf16.gmra.mxu2 %v3364_v2 }
  0xf4   : > { %1817 = vmatpush.bf16.msra.mxu2 %v2846_v18 }
  0xfa   : > { %1437 = vmatmul.bf16.gmra.mxu3 %v3300_v52 }
  0xff   : > { %1200 = vmatmul.bf16.gmra.mxu1 %v3364_v2  ;;  %v896_v2 = vrot.slane %v894_v6, 1 }
 0x101   : > { %v897_v21 = vor.u32 %v896_v2, %v892_v9  ;;  %v1585_v9 = vsel %vm1576_vm4, %v1583_v0, %v1584_v1 }
 0x102   : > { %1491 = vmatmul.bf16.gmra.mxu0 %v3329_v27  ;;  %1249 = vmatmul.bf16.gmra.mxu2 %v3503_v60 }
 0x103   : > { %v902_v30 = vsel %vm794_vm2, %v897_v21, %v901_v23  ;;  %v1586_v23 = vrot.slane %v3406_v42, 1 }
 0x10a   : > { %1442 = vmatmul.bf16.gmra.mxu3 %v3430_v8 }
 0x10b   : > { %v1127_v20 = vpop.f32.mrf.mxu0 }
 0x10c   : > { %v3632_v15 = vpop.f32.mrf.mxu1 }
 0x10f   : > { %1205 = vmatmul.bf16.gmra.mxu1 %v3503_v60  ;;  %v3654_v60 = vsel %vm3266_vm3, %v639_v16, %v712_v33  ;;  %v1581_v16 = vrot.slane %v3360_v63, 1 }
 0x110   : > { %v911_v49 = vshll.u32 %v3654_v60, 16 }
 0x111   : > { %v1582_v21 = vsel %vm1576_vm4, %v1580_v31, %v1581_v16 }
 0x112   : > { %1496 = vmatmul.bf16.gmra.mxu0 %v3469_v40  ;;  %1254 = vmatmul.bf16.gmra.mxu2 %v902_v30  ;;  %v3647_v41 = vpop.f32.mrf.mxu2  ;;  %v913_v54 = vrot.slane %v911_v49, 1 }
 0x113   : > { %v1129_v43 = vpop.f32.mrf.mxu0 }
 0x114   : > { %v3650_v46 = vpop.f32.mrf.mxu1  ;;  %v914_v24 = vsel %vm794_vm2, %v909_v39, %v913_v54 }
 0x115   : > { %v3658_v50 = vpop.f32.mrf.mxu3 }
 0x11a   : > { %1447 = vmatmul.bf16.gmra.mxu3 %v3329_v27  ;;  %v3661_v51 = vpop.f32.mrf.mxu2 }
 0x11b   : > { %v1132_v53 = vpop.f32.mrf.mxu0 }
 0x11c   : > { %v3663_v55 = vpop.f32.mrf.mxu1 }
 0x11d   : > { %v3667_v56 = vpop.f32.mrf.mxu3 }
 0x11f   : > { %1210 = vmatmul.bf16.gmra.mxu1 %v902_v30 }
 0x122   : > { %1501 = vmatmul.bf16.gmra.mxu0 %v3615_v4  ;;  %1259 = vmatmul.bf16.gmra.mxu2 %v914_v24  ;;  %v1589_v24 = vrot.slane %v3300_v52, 1 }
 0x123   : > { %v1134_v58 = vpop.f32.mrf.mxu0 }
 0x124   : > { %v3669_v59 = vpop.f32.mrf.mxu1 }
 0x125   : > { %v3671_v62 = vpop.f32.mrf.mxu2 }
 0x12a   : > { %1452 = vmatmul.bf16.gmra.mxu3 %v3469_v40 }
 0x12c   : > { %v1176_v11 = vpop.f32.mrf.mxu1 }
 0x12d   : > { %v3678_v6 = vpop.f32.mrf.mxu3  ;;  %v3681_v2 = vpop.f32.mrf.mxu2  ;;  %v1177_v12 = vadd.f32 %v1176_v11, %v1127_v20 }
 0x12f   : > { %v1467_v14 = vpop.f32.mrf.mxu0  ;;  %1515 = vmatmul.bf16.vlgmr.msra.gmra.mxu1 %v3291_v45  ;;  %v1587_v45 = vrot.slane %v3396_v34, 1 }
 0x131   : > { %v1588_v63 = vsel %vm1576_vm4, %v1586_v23, %v1587_v45 }
 0x132   : > { %1916 = vmatmul.bf16.vlgmr.msra.gmra.mxu0 %v1585_v9  ;;  %1818 = vmatmul.bf16.vlgmr.msra.gmra.mxu2 %v1579_v36 }
 0x134   : > { %v1178_v17 = vpop.f32.mrf.mxu1 }
 0x135   : > { %v3687_v38 = vpop.f32.mrf.mxu3  ;;  %v1225_v13 = vpop.f32.mrf.mxu2  ;;  %v1179_v18 = vadd.f32 %v1178_v17, %v1129_v43 }
 0x136   : > { %v1226_v20 = vadd.f32 %v1225_v13, %v1177_v12 }
 0x137   : > { %v1469_v19 = vpop.f32.mrf.mxu0 }
 0x13a   : > { %1867 = vmatmul.bf16.vlgmr.msra.gmra.mxu3 %v1582_v21 }
 0x13c   : > { %v1181_v26 = vpop.f32.mrf.mxu1 }
 0x13d   : > { %v1418_v25 = vpop.f32.mrf.mxu3  ;;  %v1227_v7 = vpop.f32.mrf.mxu2  ;;  %v1182_v22 = vadd.f32 %v1181_v26, %v1132_v53  ;;  %v1590_v53 = vrot.slane %v3305_v57, 1 }
 0x13e   : > { %v1419_v28 = vadd.f32 %v1418_v25, %v1226_v20  ;;  %v1228_v30 = vadd.f32 %v1227_v7, %v1179_v18 }
 0x13f   : > { %v1472_v29 = vpop.f32.mrf.mxu0  ;;  %1520 = vmatmul.bf16.gmra.mxu1 %v3406_v42  ;;  %v1591_v1 = vsel %vm1576_vm4, %v1589_v24, %v1590_v53 }
 0x140   : > { %v3694_v33 = vadd.f32 %v1467_v14, %v1419_v28 }
 0x142   : > { %1921 = vmatmul.bf16.gmra.mxu0 %v1588_v63  ;;  %1823 = vmatmul.bf16.gmra.mxu2 %v1582_v21  ;;  %v1593_v21 = vrot.slane %v3419_v61, 1 }
 0x144   : > { %v1183_v44 = vpop.f32.mrf.mxu1 }
 0x145   : > { %v1420_v43 = vpop.f32.mrf.mxu3  ;;  %v1230_v34 = vpop.f32.mrf.mxu2  ;;  %v1184_v48 = vadd.f32 %v1183_v44, %v1134_v58 }
 0x146   : > { %v1421_v47 = vadd.f32 %v1420_v43, %v1228_v30  ;;  %v1231_v39 = vadd.f32 %v1230_v34, %v1182_v22  ;;  %v1596_v34 = vrot.slane %v3334_v32, 1 }
 0x147   : > { %v1474_v49 = vpop.f32.mrf.mxu0 }
 0x148   : > { %v3696_v54 = vadd.f32 %v1469_v19, %v1421_v47 }
 0x14a   : > { %1872 = vmatmul.bf16.gmra.mxu3 %v1585_v9 }
 0x14c   : > { %v1186_v42 = vpop.f32.mrf.mxu1 }
 0x14d   : > { %v1423_v0 = vpop.f32.mrf.mxu3  ;;  %v1232_v5 = vpop.f32.mrf.mxu2  ;;  %v1187_v11 = vadd.f32 %v1186_v42, %v3632_v15  ;;  %v1592_v15 = vrot.slane %v3430_v8, 1 }
 0x14e   : > { %v1424_v3 = vadd.f32 %v1423_v0, %v1231_v39  ;;  %v1233_v14 = vadd.f32 %v1232_v5, %v1184_v48 }
 0x14f   : > { %v1477_v12 = vpop.f32.mrf.mxu0  ;;  %1525 = vmatmul.bf16.gmra.mxu1 %v3300_v52  ;;  %v1594_v23 = vsel %vm1576_vm4, %v1592_v15, %v1593_v21 }
 0x150   : > { %v3703_v58 = vadd.f32 %v1472_v29, %v1424_v3 }
 0x152   : > { %1926 = vmatmul.bf16.gmra.mxu0 %v1591_v1  ;;  %1828 = vmatmul.bf16.gmra.mxu2 %v1585_v9 }
 0x154   : > { %v1188_v16 = vpop.f32.mrf.mxu1 }
 0x155   : > { %v1425_v36 = vpop.f32.mrf.mxu3  ;;  %v1235_v31 = vpop.f32.mrf.mxu2  ;;  %v1189_v17 = vadd.f32 %v1188_v16, %v3650_v46  ;;  %v1599_v16 = vrot.slane %v3459_v35, 1 }
 0x156   : > { %v1426_v57 = vadd.f32 %v1425_v36, %v1233_v14  ;;  %v1236_v18 = vadd.f32 %v1235_v31, %v1187_v11  ;;  %v1598_v36 = vrot.slane %v3469_v40, 1 }
 0x157   : > { %v1479_v13 = vpop.f32.mrf.mxu0 }
 0x158   : > { %v3706_v19 = vadd.f32 %v1474_v49, %v1426_v57 }
 0x15a   : > { %1877 = vmatmul.bf16.gmra.mxu3 %v1588_v63 }
 0x15c   : > { %v1191_v20 = vpop.f32.mrf.mxu1 }
 0x15d   : > { %v1428_v52 = vpop.f32.mrf.mxu3  ;;  %v1237_v45 = vpop.f32.mrf.mxu2  ;;  %v1192_v25 = vadd.f32 %v1191_v20, %v3663_v55  ;;  %v1595_v55 = vrot.slane %v3329_v27, 1 }
 0x15e   : > { %v1429_v9 = vadd.f32 %v1428_v52, %v1236_v18  ;;  %v1238_v28 = vadd.f32 %v1237_v45, %v1189_v17 }
 0x15f   : > { %v1482_v26 = vpop.f32.mrf.mxu0  ;;  %1530 = vmatmul.bf16.gmra.mxu1 %v3430_v8  ;;  %v1597_v49 = vsel %vm1576_vm4, %v1595_v55, %v1596_v34 }
 0x160   : > { %v3713_v46 = vadd.f32 %v1477_v12, %v1429_v9 }
 0x162   : > { %1931 = vmatmul.bf16.gmra.mxu0 %v1594_v23  ;;  %1833 = vmatmul.bf16.gmra.mxu2 %v1588_v63 }
 0x164   : > { %v1193_v22 = vpop.f32.mrf.mxu1 }
 0x165   : > { %v1430_v7 = vpop.f32.mrf.mxu3  ;;  %v1240_v29 = vpop.f32.mrf.mxu2  ;;  %v1194_v30 = vadd.f32 %v1193_v22, %v3669_v59 }
 0x166   : > { %v1431_v61 = vadd.f32 %v1430_v7, %v1238_v28  ;;  %v1241_v44 = vadd.f32 %v1240_v29, %v1192_v25  ;;  %v1602_v28 = vrot.slane %v3621_v10, 1 }
 0x167   : > { %v1484_v43 = vpop.f32.mrf.mxu0 }
 0x168   : > { %v3716_v47 = vadd.f32 %v1479_v13, %v1431_v61 }
 0x16a   : > { %1882 = vmatmul.bf16.gmra.mxu3 %v1591_v1 }
 0x16c   : > { %v1196_v48 = vpop.f32.mrf.mxu1 }
 0x16d   : > { %v1433_v8 = vpop.f32.mrf.mxu3  ;;  %v1242_v39 = vpop.f32.mrf.mxu2  ;;  %v1197_v42 = vadd.f32 %v1196_v48, %v3647_v41 }
 0x16e   : > { %v1434_v63 = vadd.f32 %v1433_v8, %v1241_v44  ;;  %v1243_v53 = vadd.f32 %v1242_v39, %v1194_v30  ;;  %v1604_v39 = vrot.slane %v3645_v37, 1 }
 0x16f   : > { %v1487_v24 = vpop.f32.mrf.mxu0  ;;  %1535 = vmatmul.bf16.gmra.mxu1 %v3329_v27 }
 0x170   : > { %v3722_v59 = vadd.f32 %v1482_v26, %v1434_v63  ;;  %v1601_v26 = vrot.slane %v3615_v4, 1 }
 0x172   : > { %1936 = vmatmul.bf16.gmra.mxu0 %v1597_v49  ;;  %1838 = vmatmul.bf16.gmra.mxu2 %v1591_v1  ;;  %v1600_v1 = vsel %vm1576_vm4, %v1598_v36, %v1599_v16 }
 0x174   : > { %v1198_v3 = vpop.f32.mrf.mxu1 }
 0x175   : > { %v1435_v0 = vpop.f32.mrf.mxu3  ;;  %v1245_v5 = vpop.f32.mrf.mxu2  ;;  %v1199_v57 = vadd.f32 %v1198_v3, %v3661_v51 }
 0x176   : > { %v1436_v32 = vadd.f32 %v1435_v0, %v1243_v53  ;;  %v1246_v12 = vadd.f32 %v1245_v5, %v1197_v42 }
 0x177   : > { %v1489_v11 = vpop.f32.mrf.mxu0 }
 0x178   : > { %v3725_v14 = vadd.f32 %v1484_v43, %v1436_v32 }
 0x17a   : > { %1887 = vmatmul.bf16.gmra.mxu3 %v1594_v23 }
 0x17c   : > { %v1201_v31 = vpop.f32.mrf.mxu1 }
 0x17d   : > { %v1438_v27 = vpop.f32.mrf.mxu3  ;;  %v1247_v41 = vpop.f32.mrf.mxu2  ;;  %v1202_v35 = vadd.f32 %v1201_v31, %v3671_v62 }
 0x17e   : > { %v1439_v17 = vadd.f32 %v1438_v27, %v1246_v12  ;;  %v1248_v18 = vadd.f32 %v1247_v41, %v1199_v57 }
 0x17f   : > { %v1492_v13 = vpop.f32.mrf.mxu0  ;;  %1540 = vmatmul.bf16.gmra.mxu1 %v3469_v40 }
 0x180   : > { %v3732_v15 = vadd.f32 %v1487_v24, %v1439_v17  ;;  %v1605_v24 = vrot.slane %v3654_v60, 1 }
 0x182   : > { %1941 = vmatmul.bf16.gmra.mxu0 %v1600_v1  ;;  %1843 = vmatmul.bf16.gmra.mxu2 %v1594_v23  ;;  %v1603_v23 = vsel %vm1576_vm4, %v1601_v26, %v1602_v28 }
 0x184   : > { %v1203_v52 = vpop.f32.mrf.mxu1 }
 0x185   : > { %v1440_v21 = vpop.f32.mrf.mxu3  ;;  %v1250_v9 = vpop.f32.mrf.mxu2  ;;  %v1204_v7 = vadd.f32 %v1203_v52, %v3681_v2 }
 0x186   : > { %v1441_v20 = vadd.f32 %v1440_v21, %v1248_v18  ;;  %v1251_v45 = vadd.f32 %v1250_v9, %v1202_v35 }
 0x187   : > { %v1494_v51 = vpop.f32.mrf.mxu0 }
 0x188   : > { %v3735_v25 = vadd.f32 %v1489_v11, %v1441_v20 }
 0x18a   : > { %1892 = vmatmul.bf16.gmra.mxu3 %v1597_v49 }
 0x18c   : > { %v1206_v22 = vpop.f32.mrf.mxu1 }
 0x18d   : > { %v1443_v40 = vpop.f32.mrf.mxu3  ;;  %v1252_v62 = vpop.f32.mrf.mxu2  ;;  %v1207_v10 = vadd.f32 %v1206_v22, %v3658_v50 }
 0x18e   : > { %v1444_v61 = vadd.f32 %v1443_v40, %v1251_v45  ;;  %v1253_v30 = vadd.f32 %v1252_v62, %v1204_v7 }
 0x18f   : > { %v1497_v29 = vpop.f32.mrf.mxu0  ;;  %1545 = vmatmul.bf16.gmra.mxu1 %v3615_v4 }
 0x190   : > { %v3742_v43 = vadd.f32 %v1492_v13, %v1444_v61 }
 0x192   : > { %1946 = vmatmul.bf16.gmra.mxu0 %v1603_v23  ;;  %1848 = vmatmul.bf16.gmra.mxu2 %v1597_v49  ;;  %v1606_v49 = vsel %vm1576_vm4, %v1604_v39, %v1605_v24 }
 0x194   : > { %v1208_v55 = vpop.f32.mrf.mxu1 }
 0x195   : > { %v1445_v44 = vpop.f32.mrf.mxu3  ;;  %v1255_v8 = vpop.f32.mrf.mxu2  ;;  %v1209_v53 = vadd.f32 %v1208_v55, %v3667_v56 }
 0x196   : > { %v1446_v34 = vadd.f32 %v1445_v44, %v1253_v30  ;;  %v1256_v48 = vadd.f32 %v1255_v8, %v1207_v10 }
 0x197   : > { %v1499_v2 = vpop.f32.mrf.mxu0 }
 0x198   : > { %v3745_v63 = vadd.f32 %v1494_v51, %v1446_v34 }
 0x19a   : > { %1897 = vmatmul.bf16.gmra.mxu3 %v1600_v1 }
 0x19c   : > { %v1211_v0 = vpop.f32.mrf.mxu1 }
 0x19d   : > { %v1448_v4 = vpop.f32.mrf.mxu3  ;;  %v1257_v50 = vpop.f32.mrf.mxu2  ;;  %v1212_v60 = vadd.f32 %v1211_v0, %v3678_v6 }
 0x19e   : > { %v1449_v42 = vadd.f32 %v1448_v4, %v1256_v48  ;;  %v1258_v32 = vadd.f32 %v1257_v50, %v1209_v53 }
 0x19f   : > { %v1502_v3 = vpop.f32.mrf.mxu0  ;;  %1550 = vmatmul.bf16.gmra.mxu1 %v3645_v37 }
 0x1a0   : > { %v3752_v5 = vadd.f32 %v1497_v29, %v1449_v42 }
 0x1a2   : > { %1951 = vmatmul.bf16.gmra.mxu0 %v1606_v49  ;;  %1853 = vmatmul.bf16.gmra.mxu2 %v1600_v1 }
 0x1a4   : > { %v1213_v12 = vpop.f32.mrf.mxu1 }
 0x1a5   : > { %v1450_v11 = vpop.f32.mrf.mxu3  ;;  %v1260_v16 = vpop.f32.mrf.mxu2  ;;  %v1214_v17 = vadd.f32 %v1213_v12, %v3687_v38 }
 0x1a6   : > { %v1451_v36 = vadd.f32 %v1450_v11, %v1258_v32  ;;  %v1261_v27 = vadd.f32 %v1260_v16, %v1212_v60 }
 0x1a7   : > { %v1504_v56 = vpop.f32.mrf.mxu0 }
 0x1a8   : > { %v3755_v57 = vadd.f32 %v1499_v2, %v1451_v36 }
 0x1aa   : > { %1902 = vmatmul.bf16.gmra.mxu3 %v1603_v23 }
 0x1ac   : > { %v1516_v41 = vpop.f32.mrf.mxu1 }
 0x1ad   : > { %v1453_v31 = vpop.f32.mrf.mxu3  ;;  %v1262_v13 = vpop.f32.mrf.mxu2  ;;  %v1517_v30 = vadd.f32 %v1516_v41, %v3694_v33 }
 0x1ae   : > { %v1454_v37 = vadd.f32 %v1453_v31, %v1261_v27  ;;  %v1263_v21 = vadd.f32 %v1262_v13, %v1214_v17 }
 0x1af   : > { %v1917_v18 = vpop.f32.mrf.mxu0 }
 0x1b0   : > { %v3758_v1 = vadd.f32 %v1502_v3, %v1454_v37 }
 0x1b4   : > { %v1518_v6 = vpop.f32.mrf.mxu1 }
 0x1b5   : > { %v1455_v35 = vpop.f32.mrf.mxu3  ;;  %v1819_v20 = vpop.f32.mrf.mxu2  ;;  %v1519_v44 = vadd.f32 %v1518_v6, %v3696_v54 }
 0x1b6   : > { %v1456_v52 = vadd.f32 %v1455_v35, %v1263_v21 }
 0x1b7   : > { %v1919_v9 = vpop.f32.mrf.mxu0 }
 0x1b8   : > { %v3760_v51 = vadd.f32 %v1504_v56, %v1456_v52 }
 0x1bc   : > { %v1521_v26 = vpop.f32.mrf.mxu1 }
 0x1bd   : > { %v1868_v45 = vpop.f32.mrf.mxu3  ;;  %v1821_v28 = vpop.f32.mrf.mxu2  ;;  %v1522_v50 = vadd.f32 %v1521_v26, %v3703_v58 }
 0x1be   : > { %v1869_v38 = vadd.f32 %v1868_v45, %v1819_v20 }
 0x1bf   : > { %v1922_v40 = vpop.f32.mrf.mxu0 }
 0x1c0   : > { %v1918_v23 = vadd.f32 %v1917_v18, %v1869_v38 }
 0x1c2   : > { %v3764_v55 = vadd.f32 %v1918_v23, %v1517_v30 }
 0x1c4   : > { %v1523_v22 = vpop.f32.mrf.mxu1 }
 0x1c5   : > { %v1870_v7 = vpop.f32.mrf.mxu3  ;;  %v1824_v62 = vpop.f32.mrf.mxu2  ;;  %v1524_v3 = vadd.f32 %v1523_v22, %v3706_v19 }
 0x1c6   : > { %v1871_v61 = vadd.f32 %v1870_v7, %v1821_v28 }
 0x1c7   : > { %v1924_v29 = vpop.f32.mrf.mxu0 }
 0x1c8   : > { %v1920_v10 = vadd.f32 %v1919_v9, %v1871_v61 }
 0x1ca   : > { %v3766_v34 = vadd.f32 %v1920_v10, %v1519_v44 }
 0x1cc   : > { %v2873_v8 = vpack.c.bf16 %v3766_v34, %v3764_v55  ;;  %v1526_v48 = vpop.f32.mrf.mxu1 }
 0x1cd   : > { %v1873_v2 = vpop.f32.mrf.mxu3  ;;  %v1826_v39 = vpop.f32.mrf.mxu2  ;;  %v1527_v18 = vadd.f32 %v1526_v48, %v3713_v46 }
 0x1ce   : > { %2874 = vst [vmem:[%s3096_s4] sm:$0xff] %v2873_v8   ;;  %v1874_v4 = vadd.f32 %v1873_v2, %v1824_v62 }
 0x1cf   : > { %v1927_v24 = vpop.f32.mrf.mxu0 }
 0x1d0   : > { %v1923_v33 = vadd.f32 %v1922_v40, %v1874_v4 }
 0x1d2   : > { %v3773_v11 = vadd.f32 %v1923_v33, %v1522_v50 }
 0x1d4   : > { %v1528_v0 = vpop.f32.mrf.mxu1 }
 0x1d5   : > { %v1875_v53 = vpop.f32.mrf.mxu3  ;;  %v1829_v54 = vpop.f32.mrf.mxu2  ;;  %v1529_v21 = vadd.f32 %v1528_v0, %v3716_v47  ;;  %v2005_v0 = vadd.f32 %v3766_v34, %v3764_v55 }
 0x1d6   : > { %v1876_v49 = vadd.f32 %v1875_v53, %v1826_v39 }
 0x1d7   : > { %v1929_v42 = vpop.f32.mrf.mxu0 }
 0x1d8   : > { %v1925_v32 = vadd.f32 %v1924_v29, %v1876_v49 }
 0x1da   : > { %v3775_v60 = vadd.f32 %v1925_v32, %v1524_v3 }
 0x1dc   : > { %v2878_v12 = vpack.c.bf16 %v3775_v60, %v3773_v11  ;;  %v1531_v16 = vpop.f32.mrf.mxu1 }
 0x1dd   : > { %v1878_v36 = vpop.f32.mrf.mxu3  ;;  %v1831_v56 = vpop.f32.mrf.mxu2  ;;  %v1532_v47 = vadd.f32 %v1531_v16, %v3722_v59 }
 0x1de   : > { %2910 = vst [vmem:[%s3096_s4 + $0x8] sm:$0xff] %v2878_v12   ;;  %v1879_v31 = vadd.f32 %v1878_v36, %v1829_v54 }
 0x1df   : > { %v1932_v27 = vpop.f32.mrf.mxu0 }
 0x1e0   : > { %v1928_v58 = vadd.f32 %v1927_v24, %v1879_v31 }
 0x1e2   : > { %v3782_v6 = vadd.f32 %v1928_v58, %v1527_v18 }
 0x1e4   : > { %v1533_v41 = vpop.f32.mrf.mxu1 }
 0x1e5   : > { %v1880_v17 = vpop.f32.mrf.mxu3  ;;  %v1834_v19 = vpop.f32.mrf.mxu2  ;;  %v1534_v23 = vadd.f32 %v1533_v41, %v3725_v14 }
 0x1e6   : > { %v1881_v37 = vadd.f32 %v1880_v17, %v1831_v56 }
 0x1e7   : > { %v1934_v13 = vpop.f32.mrf.mxu0 }
 0x1e8   : > { %v1930_v35 = vadd.f32 %v1929_v42, %v1881_v37  ;;  %v2006_v42 = vadd.f32 %v2005_v0, %v3773_v11 }
 0x1ea   : > { %v3784_v52 = vadd.f32 %v1930_v35, %v1529_v21  ;;  %v2007_v32 = vadd.f32 %v2006_v42, %v3775_v60 }
 0x1ec   : > { %v2883_v20 = vpack.c.bf16 %v3784_v52, %v3782_v6  ;;  %v1536_v26 = vpop.f32.mrf.mxu1  ;;  %v2008_v56 = vadd.f32 %v2007_v32, %v3782_v6 }
 0x1ed   : > { %v1883_v9 = vpop.f32.mrf.mxu3  ;;  %v1836_v45 = vpop.f32.mrf.mxu2  ;;  %v1537_v33 = vadd.f32 %v1536_v26, %v3732_v15 }
 0x1ee   : > { %2911 = vst [vmem:[%s3096_s4 + $0x10] sm:$0xff] %v2883_v20   ;;  %v1884_v40 = vadd.f32 %v1883_v9, %v1834_v19  ;;  %v2009_v31 = vadd.f32 %v2008_v56, %v3784_v52 }
 0x1ef   : > { %v1937_v28 = vpop.f32.mrf.mxu0 }
 0x1f0   : > { %v1933_v7 = vadd.f32 %v1932_v27, %v1884_v40 }
 0x1f2   : > { %v3791_v29 = vadd.f32 %v1933_v7, %v1532_v47 }
 0x1f4   : > { %v1538_v62 = vpop.f32.mrf.mxu1  ;;  %v2010_v17 = vadd.f32 %v2009_v31, %v3791_v29 }
 0x1f5   : > { %v1885_v38 = vpop.f32.mrf.mxu3  ;;  %v1839_v22 = vpop.f32.mrf.mxu2  ;;  %v1539_v49 = vadd.f32 %v1538_v62, %v3735_v25 }
 0x1f6   : > { %v1886_v46 = vadd.f32 %v1885_v38, %v1836_v45 }
 0x1f7   : > { %v1939_v44 = vpop.f32.mrf.mxu0 }
 0x1f8   : > { %v1935_v61 = vadd.f32 %v1934_v13, %v1886_v46 }
 0x1fa   : > { %v3793_v30 = vadd.f32 %v1935_v61, %v1534_v23 }
 0x1fc   : > { %v2888_v10 = vpack.c.bf16 %v3793_v30, %v3791_v29  ;;  %v1541_v39 = vpop.f32.mrf.mxu1  ;;  %v2011_v58 = vadd.f32 %v2010_v17, %v3793_v30 }
 0x1fd   : > { %v1888_v8 = vpop.f32.mrf.mxu3  ;;  %v1841_v2 = vpop.f32.mrf.mxu2  ;;  %v1542_v37 = vadd.f32 %v1541_v39, %v3742_v43 }
 0x1fe   : > { %2912 = vst [vmem:[%s3096_s4 + $0x18] sm:$0xff] %v2888_v10   ;;  %v1889_v48 = vadd.f32 %v1888_v8, %v1839_v22 }
 0x1ff   : > { %v1942_v4 = vpop.f32.mrf.mxu0 }
 0x200   : > { %v1938_v59 = vadd.f32 %v1937_v28, %v1889_v48 }
 0x202   : > { %v3803_v50 = vadd.f32 %v1938_v59, %v1537_v33 }
 0x204   : > { %v1543_v16 = vpop.f32.mrf.mxu1  ;;  %v2012_v13 = vadd.f32 %v2011_v58, %v3803_v50 }
 0x205   : > { %v1890_v24 = vpop.f32.mrf.mxu3  ;;  %v1844_v53 = vpop.f32.mrf.mxu2  ;;  %v1544_v45 = vadd.f32 %v1543_v16, %v3745_v63 }
 0x206   : > { %v1891_v14 = vadd.f32 %v1890_v24, %v1841_v2 }
 0x207   : > { %v1944_v25 = vpop.f32.mrf.mxu0 }
 0x208   : > { %v1940_v54 = vadd.f32 %v1939_v44, %v1891_v14 }
 0x20a   : > { %v3805_v3 = vadd.f32 %v1940_v54, %v1539_v49 }
 0x20c   : > { %v2893_v12 = vpack.c.bf16 %v3805_v3, %v3803_v50  ;;  %v1546_v20 = vpop.f32.mrf.mxu1  ;;  %v2013_v9 = vadd.f32 %v2012_v13, %v3805_v3 }
 0x20d   : > { %v1893_v36 = vpop.f32.mrf.mxu3  ;;  %v1846_v27 = vpop.f32.mrf.mxu2  ;;  %v1547_v23 = vadd.f32 %v1546_v20, %v3752_v5 }
 0x20e   : > { %2913 = vst [vmem:[%s3096_s4 + $0x20] sm:$0xff] %v2893_v12   ;;  %v1894_v15 = vadd.f32 %v1893_v36, %v1844_v53 }
 0x20f   : > { %v1947_v28 = vpop.f32.mrf.mxu0 }
 0x210   : > { %v1943_v41 = vadd.f32 %v1942_v4, %v1894_v15 }
 0x212   : > { %v1967_v18 = vadd.f32 %v1943_v41, %v1542_v37 }
 0x214   : > { %v2014_v40 = vadd.f32 %v2013_v9, %v1967_v18  ;;  %v1548_v62 = vpop.f32.mrf.mxu1 }
 0x215   : > { %v1895_v19 = vpop.f32.mrf.mxu3  ;;  %v1849_v35 = vpop.f32.mrf.mxu2  ;;  %v1549_v48 = vadd.f32 %v1548_v62, %v3755_v57 }
 0x216   : > { %v1896_v21 = vadd.f32 %v1895_v19, %v1846_v27 }
 0x217   : > { %v1949_v10 = vpop.f32.mrf.mxu0 }
 0x218   : > { %v1945_v26 = vadd.f32 %v1944_v25, %v1896_v21 }
 0x21a   : > { %v1968_v38 = vadd.f32 %v1945_v26, %v1544_v45 }
 0x21c   : > { %v2898_v7 = vpack.c.bf16 %v1968_v38, %v1967_v18  ;;  %v2015_v46 = vadd.f32 %v2014_v40, %v1968_v38  ;;  %v1551_v59 = vpop.f32.mrf.mxu1 }
 0x21d   : > { %v1898_v22 = vpop.f32.mrf.mxu3  ;;  %v1851_v47 = vpop.f32.mrf.mxu2  ;;  %v1552_v49 = vadd.f32 %v1551_v59, %v3758_v1 }
 0x21e   : > { %2914 = vst [vmem:[%s3096_s4 + $0x28] sm:$0xff] %v2898_v7   ;;  %v1899_v43 = vadd.f32 %v1898_v22, %v1849_v35 }
 0x21f   : > { %v1952_v0 = vpop.f32.mrf.mxu0 }
 0x220   : > { %v1948_v61 = vadd.f32 %v1947_v28, %v1899_v43 }
 0x222   : > { %v1969_v44 = vadd.f32 %v1948_v61, %v1547_v23 }
 0x224   : > { %v2016_v8 = vadd.f32 %v2015_v46, %v1969_v44  ;;  %v1553_v36 = vpop.f32.mrf.mxu1 }
 0x225   : > { %v1900_v2 = vpop.f32.mrf.mxu3  ;;  %v1854_v24 = vpop.f32.mrf.mxu2  ;;  %v1554_v15 = vadd.f32 %v1553_v36, %v3760_v51 }
 0x226   : > { %v1901_v63 = vadd.f32 %v1900_v2, %v1851_v47 }
 0x227   : > { %v1954_v56 = vpop.f32.mrf.mxu0 }
 0x228   : > { %v1950_v39 = vadd.f32 %v1949_v10, %v1901_v63 }
 0x22a   : > { %v1970_v4 = vadd.f32 %v1950_v39, %v1549_v48 }
 0x22c   : > { %v2903_v14 = vpack.c.bf16 %v1970_v4, %v1969_v44  ;;  %v2017_v53 = vadd.f32 %v2016_v8, %v1970_v4 }
 0x22d   : > { %v1903_v33 = vpop.f32.mrf.mxu3  ;;  %v1856_v32 = vpop.f32.mrf.mxu2 }
 0x22e   : > { %2915 = vst [vmem:[%s3096_s4 + $0x30] sm:$0xff] %v2903_v14   ;;  %v1904_v5 = vadd.f32 %v1903_v33, %v1854_v24 }
 0x230   : > { %v1953_v54 = vadd.f32 %v1952_v0, %v1904_v5 }
 0x232   : > { %v1971_v42 = vadd.f32 %v1953_v54, %v1552_v49 }
 0x234   : > { %v2018_v12 = vadd.f32 %v2017_v53, %v1971_v42 }
 0x235   : > { %v1905_v16 = vpop.f32.mrf.mxu3 }
 0x236   : > { %v1906_v57 = vadd.f32 %v1905_v16, %v1856_v32 }
 0x238   : > { %v1955_v27 = vadd.f32 %v1954_v56, %v1906_v57 }
 0x23a   : > { %v1972_v25 = vadd.f32 %v1955_v27, %v1554_v15 }
 0x23c   : > { %v2908_v31 = vpack.c.bf16 %v1972_v25, %v1971_v42  ;;  %v2019_v17 = vadd.f32 %v2018_v12, %v1972_v25 }
 0x23e   : > { %2916 = vst [vmem:[%s3096_s4 + $0x38] sm:$0xff] %v2908_v31   ;;  %v2020_v41 = vrot.slane %v2019_v17, 4  ;;  %v2082_v31 = vld [vmem:[%s3090_s26] sm:$0x7] }
 0x240   : > { %v2021_v58 = vadd.f32 %v2020_v41, %v2019_v17 }
 0x242   : > { %v2022_v37 = vrot.slane %v2021_v58, 2 }
 0x244   : > { %v2023_v19 = vadd.f32 %v2022_v37, %v2021_v58 }
 0x246   : > { %v2024_v1 = vrot.slane %v2023_v19, 1 }
 0x248   : > { %v2025_v13 = vadd.f32 %v2024_v1, %v2023_v19 }
 0x24a   : > { %v2026_v21 = vmul.f32 0.0078125, %v2025_v13 }
 0x24c   : > { %v2027_v35 = vsub.f32 %v3764_v55, %v2026_v21  ;;  %v2028_v20 = vsub.f32 %v3766_v34, %v2026_v21  ;;  %v2037_v9 = vsub.f32 %v1967_v18, %v2026_v21  ;;  %v2038_v45 = vsub.f32 %v1968_v38, %v2026_v21 }
 0x24d   : > { %v2039_v26 = vsub.f32 %v1969_v44, %v2026_v21  ;;  %v2040_v51 = vsub.f32 %v1970_v4, %v2026_v21  ;;  %v2041_v28 = vsub.f32 %v1971_v42, %v2026_v21  ;;  %v2042_v40 = vsub.f32 %v1972_v25, %v2026_v21 }
 0x24e   : > { %v2029_v7 = vsub.f32 %v3773_v11, %v2026_v21  ;;  %v2043_v46 = vmul.f32 %v2027_v35, %v2027_v35  ;;  %v2044_v22 = vmul.f32 %v2028_v20, %v2028_v20  ;;  %v2030_v43 = vsub.f32 %v3775_v60, %v2026_v21 }
 0x24f   : > { %v2031_v47 = vsub.f32 %v3782_v6, %v2026_v21  ;;  %v2032_v55 = vsub.f32 %v3784_v52, %v2026_v21  ;;  %v2033_v18 = vsub.f32 %v3791_v29, %v2026_v21  ;;  %v2034_v10 = vsub.f32 %v3793_v30, %v2026_v21 }
 0x250   : > { %v2045_v23 = vmul.f32 %v2029_v7, %v2029_v7  ;;  %v2059_v61 = vadd.f32 %v2044_v22, %v2043_v46  ;;  %v2046_v62 = vmul.f32 %v2030_v43, %v2030_v43  ;;  %v2035_v2 = vsub.f32 %v3803_v50, %v2026_v21 }
 0x251   : > { %v2047_v38 = vmul.f32 %v2031_v47, %v2031_v47  ;;  %v2048_v8 = vmul.f32 %v2032_v55, %v2032_v55  ;;  %v2049_v63 = vmul.f32 %v2033_v18, %v2033_v18  ;;  %v2036_v6 = vsub.f32 %v3805_v3, %v2026_v21 }
 0x252   : > { %v2060_v34 = vadd.f32 %v2059_v61, %v2045_v23  ;;  %v2050_v48 = vmul.f32 %v2034_v10, %v2034_v10  ;;  %v2051_v24 = vmul.f32 %v2035_v2, %v2035_v2  ;;  %v2053_v14 = vmul.f32 %v2037_v9, %v2037_v9 }
 0x253   : > { %v2052_v4 = vmul.f32 %v2036_v6, %v2036_v6  ;;  %v2054_v53 = vmul.f32 %v2038_v45, %v2038_v45  ;;  %v2055_v33 = vmul.f32 %v2039_v26, %v2039_v26  ;;  %v2056_v5 = vmul.f32 %v2040_v51, %v2040_v51 }
 0x254   : > { %v2061_v44 = vadd.f32 %v2060_v34, %v2046_v62  ;;  %v2057_v50 = vmul.f32 %v2041_v28, %v2041_v28  ;;  %v2058_v42 = vmul.f32 %v2042_v40, %v2042_v40  ;;  %v2080_v56 = vmul.f32 128.0, %v2026_v21 }
 0x256   : > { %v2062_v11 = vadd.f32 %v2061_v44, %v2047_v38  ;;  %v2081_v25 = vmul.f32 %v2080_v56, %v2026_v21 }
 0x258   : > { %v2063_v60 = vadd.f32 %v2062_v11, %v2048_v8 }
 0x25a   : > { %v2064_v39 = vadd.f32 %v2063_v60, %v2049_v63 }
 0x25c   : > { %v2065_v52 = vadd.f32 %v2064_v39, %v2050_v48 }
 0x25e   : > { %v2066_v59 = vadd.f32 %v2065_v52, %v2051_v24 }
 0x260   : > { %v2067_v29 = vadd.f32 %v2066_v59, %v2052_v4 }
 0x262   : > { %v2068_v0 = vadd.f32 %v2067_v29, %v2053_v14 }
 0x264   : > { %v2069_v30 = vadd.f32 %v2068_v0, %v2054_v53 }
 0x266   : > { %v2070_v49 = vadd.f32 %v2069_v30, %v2055_v33 }
 0x268   : > { %v2071_v54 = vadd.f32 %v2070_v49, %v2056_v5 }
 0x26a   : > { %v2072_v3 = vadd.f32 %v2071_v54, %v2057_v50 }
 0x26c   : > { %v2073_v32 = vadd.f32 %v2072_v3, %v2058_v42 }
 0x26e   : > { %v2074_v12 = vrot.slane %v2073_v32, 4 }
 0x270   : > { %v2075_v36 = vadd.f32 %v2074_v12, %v2073_v32 }
 0x272   : > { %v2076_v16 = vrot.slane %v2075_v36, 2 }
 0x274   : > { %v2077_v57 = vadd.f32 %v2076_v16, %v2075_v36 }
 0x276   : > { %v2078_v15 = vrot.slane %v2077_v57, 1 }
 0x278   : > { %v2079_v27 = vadd.f32 %v2078_v15, %v2077_v57 }
 0x27a   : > { %v2084_v17 = vsel %vm723_vm0, %v2025_v13, %v2079_v27 }
 0x27b   : > { %v2086_v41 = vsel %vm2085_vm5, %v2084_v17, %v2081_v25 }
 0x27c   : > { %v2087_v58 = vadd.f32 %v2086_v41, %v2082_v31 }
 0x27e   : > { %2088 = vst [vmem:[%s3090_s26] sm:$0x7] %v2087_v58 }
 0x27f PF: > { %s14_s16 = sadd.s32 1, %s3026_s16   ;;  %s3860_s12 = smov %s3018_s14 }
 0x280   : > { %p11_p0 = scmp.ge.s32.totalorder %s14_s16, 6   ;;  %s3861_s13 = smov %s3022_s15 }
 0x281   : > { %s3862_s14 = smov %s3865_s17  ;;  %s3863_s15 = smov %s3869_s18 }
 0x282   :  { %13 = sbr.rel (!%p11_p0) target bundleno = 3 (0x3), region = 242 }
 0x287   :  { %2133 = vsyncmov [#allocation3] }
 0x28a   :  { %s2134_s26 = vpop.sfrf %2133 }
 0x28b   :  { %p2789_p1 = scmp.ne.s32.totalorder %s2134_s26, 0 }
 0x28d   :  { %2138 = shalt.err (%p2789_p1)  }
 0x28e   :  { %2140 = vsyncmov [#allocation3 + $0x1] }
 0x291   :  { %s2141_s4 = vpop.sfrf %2140 }
 0x292   :  { %p2790_p2 = scmp.ne.s32.totalorder %s2141_s4, 0 }
 0x294   :  { %2145 = shalt.err (%p2790_p2)  }
 0x295   :  { %2147 = vsyncmov [#allocation3 + $0x2] }
 0x298   :  { %s2148_s5 = vpop.sfrf %2147 }
 0x299   :  { %p2791_p3 = scmp.ne.s32.totalorder %s2148_s5, 0 }
 0x29b   :  { %2152 = shalt.err (%p2791_p3)  }
 0x29c   :  { %2154 = vsyncmov [#allocation3 + $0x3] }
 0x29f   :  { %s2155_s6 = vpop.sfrf %2154 }
 0x2a0   :  { %p2792_p4 = scmp.ne.s32.totalorder %s2155_s6, 0 }
 0x2a2   :  { %2159 = shalt.err (%p2792_p4)  }
 0x2a3   :  { %2161 = vsyncmov [#allocation3 + $0x4] }
 0x2a6   :  { %s2162_s17 = vpop.sfrf %2161 }
 0x2a7   :  { %p2793_p5 = scmp.ne.s32.totalorder %s2162_s17, 0 }
 0x2a9   :  { %2166 = shalt.err (%p2793_p5)  }
 0x2aa   :  { %2168 = vsyncmov [#allocation3 + $0x5] }
 0x2ad   :  { %s2169_s0 = vpop.sfrf %2168 }
 0x2ae   :  { %p2794_p6 = scmp.ne.s32.totalorder %s2169_s0, 0 }
 0x2b0   :  { %2173 = shalt.err (%p2794_p6)  }

// kernel: resnet_block_forward.4
= control target key start
LH: loop header
LB: loop body
LE: loop exit
PB: predicated region body
PF: predicated region fallthrough
CT: control target
= control target key end

     0   :  { %s3313_s15 = smov 0   ;;  %s3315_s16 = smov 0   ;;  %s4135_s0 = inlined_call_operand.vmem [shape: bf16[2,16,16,128], index: 0, kind: input, shape index: {}]   ;;  %s4136_s1 = inlined_call_operand.vmem [shape: f32[2,3,128], index: 1, kind: input, shape index: {}]   ;;  %s4137_s2 = inlined_call_operand.vmem [shape: bf16[3,384,128], index: 2, kind: input, shape index: {}]   ;;  %s4138_s3 = inlined_call_operand.vmem [shape: bf16[2,256,128], index: 3, kind: output, shape index: {0}]   ;;  %s4139_s4 = inlined_call_operand.vmem [shape: f32[2,3,128], index: 4, kind: output, shape index: {1}]  }
   0x1   :  { %4140 = sst [smem:[#allocation13_spill]] %s4136_s1  ;;  %s3317_s17 = smov 0  }
   0x2   :  { %4141 = sst [smem:[#allocation14_spill]] %s4138_s3  ;;  %s3319_s18 = smov 0  }
   0x3   :  { %s3321_s19 = smov 0  }
   0x4 LB: > { %s24_s20 = sadd.s32 1, %s3277_s17  ;;  %s27_s21 = sadd.s32 1, %s3281_s18  ;;  %s3285_s19 = sphi %s3321_s19, %s15_s19   ;;  %s3281_s18 = sphi %s3319_s18, %s4149_s18   ;;  %s3277_s17 = sphi %s3317_s17, %s4148_s17   ;;  %s3273_s16 = sphi %s3315_s16, %s4147_s16   ;;  %s3269_s15 = sphi %s3313_s15, %s4146_s15  }
   0x5   : > { %p25_p0 = scmp.ge.s32.totalorder %s24_s20, 2  ;;  %p2543_p1 = scmp.ge.s32.totalorder %s3285_s19, 1 }
   0x6   : > { %p154_p2 = scmp.lt.s32.totalorder %s3285_s19, 5 }
   0x7   : > { %s4151_s20 = smov (%p25_p0, %s24_s20), 0  ;;  %s4153_s21 = smov (!%p25_p0, %s27_s21), %s3281_s18 }
   0x8   : > { %p155_p3 = pnand %p2543_p1, %p154_p2  ;;  %p29_p4 = scmp.ge.s32.totalorder %s4153_s21, 2 }
   0x9   : > { %p185_p5 = scmp.lt.s32.totalorder (!%p155_p3), %s3273_s16, 1  ;;  %s3349_s22 = sshll.u32 (!%p155_p3), %s3269_s15, 4 }
   0xa   : > { %s4155_s21 = smov (%p29_p4, %s4153_s21), 0  ;;  %158 = sbr.rel (%p155_p3) target bundleno = 672 (0x2a0), region = 28 }
   0xb   : > { %p192_p6 = scmp.lt.s32.totalorder (!%p155_p3), %s3349_s22, 31  ;;  %p203_p7 = scmp.lt.s32.totalorder (!%p155_p3), %s3269_s15, 0 }
   0xc   : > { %s4142_s1 = sld [smem:[#allocation13_spill]] (!%p155_p3)  ;;  %s204_s12 = ssub.s32 (!%p155_p3), 0, %s3269_s15 }
   0xd   : > { %s4143_s3 = sld [smem:[#allocation14_spill]] (!%p155_p3)  ;;  %s2549_s13 = smin.u32 (!%p155_p3), %s3269_s15, %s204_s12 }
   0xe   : > { %s206_s14 = sand.u32 (!%p155_p3), 1, %s2549_s13   ;;  %p2552_p9 = scmp.ne.s32.totalorder (!%p155_p3), %s3269_s15, 0 }
   0xf   : > { %s186_s23 = scalar_select %p185_p5, %s3273_s16, 1 }
  0x10   : > { %s193_s24 = scalar_select %p192_p6, %s3349_s22, 31 }
  0x11   : > { %s2544_s25 = sshll.u32 %s186_s23, 2  ;;  %s2546_s26 = sshll.u32 %s186_s23, 5 }
  0x12   : > { %s3358_s29 = scalar_lea.vmem %s4142_s1, %s2544_s25  ;;  %s195_s30 = sadd.s32 %s2546_s26, %s193_s24 }
  0x13   : > { %s2547_s5 = sshll.u32 %s195_s30, 2  ;;  %s3363_s8 = scalar_lea.vmem %s4139_s4, %s2544_s25 }
  0x14   : > { %s3368_s11 = scalar_lea.vmem %s4143_s3, %s2547_s5  ;;  %s207_s23 = ssub.s32 0, %s206_s14 }
  0x15   : > { %s4157_s23 = smov (!%p203_p7, %s207_s23), %s206_s14  ;;  %218 = sbr.rel (%p2552_p9) target bundleno = 49 (0x31), region = 32 }
  0x16   : > { %p2551_p8 = scmp.lt.s32.totalorder %s4157_s23, 0  ;;  %s213_s27 = sadd.s32 2, %s4157_s23 }
  0x17   : > { %s2553_s24 = sshll.u32 (!%p2552_p9), %s3269_s15, 3  ;;  %p220_p10 = scmp.eq.s32.totalorder (!%p2552_p9), %s3269_s15, 1 }
  0x18   : > { %s4159_s27 = smov (!%p2551_p8, %s213_s27), %s4157_s23  ;;  %s221_s25 = sadd.s32 (!%p2552_p9), 8, %s2553_s24 }
  0x19   : > { %s2555_s26 = sshll.u32 (!%p2552_p9), %s3273_s16, 5  ;;  %s2557_s30 = smul.u32 (!%p2552_p9), 80, %s4159_s27 }
  0x1a   : > { %s4161_s25 = smov (%p220_p10, %s221_s25), 14  ;;  %s225_s28 = sadd.s32 %s2555_s26, %s3349_s22 }
  0x1b   : > { %s2556_s5 = sshll.u32 %s225_s28, 2  ;;  %s232_s6 = smul.u32 3, %s4159_s27 }
  0x1c   : > { %s227_s10 = scalar_lea.vmem %s4135_s0, %s2556_s5  ;;  %s2393_s12 = scalar_lea.vmem [#allocation2], %s2557_s30 }
  0x1d   : > { %v244_v0 = vld [vmem:[%s227_s10] sm:$0xff]  ;;  %v246_v1 = vld [vmem:[%s227_s10 + $0x8] sm:$0xff]  ;;  %v248_v2 = vld [vmem:[%s227_s10 + $0x10] sm:$0xff]  ;;  %s233_s13 = scalar_lea.sflag [#allocation3], %s232_s6 }
  0x1e   : > { %2558 = vst [vmem:[%s2393_s12 + $0x8] sm:$0xff] %v244_v0  ;;  %v250_v3 = vld [vmem:[%s227_s10 + $0x18] sm:$0xff]  ;;  %v252_v4 = vld [vmem:[%s227_s10 + $0x20] sm:$0xff]  ;;  %v254_v5 = vld [vmem:[%s227_s10 + $0x28] sm:$0xff] }
  0x1f   : > { %2559 = vst [vmem:[%s2393_s12 + $0x10] sm:$0xff] %v246_v1  ;;  %v256_v6 = vld [vmem:[%s227_s10 + $0x30] sm:$0xff]  ;;  %v258_v7 = vld [vmem:[%s227_s10 + $0x38] sm:$0xff] }
  0x20   : > { %2560 = vst [vmem:[%s2393_s12 + $0x18] sm:$0xff] %v248_v2 }
  0x21   : > { %2561 = vst [vmem:[%s2393_s12 + $0x20] sm:$0xff] %v250_v3 }
  0x22   : > { %2562 = vst [vmem:[%s2393_s12 + $0x28] sm:$0xff] %v252_v4 }
  0x23   : > { %2563 = vst [vmem:[%s2393_s12 + $0x30] sm:$0xff] %v254_v5 }
  0x24   : > { %2564 = vst [vmem:[%s2393_s12 + $0x38] sm:$0xff] %v256_v6 }
  0x25   : > { %2565 = vst [vmem:[%s2393_s12 + $0x40] sm:$0xff] %v258_v7 }
  0x26   : > { %265 = vsyncadd %s233_s13, 1024  ;;  %s3000_s14 = sshll.u32 %s3273_s16, 7  ;;  %s2405_s23 = scalar_lea.sflag %s233_s13, 1 [#allocation3] }
  0x27   : > { %s2399_s30 = scalar_lea.vmem %s4135_s0, %s3000_s14 }
  0x28   : > { %v2569_v8 = vld [vmem:[%s2399_s30 + $0x8] sm:$0xff] }
  0x29   : > { %300 = vst [vmem:[%s2393_s12] sm:$0xff] %v2569_v8 }
  0x2a   : > { %306 = vsyncadd %s2405_s23, 128  ;;  %s2570_s5 = sshll.u32 %s4161_s25, 1  ;;  %s2417_s7 = scalar_lea.sflag %s233_s13, 2 [#allocation3] }
  0x2b   : > { %s308_s9 = sadd.s32 %s2570_s5, %s2555_s26 }
  0x2c   : > { %s2571_s10 = sshll.u32 %s308_s9, 2 }
  0x2d   : > { %s310_s3 = scalar_lea.vmem %s4135_s0, %s2571_s10 }
  0x2e   : > { %v342_v9 = vld [vmem:[%s310_s3] sm:$0xff] }
  0x2f   : > { %2573 = vst [vmem:[%s2393_s12 + $0x48] sm:$0xff] %v342_v9 }
  0x30   : > { %349 = vsyncadd %s2417_s7, 128 }
  0x31 PF: > { %s350_s14 = sadd.s32 1, %s3269_s15 }
  0x32   : > { %p2574_p11 = scmp.ge.s32.totalorder %s350_s14, 2 }
  0x33   : > { %s355_s25 = ssub.s32 (!%p2574_p11), 1, %s4159_s27  ;;  %s3002_s13 = sshll.u32 (!%p2574_p11), %s3269_s15, 3 }
  0x34   : > { %354 = sbr.rel (%p2574_p11) target bundleno = 82 (0x52), region = 123  ;;  %s3003_s26 = sadd.s32 (!%p2574_p11), 8, %s3002_s13 }
  0x35   : > { %p357_p12 = scmp.eq.s32.totalorder (!%p2574_p11), %s350_s14, 0  ;;  %s2576_s23 = sadd.s32 (!%p2574_p11), 4294967295, %s3003_s26 }
  0x36   : > { %p360_p13 = scmp.eq.s32.totalorder (!%p2574_p11), %s350_s14, 1  ;;  %s361_s1 = sadd.s32 (!%p2574_p11), 8, %s3003_s26 }
  0x37   : > { %s3408_s3 = sshll.u32 (!%p2574_p11), %s3273_s16, 5  ;;  %s2581_s24 = smul.u32 (!%p2574_p11), 80, %s355_s25 }
  0x38   : > { %s2420_s12 = sadd.s32 (!%p2574_p11), %s3408_s3, %s3349_s22  ;;  %s372_s30 = smul.u32 (!%p2574_p11), 3, %s355_s25 }
  0x39   : > { %s4163_s23 = smov (%p357_p12, %s2576_s23), 1  ;;  %s4165_s1 = smov (%p360_p13, %s361_s1), 14 }
  0x3a   : > { %s2580_s28 = sshll.u32 %s2420_s12, 2  ;;  %s3417_s10 = scalar_lea.vmem [#allocation2], %s2581_s24 }
  0x3b   : > { %s2422_s9 = scalar_lea.vmem %s4135_s0, %s2580_s28  ;;  %s373_s16 = scalar_lea.sflag [#allocation3], %s372_s30 }
  0x3c   : > { %v2582_v10 = vld [vmem:[%s2422_s9 + $0x40] sm:$0xff]  ;;  %v2584_v11 = vld [vmem:[%s2422_s9 + $0x48] sm:$0xff]  ;;  %v2586_v12 = vld [vmem:[%s2422_s9 + $0x50] sm:$0xff] }
  0x3d   : > { %2583 = vst [vmem:[%s3417_s10 + $0x8] sm:$0xff] %v2582_v10  ;;  %v2588_v13 = vld [vmem:[%s2422_s9 + $0x58] sm:$0xff]  ;;  %v2590_v14 = vld [vmem:[%s2422_s9 + $0x60] sm:$0xff]  ;;  %v2592_v15 = vld [vmem:[%s2422_s9 + $0x68] sm:$0xff] }
  0x3e   : > { %2585 = vst [vmem:[%s3417_s10 + $0x10] sm:$0xff] %v2584_v11  ;;  %v2594_v16 = vld [vmem:[%s2422_s9 + $0x70] sm:$0xff]  ;;  %v2596_v17 = vld [vmem:[%s2422_s9 + $0x78] sm:$0xff] }
  0x3f   : > { %2587 = vst [vmem:[%s3417_s10 + $0x18] sm:$0xff] %v2586_v12 }
  0x40   : > { %2589 = vst [vmem:[%s3417_s10 + $0x20] sm:$0xff] %v2588_v13 }
  0x41   : > { %2591 = vst [vmem:[%s3417_s10 + $0x28] sm:$0xff] %v2590_v14 }
  0x42   : > { %2593 = vst [vmem:[%s3417_s10 + $0x30] sm:$0xff] %v2592_v15 }
  0x43   : > { %2595 = vst [vmem:[%s3417_s10 + $0x38] sm:$0xff] %v2594_v16 }
  0x44   : > { %2597 = vst [vmem:[%s3417_s10 + $0x40] sm:$0xff] %v2596_v17 }
  0x45   : > { %405 = vsyncadd %s373_s16, 1024  ;;  %s2598_s22 = sshll.u32 %s4163_s23, 1  ;;  %s2439_s6 = scalar_lea.sflag %s373_s16, 1 [#allocation3] }
  0x46   : > { %s407_s14 = sadd.s32 %s2598_s22, %s3408_s3 }
  0x47   : > { %s2599_s25 = sshll.u32 %s407_s14, 2 }
  0x48   : > { %s409_s12 = scalar_lea.vmem %s4135_s0, %s2599_s25 }
  0x49   : > { %v440_v18 = vld [vmem:[%s409_s12] sm:$0xff] }
  0x4a   : > { %441 = vst [vmem:[%s3417_s10] sm:$0xff] %v440_v18 }
  0x4b   : > { %447 = vsyncadd %s2439_s6, 128  ;;  %s2601_s24 = sshll.u32 %s4165_s1, 1  ;;  %s2451_s28 = scalar_lea.sflag %s373_s16, 2 [#allocation3] }
  0x4c   : > { %s449_s30 = sadd.s32 %s2601_s24, %s3408_s3 }
  0x4d   : > { %s2602_s5 = sshll.u32 %s449_s30, 2 }
  0x4e   : > { %s451_s23 = scalar_lea.vmem %s4135_s0, %s2602_s5 }
  0x4f   : > { %v483_v19 = vld [vmem:[%s451_s23] sm:$0xff] }
  0x50   : > { %2604 = vst [vmem:[%s3417_s10 + $0x48] sm:$0xff] %v483_v19 }
  0x51   : > { %490 = vsyncadd %s2451_s28, 128 }
  0x52 PF: > { %493 = sbr.rel (%p2552_p9) target bundleno = 89 (0x59), region = 214 }
  0x57   : > { %v3287_v20 = vmov 0.0  }
  0x58   : > { %494 = vst [vmem:[%s3363_s8] sm:$0x7] %v3287_v20 }
  0x59 PF: > { %s495_s1 = smul.u32 3, %s4159_s27 }
  0x5b   : > { %s496_s16 = scalar_lea.sflag [#allocation3], %s495_s1 }
  0x5c   : > { %3261 = dma.done.wait %s496_s16, 1024 }
  0x5d   : > { %3262 = vsyncadd %s496_s16, 4294966272  ;;  %s2456_s3 = scalar_lea.sflag %s496_s16, 1 [#allocation3] }
  0x5e   : > { %3263 = dma.done.wait %s2456_s3, 128 }
  0x5f   : > { %3264 = vsyncadd %s2456_s3, 4294967168  ;;  %s2459_s22 = scalar_lea.sflag %s496_s16, 2 [#allocation3] }
  0x60   : > { %3265 = dma.done.wait %s2459_s22, 128 }
  0x61   : > { %3266 = vsyncadd %s2459_s22, 4294967168  ;;  %v3037_v21 = vld [vmem:[%s4137_s2 + $0xf8] sm:$0xff]  ;;  %v3036_v22 = vld [vmem:[%s4137_s2 + $0xf0] sm:$0xff]  ;;  %s3005_s5 = smul.u32 80, %s4159_s27  ;;  %vm917_vm3 = vcmask 1040384   ;;  %vm1770_vm7 = vcmask 1046528  }
  0x62   : > { %1312 = vmatpush.bf16.msra.mxu0 %v3037_v21  ;;  %3174 = vmatpush.bf16.msra.mxu1 %v3037_v21  ;;  %v556_v23 = vld [vmem:[%s3358_s29] sm:$0x7]  ;;  %v3035_v26 = vld [vmem:[%s4137_s2 + $0xe8] sm:$0xff]  ;;  %v3033_v34 = vld [vmem:[%s4137_s2 + $0xd8] sm:$0xff]  ;;  %vm918_vm4 = vsmask.f32 256 }
  0x63   : > { %3175 = vmatpush.bf16.msra.mxu2 %v3037_v21  ;;  %3176 = vmatpush.bf16.msra.mxu3 %v3037_v21  ;;  %v3450_v24 = vmul.f32 0.00390625, %v556_v23  ;;  %v559_v25 = vrot.slane %v556_v23, 1  ;;  %v3034_v31 = vld [vmem:[%s4137_s2 + $0xe0] sm:$0xff]  ;;  %v3032_v36 = vld [vmem:[%s4137_s2 + $0xd0] sm:$0xff]  ;;  %v3031_v38 = vld [vmem:[%s4137_s2 + $0xc8] sm:$0xff]  ;;  %s3473_s27 = scalar_lea.vmem [#allocation2], %s3005_s5 }
  0x64   : > { %v3030_v41 = vld [vmem:[%s4137_s2 + $0xc0] sm:$0xff]  ;;  %v3158_v51 = vld [vmem:[%s3473_s27 + $0x8] sm:$0xff]   ;;  %v3160_v56 = vld [vmem:[%s3473_s27 + $0x18] sm:$0xff]   ;;  %vm988_vm5 = vsmask.f32 7424  ;;  %vm2279_vm8 = vcmask 1041408  }
  0x65   : > { %v561_v27 = vadd.f32 %v559_v25, %v556_v23  ;;  %v563_v28 = vmul.f32 %v3450_v24, %v3450_v24  ;;  %v3079_v43 = vld [vmem:[%s3473_s27] sm:$0xff]   ;;  %v3159_v45 = vld [vmem:[%s3473_s27 + $0x10] sm:$0xff]   ;;  %v601_v52 = vsub.f32 0.0, %v3450_v24  ;;  %v3483_v57 = vld [vmem:[%s3473_s27 + $0x28] sm:$0xff]   ;;  %v3084_v0 = vunpack.c.l.bf16 %v3158_v51 }
  0x66   : > { %1313 = vmatpush.bf16.msra.mxu0 %v3036_v22  ;;  %3177 = vmatpush.bf16.msra.mxu1 %v3036_v22  ;;  %v3161_v46 = vld [vmem:[%s3473_s27 + $0x20] sm:$0xff]   ;;  %v3163_v47 = vld [vmem:[%s3473_s27 + $0x30] sm:$0xff]   ;;  %v3080_v48 = vunpack.c.l.bf16 %v3079_v43  ;;  %v3081_v49 = vunpack.c.h.bf16 %v3079_v43  ;;  %v3088_v53 = vunpack.c.l.bf16 %v3159_v45  ;;  %v3089_v54 = vunpack.c.h.bf16 %v3159_v45  ;;  %v3490_v6 = vld [vmem:[%s3473_s27 + $0x38] sm:$0xff]  }
  0x67   : > { %3178 = vmatpush.bf16.msra.mxu2 %v3036_v22  ;;  %3179 = vmatpush.bf16.msra.mxu3 %v3036_v22  ;;  %v562_v29 = vmul.f32 0.00390625, %v561_v27  ;;  %v565_v30 = vrot.slane %v563_v28, 7  ;;  %v3096_v55 = vunpack.c.l.bf16 %v3161_v46  ;;  %v3097_v59 = vunpack.c.h.bf16 %v3161_v46  ;;  %vm3576_vm6 = vmand %vm917_vm3, %vm918_vm4 }
  0x68   : > { %v3104_v60 = vunpack.c.l.bf16 %v3163_v47  ;;  %v3105_v61 = vunpack.c.h.bf16 %v3163_v47  ;;  %v3085_v1 = vunpack.c.h.bf16 %v3158_v51  ;;  %v3092_v2 = vunpack.c.l.bf16 %v3160_v56  ;;  %v3052_v47 = vld [vmem:[%s4137_s2 + $0x170] sm:$0xff] }
  0x69   : > { %v567_v32 = vsub.f32 %v562_v29, %v565_v30  ;;  %v3093_v3 = vunpack.c.h.bf16 %v3160_v56  ;;  %v3100_v4 = vunpack.c.l.bf16 %v3483_v57  ;;  %v3101_v5 = vunpack.c.h.bf16 %v3483_v57  ;;  %v3011_v57 = vld [vmem:[%s4137_s2 + $0x28] sm:$0xff] }
  0x6a   : > { %1314 = vmatpush.bf16.msra.mxu0 %v3035_v26  ;;  %3180 = vmatpush.bf16.msra.mxu1 %v3035_v26  ;;  %v3108_v18 = vunpack.c.l.bf16 %v3490_v6 }
  0x6b   : > { %3181 = vmatpush.bf16.msra.mxu2 %v3035_v26  ;;  %3182 = vmatpush.bf16.msra.mxu3 %v3035_v26  ;;  %v568_v33 = vmax.f32 %v567_v32, 0.0 }
  0x6d   : > { %v569_v35 = vadd.f32 1e-05, %v568_v33 }
  0x6e   : > { %1315 = vmatpush.bf16.msra.mxu0 %v3034_v31  ;;  %3183 = vmatpush.bf16.msra.mxu1 %v3034_v31 }
  0x6f   : > { %3184 = vmatpush.bf16.msra.mxu2 %v3034_v31  ;;  %3185 = vmatpush.bf16.msra.mxu3 %v3034_v31  ;;  %3239 = vrsqrt.f32 %v569_v35  ;;  %vm576_vm0 = vweird.f32 %v569_v35 }
  0x72   : > { %1316 = vmatpush.bf16.msra.mxu0 %v3033_v34  ;;  %3186 = vmatpush.bf16.msra.mxu1 %v3033_v34 }
  0x73   : > { %3187 = vmatpush.bf16.msra.mxu2 %v3033_v34  ;;  %3188 = vmatpush.bf16.msra.mxu3 %v3033_v34 }
  0x75   : > { %v3240_v37 = vpop.eup %3239 }
  0x76   : > { %1317 = vmatpush.bf16.msra.mxu0 %v3032_v36  ;;  %3189 = vmatpush.bf16.msra.mxu1 %v3032_v36  ;;  %v571_v39 = vmul.f32 %v3240_v37, %v569_v35  ;;  %vm577_vm1 = vweird.f32 %v3240_v37  ;;  %v3053_v35 = vld [vmem:[%s4137_s2 + $0x178] sm:$0xff] }
  0x77   : > { %3190 = vmatpush.bf16.msra.mxu2 %v3032_v36  ;;  %3191 = vmatpush.bf16.msra.mxu3 %v3032_v36  ;;  %vm578_vm2 = vmor %vm576_vm0, %vm577_vm1  ;;  %v3013_v36 = vld [vmem:[%s4137_s2 + $0x38] sm:$0xff] }
  0x78   : > { %v572_v40 = vmul.f32 %v3240_v37, %v571_v39 }
  0x7a   : > { %1318 = vmatpush.bf16.msra.mxu0 %v3031_v38  ;;  %3192 = vmatpush.bf16.msra.mxu1 %v3031_v38  ;;  %v573_v42 = vmul.f32 0.5, %v572_v40 }
  0x7b   : > { %3193 = vmatpush.bf16.msra.mxu2 %v3031_v38  ;;  %3194 = vmatpush.bf16.msra.mxu3 %v3031_v38 }
  0x7c   : > { %v574_v44 = vsub.f32 1.5, %v573_v42  ;;  %v3021_v42 = vld [vmem:[%s4137_s2 + $0x78] sm:$0xff] }
  0x7e   : > { %1319 = vmatpush.bf16.msra.mxu0 %v3030_v41  ;;  %3195 = vmatpush.bf16.msra.mxu1 %v3030_v41  ;;  %v575_v50 = vmul.f32 %v3240_v37, %v574_v44 }
  0x7f   : > { %3196 = vmatpush.bf16.msra.mxu2 %v3030_v41  ;;  %3197 = vmatpush.bf16.msra.mxu3 %v3030_v41  ;;  %v3045_v41 = vld [vmem:[%s4137_s2 + $0x138] sm:$0xff] }
  0x80   : > { %v579_v58 = vsel %vm578_vm2, %v3240_v37, %v575_v50 }
  0x81   : > { %v3485_v62 = vperm.slane %v579_v58, 1  ;;  %v603_v63 = vrot.slane %v579_v58, 1  ;;  %v3044_v58 = vld [vmem:[%s4137_s2 + $0x130] sm:$0xff] }
  0x82   : > { %1361 = vmatpush.bf16.msrb.mxu1 %v3045_v41  ;;  %1652 = vmatpush.bf16.msrb.mxu0 %v3021_v42 }
  0x83   : > { %v581_v7 = vmul.f32 %v3080_v48, %v3485_v62  ;;  %v582_v8 = vmul.f32 %v3081_v49, %v3485_v62  ;;  %v605_v9 = vmul.f32 %v603_v63, %v601_v52  ;;  %v585_v10 = vmul.f32 %v3088_v53, %v3485_v62  ;;  %1410 = vmatpush.bf16.msrb.mxu2 %v3053_v35  ;;  %v3012_v52 = vld [vmem:[%s4137_s2 + $0x30] sm:$0xff] }
  0x84   : > { %v586_v11 = vmul.f32 %v3089_v54, %v3485_v62  ;;  %v589_v12 = vmul.f32 %v3096_v55, %v3485_v62  ;;  %v590_v13 = vmul.f32 %v3097_v59, %v3485_v62  ;;  %v593_v14 = vmul.f32 %v3104_v60, %v3485_v62  ;;  %1603 = vmatpush.bf16.msrb.mxu3 %v3013_v36  ;;  %v3020_v59 = vld [vmem:[%s4137_s2 + $0x70] sm:$0xff] }
  0x85   : > { %v3499_v15 = vperm.slane %v605_v9, 0  ;;  %v594_v16 = vmul.f32 %v3105_v61, %v3485_v62  ;;  %v3503_v17 = vmul.f32 %v3084_v0, %v3485_v62  ;;  %v3507_v19 = vmul.f32 %v3085_v1, %v3485_v62 }
  0x86   : > { %v3510_v20 = vmul.f32 %v3092_v2, %v3485_v62  ;;  %v3513_v21 = vmul.f32 %v3093_v3, %v3485_v62  ;;  %v3516_v22 = vmul.f32 %v3100_v4, %v3485_v62  ;;  %v3555_v0 = vmul.f32 %v3101_v5, %v3485_v62  ;;  %1362 = vmatpush.bf16.msrb.mxu1 %v3044_v58 }
  0x87   : > { %v607_v23 = vadd.f32 %v3499_v15, %v581_v7  ;;  %v608_v24 = vadd.f32 %v3499_v15, %v582_v8  ;;  %v611_v25 = vadd.f32 %v3499_v15, %v585_v10  ;;  %v612_v26 = vadd.f32 %v3499_v15, %v586_v11  ;;  %1411 = vmatpush.bf16.msrb.mxu2 %v3052_v47  ;;  %v3051_v7 = vld [vmem:[%s4137_s2 + $0x168] sm:$0xff] }
  0x88   : > { %v615_v27 = vadd.f32 %v3499_v15, %v589_v12  ;;  %v616_v28 = vadd.f32 %v3499_v15, %v590_v13  ;;  %v619_v29 = vadd.f32 %v3499_v15, %v593_v14  ;;  %v620_v30 = vadd.f32 %v3499_v15, %v594_v16  ;;  %1604 = vmatpush.bf16.msrb.mxu3 %v3012_v52  ;;  %v3043_v16 = vld [vmem:[%s4137_s2 + $0x128] sm:$0xff] }
  0x89   : > { %v627_v31 = vmax.f32 %v607_v23, 0.0  ;;  %v628_v32 = vmax.f32 %v608_v24, 0.0  ;;  %v631_v33 = vmax.f32 %v611_v25, 0.0  ;;  %v632_v34 = vmax.f32 %v612_v26, 0.0  ;;  %1653 = vmatpush.bf16.msrb.mxu0 %v3020_v59  ;;  %v3019_v23 = vld [vmem:[%s4137_s2 + $0x68] sm:$0xff] }
  0x8a   : > { %v635_v37 = vmax.f32 %v615_v27, 0.0  ;;  %v636_v38 = vmax.f32 %v616_v28, 0.0  ;;  %v639_v39 = vmax.f32 %v619_v29, 0.0  ;;  %v640_v40 = vmax.f32 %v620_v30, 0.0  ;;  %1363 = vmatpush.bf16.msrb.mxu1 %v3043_v16 }
  0x8b   : > { %v647_v43 = vpack.c.bf16 %v627_v31, %v627_v31  ;;  %v648_v44 = vpack.c.bf16 %v628_v32, %v628_v32  ;;  %v651_v45 = vpack.c.bf16 %v631_v33, %v631_v33  ;;  %v652_v46 = vpack.c.bf16 %v632_v34, %v632_v34  ;;  %1412 = vmatpush.bf16.msrb.mxu2 %v3051_v7  ;;  %v3050_v32 = vld [vmem:[%s4137_s2 + $0x160] sm:$0xff] }
  0x8c   : > { %v655_v48 = vpack.c.bf16 %v635_v37, %v635_v37  ;;  %v656_v49 = vpack.c.bf16 %v636_v38, %v636_v38  ;;  %v659_v50 = vpack.c.bf16 %v639_v39, %v639_v39  ;;  %v660_v51 = vpack.c.bf16 %v640_v40, %v640_v40  ;;  %1605 = vmatpush.bf16.msrb.mxu3 %v3011_v57  ;;  %v3010_v38 = vld [vmem:[%s4137_s2 + $0x20] sm:$0xff] }
  0x8d   : > { %v677_v53 = vunpack.c.l.b16 %v647_v43  ;;  %v747_v54 = vunpack.c.l.b16 %v648_v44  ;;  %v679_v55 = vunpack.c.l.b16 %v651_v45  ;;  %v749_v56 = vunpack.c.l.b16 %v652_v46  ;;  %1654 = vmatpush.bf16.msrb.mxu0 %v3019_v23  ;;  %v3042_v43 = vld [vmem:[%s4137_s2 + $0x120] sm:$0xff] }
  0x8e   : > { %v681_v60 = vunpack.c.l.b16 %v655_v48  ;;  %v751_v61 = vunpack.c.l.b16 %v656_v49  ;;  %v3550_v63 = vunpack.c.l.b16 %v659_v50  ;;  %v3560_v11 = vunpack.c.l.b16 %v660_v51  ;;  %v3018_v44 = vld [vmem:[%s4137_s2 + $0x60] sm:$0xff]  ;;  %1364 = vmatpush.bf16.msrb.mxu1 %v3042_v43 }
  0x8f   : > { %v687_v1 = vpack.c.b16 %v677_v53, %v677_v53  ;;  %v757_v2 = vpack.c.b16 %v747_v54, %v677_v53  ;;  %v857_v3 = vpack.c.b16 %v747_v54, %v747_v54  ;;  %v689_v4 = vpack.c.b16 %v679_v55, %v679_v55  ;;  %1413 = vmatpush.bf16.msrb.mxu2 %v3050_v32 }
  0x90   : > { %v759_v8 = vpack.c.b16 %v749_v56, %v679_v55  ;;  %v859_v9 = vpack.c.b16 %v749_v56, %v749_v56  ;;  %v761_v10 = vpack.c.b16 %v751_v61, %v681_v60  ;;  %v691_v14 = vpack.c.b16 %v681_v60, %v681_v60  ;;  %1606 = vmatpush.bf16.msrb.mxu3 %v3010_v38 }
  0x91   : > { %v768_v5 = vshrl.u32 %v757_v2, 16  ;;  %v771_v12 = vshll.u32 %v757_v2, 16  ;;  %v868_v13 = vshll.u32 %v857_v3, 16  ;;  %v698_v24 = vshrl.u32 %v687_v1, 16  ;;  %1655 = vmatpush.bf16.msrb.mxu0 %v3018_v44 }
  0x92   : > { %v782_v25 = vshrl.u32 %v759_v8, 16  ;;  %v785_v26 = vshll.u32 %v759_v8, 16  ;;  %v876_v27 = vshll.u32 %v859_v9, 16  ;;  %v704_v30 = vshrl.u32 %v689_v4, 16 }
  0x93   : > { %v770_v28 = vrot.slane %v768_v5, 7  ;;  %v870_v29 = vrot.slane %v868_v13, 3  ;;  %v796_v31 = vshrl.u32 %v761_v10, 16  ;;  %v799_v36 = vshll.u32 %v761_v10, 16 }
  0x94   : > { %v784_v34 = vrot.slane %v782_v25, 7  ;;  %v878_v35 = vrot.slane %v876_v27, 3  ;;  %v861_v37 = vpack.c.b16 %v751_v61, %v751_v61  ;;  %v710_v41 = vshrl.u32 %v691_v14, 16 }
  0x95   : > { %v773_v39 = vor.u32 %v771_v12, %v770_v28  ;;  %v3585_v40 = vsel %vm3576_vm6, %v770_v28, %v870_v29  ;;  %v798_v42 = vrot.slane %v796_v31, 7  ;;  %v693_v48 = vpack.c.b16 %v3550_v63, %v3550_v63 }
  0x96   : > { %v997_v45 = vshll.u32 %v3585_v40, 16  ;;  %v787_v46 = vor.u32 %v785_v26, %v784_v34  ;;  %v3596_v47 = vsel %vm3576_vm6, %v784_v34, %v878_v35  ;;  %v884_v52 = vshll.u32 %v861_v37, 16 }
  0x97   : > { %v3602_v49 = vsel %vm3576_vm6, %v698_v24, %v773_v39  ;;  %v1021_v50 = vshll.u32 %v3596_v47, 16  ;;  %v801_v51 = vor.u32 %v799_v36, %v798_v42  ;;  %v716_v3 = vshrl.u32 %v693_v48, 16 }
  0x98   : > { %v990_v53 = vshrl.u32 %v3602_v49, 16  ;;  %v992_v54 = vshll.u32 %v3602_v49, 16  ;;  %v999_v55 = vrot.slane %v997_v45, 1  ;;  %v3609_v56 = vsel %vm3576_vm6, %v704_v30, %v787_v46 }
  0x99   : > { %v1014_v58 = vshrl.u32 %v3609_v56, 16  ;;  %v1016_v59 = vshll.u32 %v3609_v56, 16  ;;  %v1023_v60 = vrot.slane %v1021_v50, 1  ;;  %v886_v61 = vrot.slane %v884_v52, 3 }
  0x9a   : > { %v994_v1 = vrot.slane %v992_v54, 1  ;;  %v3615_v2 = vsel %vm3576_vm6, %v710_v41, %v801_v51  ;;  %v763_v4 = vpack.c.b16 %v3560_v11, %v3550_v63  ;;  %v863_v23 = vpack.c.b16 %v3560_v11, %v3560_v11 }
  0x9b   : > { %v1018_v7 = vrot.slane %v1016_v59, 1  ;;  %v3621_v8 = vsel %vm3576_vm6, %v798_v42, %v886_v61  ;;  %v1038_v9 = vshrl.u32 %v3615_v2, 16  ;;  %v1040_v10 = vshll.u32 %v3615_v2, 16 }
  0x9c   : > { %v995_v57 = vor.u32 %v994_v1, %v990_v53  ;;  %v1045_v5 = vshll.u32 %v3621_v8, 16  ;;  %v810_v12 = vshrl.u32 %v763_v4, 16  ;;  %v813_v13 = vshll.u32 %v763_v4, 16 }
  0x9d   : > { %v1019_v14 = vor.u32 %v1018_v7, %v1014_v58  ;;  %v1042_v16 = vrot.slane %v1040_v10, 1  ;;  %v609_v63 = vadd.f32 %v3499_v15, %v3503_v17  ;;  %v610_v27 = vadd.f32 %v3499_v15, %v3507_v19 }
  0x9e   : > { %v1000_v24 = vsel %vm988_vm5, %v995_v57, %v999_v55  ;;  %v1047_v25 = vrot.slane %v1045_v5, 1  ;;  %v812_v26 = vrot.slane %v810_v12, 7  ;;  %v892_v30 = vshll.u32 %v863_v23, 16 }
  0x9f   : > { %1320 = vmatmul.bf16.vlgmr.msra.gmra.mxu0 %v1000_v24  ;;  %v3634_v28 = vsel %vm988_vm5, %v1019_v14, %v1023_v60  ;;  %v1043_v29 = vor.u32 %v1042_v16, %v1038_v9  ;;  %v629_v31 = vmax.f32 %v609_v63, 0.0  ;;  %v630_v32 = vmax.f32 %v610_v27, 0.0  ;;  %v3049_v27 = vld [vmem:[%s4137_s2 + $0x158] sm:$0xff] }
  0xa0   : > { %1330 = vmatmul.bf16.vlgmr.msra.gmra.mxu1 %v3634_v28  ;;  %v815_v11 = vor.u32 %v813_v13, %v812_v26  ;;  %v613_v17 = vadd.f32 %v3499_v15, %v3510_v20  ;;  %v614_v34 = vadd.f32 %v3499_v15, %v3513_v21  ;;  %v894_v19 = vrot.slane %v892_v30, 3  ;;  %v3041_v30 = vld [vmem:[%s4137_s2 + $0x118] sm:$0xff]  ;;  %1414 = vmatpush.bf16.msrb.mxu2 %v3049_v27  ;;  %v3046_v27 = vld [vmem:[%s4137_s2 + $0x140] sm:$0xff] }
  0xa1   : > { %v3642_v35 = vsel %vm988_vm5, %v1043_v29, %v1047_v25  ;;  %v649_v36 = vpack.c.bf16 %v629_v31, %v629_v31  ;;  %v617_v37 = vadd.f32 %v3499_v15, %v3516_v22  ;;  %v650_v39 = vpack.c.bf16 %v630_v32, %v630_v32  ;;  %v3009_v29 = vld [vmem:[%s4137_s2 + $0x18] sm:$0xff]  ;;  %1365 = vmatpush.bf16.msrb.mxu1 %v3041_v30 }
  0xa2   : > { %1340 = vmatmul.bf16.vlgmr.msra.gmra.mxu2 %v3642_v35  ;;  %v3649_v38 = vsel %vm3576_vm6, %v716_v3, %v815_v11  ;;  %v633_v41 = vmax.f32 %v613_v17, 0.0  ;;  %v634_v20 = vmax.f32 %v614_v34, 0.0  ;;  %v3653_v21 = vsel %vm3576_vm6, %v812_v26, %v894_v19  ;;  %v3017_v34 = vld [vmem:[%s4137_s2 + $0x58] sm:$0xff]  ;;  %1607 = vmatpush.bf16.msrb.mxu3 %v3009_v29 }
  0xa3   : > { %v1062_v42 = vshrl.u32 %v3649_v38, 16  ;;  %v1064_v43 = vshll.u32 %v3649_v38, 16  ;;  %v678_v44 = vunpack.c.l.b16 %v649_v36  ;;  %v1069_v22 = vshll.u32 %v3653_v21, 16  ;;  %1656 = vmatpush.bf16.msrb.mxu0 %v3017_v34  ;;  %v3038_v34 = vld [vmem:[%s4137_s2 + $0x100] sm:$0xff] }
  0xa4   : > { %v748_v45 = vunpack.c.l.b16 %v650_v39  ;;  %v653_v46 = vpack.c.bf16 %v633_v41, %v633_v41  ;;  %v654_v48 = vpack.c.bf16 %v634_v20, %v634_v20  ;;  %v618_v52 = vadd.f32 %v3499_v15, %v3555_v0  ;;  %v3048_v41 = vld [vmem:[%s4137_s2 + $0x150] sm:$0xff] }
  0xa5   : > { %v1066_v50 = vrot.slane %v1064_v43, 1  ;;  %v688_v51 = vpack.c.b16 %v678_v44, %v678_v44  ;;  %v637_v53 = vmax.f32 %v617_v37, 0.0  ;;  %v1071_v54 = vrot.slane %v1069_v22, 1  ;;  %v3008_v20 = vld [vmem:[%s4137_s2 + $0x10] sm:$0xff]  ;;  %1415 = vmatpush.bf16.msrb.mxu2 %v3048_v41 }
  0xa6   : > { %v758_v55 = vpack.c.b16 %v748_v45, %v678_v44  ;;  %v858_v58 = vpack.c.b16 %v748_v45, %v748_v45  ;;  %v680_v59 = vunpack.c.l.b16 %v653_v46  ;;  %v750_v61 = vunpack.c.l.b16 %v654_v48  ;;  %1608 = vmatpush.bf16.msrb.mxu3 %v3008_v20 }
  0xa7   : > { %v1067_v60 = vor.u32 %v1066_v50, %v1062_v42  ;;  %v638_v1 = vmax.f32 %v618_v52, 0.0  ;;  %v3109_v3 = vunpack.c.h.bf16 %v3490_v6  ;;  %v657_v0 = vpack.c.bf16 %v637_v53, %v637_v53  ;;  %v3040_v6 = vld [vmem:[%s4137_s2 + $0x110] sm:$0xff] }
  0xa8   : > { %v775_v4 = vshrl.u32 %v758_v55, 16  ;;  %v778_v7 = vshll.u32 %v758_v55, 16  ;;  %v872_v9 = vshll.u32 %v858_v58, 16  ;;  %v690_v10 = vpack.c.b16 %v680_v59, %v680_v59  ;;  %v3016_v50 = vld [vmem:[%s4137_s2 + $0x50] sm:$0xff]  ;;  %1366 = vmatpush.bf16.msrb.mxu1 %v3040_v6 }
  0xa9   : > { %v3662_v57 = vsel %vm988_vm5, %v1067_v60, %v1071_v54  ;;  %v760_v5 = vpack.c.b16 %v750_v61, %v680_v59  ;;  %v860_v12 = vpack.c.b16 %v750_v61, %v750_v61  ;;  %v701_v13 = vshrl.u32 %v688_v51, 16  ;;  %v3047_v61 = vld [vmem:[%s4137_s2 + $0x148] sm:$0xff]  ;;  %1657 = vmatpush.bf16.msrb.mxu0 %v3016_v50  ;;  %v3061_v50 = vld [vmem:[%s4137_s2 + $0x1b8] sm:$0xff] }
  0xaa   : > { %1350 = vmatmul.bf16.vlgmr.msra.gmra.mxu3 %v3662_v57  ;;  %v777_v14 = vrot.slane %v775_v4, 7  ;;  %v874_v16 = vrot.slane %v872_v9, 3  ;;  %v658_v23 = vpack.c.bf16 %v638_v1, %v638_v1  ;;  %v682_v26 = vunpack.c.l.b16 %v657_v0  ;;  %v3007_v1 = vld [vmem:[%s4137_s2 + $0x8] sm:$0xff]  ;;  %1416 = vmatpush.bf16.msrb.mxu2 %v3047_v61 }
  0xab   : > { %v789_v63 = vshrl.u32 %v760_v5, 16  ;;  %v792_v24 = vshll.u32 %v760_v5, 16  ;;  %v880_v25 = vshll.u32 %v860_v12, 16  ;;  %v707_v32 = vshrl.u32 %v690_v10, 16  ;;  %v3039_v5 = vld [vmem:[%s4137_s2 + $0x108] sm:$0xff]  ;;  %1609 = vmatpush.bf16.msrb.mxu3 %v3007_v1 }
  0xac   : > { %v780_v31 = vor.u32 %v778_v7, %v777_v14  ;;  %v3676_v11 = vsel %vm3576_vm6, %v777_v14, %v874_v16  ;;  %v752_v17 = vunpack.c.l.b16 %v658_v23  ;;  %v595_v39 = vmul.f32 %v3108_v18, %v3485_v62  ;;  %v3015_v14 = vld [vmem:[%s4137_s2 + $0x48] sm:$0xff]  ;;  %1367 = vmatpush.bf16.msrb.mxu1 %v3039_v5 }
  0xad   : > { %v1009_v19 = vshll.u32 %v3676_v11, 16  ;;  %v791_v36 = vrot.slane %v789_v63, 7  ;;  %v882_v37 = vrot.slane %v880_v25, 3  ;;  %v692_v43 = vpack.c.b16 %v682_v26, %v682_v26  ;;  %1658 = vmatpush.bf16.msrb.mxu0 %v3015_v14 }
  0xae   : > { %v3693_v42 = vsel %vm3576_vm6, %v701_v13, %v780_v31  ;;  %v762_v44 = vpack.c.b16 %v752_v17, %v682_v26  ;;  %v862_v22 = vpack.c.b16 %v752_v17, %v752_v17  ;;  %v596_v10 = vmul.f32 %v3109_v3, %v3485_v62  ;;  %v3006_v17 = vld [vmem:[%s4137_s2] sm:$0xff]  ;;  %1417 = vmatpush.bf16.msrb.mxu2 %v3046_v27  ;;  %v3028_v27 = vld [vmem:[%s4137_s2 + $0xb0] sm:$0xff] }
  0xaf   : > { %v1002_v18 = vshrl.u32 %v3693_v42, 16  ;;  %v1004_v45 = vshll.u32 %v3693_v42, 16  ;;  %v1011_v46 = vrot.slane %v1009_v19, 1  ;;  %v794_v48 = vor.u32 %v792_v24, %v791_v36  ;;  %1610 = vmatpush.bf16.msrb.mxu3 %v3006_v17  ;;  %v3075_v17 = vld [vmem:[%s4137_s2 + $0x228] sm:$0xff] }
  0xb0   : > { %v3705_v51 = vsel %vm3576_vm6, %v791_v36, %v882_v37  ;;  %v713_v52 = vshrl.u32 %v692_v43, 16  ;;  %v803_v53 = vshrl.u32 %v762_v44, 16  ;;  %v806_v54 = vshll.u32 %v762_v44, 16  ;;  %1368 = vmatpush.bf16.msrb.mxu1 %v3038_v34  ;;  %v3066_v34 = vld [vmem:[%s4137_s2 + $0x1e0] sm:$0xff] }
  0xb1   : > { %v1006_v55 = vrot.slane %v1004_v45, 1  ;;  %v3709_v58 = vsel %vm3576_vm6, %v707_v32, %v794_v48  ;;  %v1033_v59 = vshll.u32 %v3705_v51, 16  ;;  %v888_v60 = vshll.u32 %v862_v22, 16 }
  0xb2   : > { %v1026_v4 = vshrl.u32 %v3709_v58, 16  ;;  %v1028_v7 = vshll.u32 %v3709_v58, 16  ;;  %v805_v9 = vrot.slane %v803_v53, 7  ;;  %v621_v13 = vadd.f32 %v3499_v15, %v595_v39  ;;  %v3014_v39 = vld [vmem:[%s4137_s2 + $0x40] sm:$0xff]  ;;  %v3029_v53 = vld [vmem:[%s4137_s2 + $0xb8] sm:$0xff]  ;;  %2004 = vmatpush.bf16.msra.mxu2 %v3061_v50 }
  0xb3   : > { %v1007_v12 = vor.u32 %v1006_v55, %v1002_v18  ;;  %v890_v0 = vrot.slane %v888_v60, 3  ;;  %v1035_v23 = vrot.slane %v1033_v59, 1  ;;  %v622_v24 = vadd.f32 %v3499_v15, %v596_v10  ;;  %1659 = vmatpush.bf16.msrb.mxu0 %v3014_v39  ;;  %v3077_v55 = vld [vmem:[%s4137_s2 + $0x238] sm:$0xff] }
  0xb4   : > { %v1030_v16 = vrot.slane %v1028_v7, 1  ;;  %v808_v63 = vor.u32 %v806_v54, %v805_v9  ;;  %v641_v26 = vmax.f32 %v621_v13, 0.0  ;;  %1701 = vmatpush.bf16.msra.mxu1 %v3029_v53  ;;  %v3065_v39 = vld [vmem:[%s4137_s2 + $0x1d8] sm:$0xff] }
  0xb5   : > { %v1012_v3 = vsel %vm988_vm5, %v1007_v12, %v1011_v46  ;;  %v3732_v25 = vsel %vm3576_vm6, %v805_v9, %v890_v0  ;;  %v642_v32 = vmax.f32 %v622_v24, 0.0  ;;  %v3060_v24 = vld [vmem:[%s4137_s2 + $0x1b0] sm:$0xff] }
  0xb6   : > { %1325 = vmatmul.bf16.gmra.mxu0 %v1012_v3  ;;  %v1031_v29 = vor.u32 %v1030_v16, %v1026_v4  ;;  %v3739_v30 = vsel %vm3576_vm6, %v713_v52, %v808_v63  ;;  %v1057_v31 = vshll.u32 %v3732_v25, 16  ;;  %v661_v37 = vpack.c.bf16 %v641_v26, %v641_v26  ;;  %v3069_v52 = vld [vmem:[%s4137_s2 + $0x1f8] sm:$0xff]  ;;  %v3068_v26 = vld [vmem:[%s4137_s2 + $0x1f0] sm:$0xff]  ;;  %2005 = vmatpush.bf16.msra.mxu2 %v3060_v24 }
  0xb7   : > { %v1050_v19 = vshrl.u32 %v3739_v30, 16  ;;  %v1052_v36 = vshll.u32 %v3739_v30, 16  ;;  %v662_v20 = vpack.c.bf16 %v642_v32, %v642_v32  ;;  %2053 = vmatpush.bf16.msra.mxu3 %v3069_v52  ;;  %2102 = vmatpush.bf16.msra.mxu0 %v3077_v55  ;;  %v3027_v32 = vld [vmem:[%s4137_s2 + $0xa8] sm:$0xff] }
  0xb8   : > { %v3754_v41 = vsel %vm988_vm5, %v1031_v29, %v1035_v23  ;;  %v1059_v44 = vrot.slane %v1057_v31, 1  ;;  %v684_v22 = vunpack.c.l.b16 %v661_v37  ;;  %1702 = vmatpush.bf16.msra.mxu1 %v3028_v27  ;;  %v3059_v29 = vld [vmem:[%s4137_s2 + $0x1a8] sm:$0xff]  ;;  %v3057_v37 = vld [vmem:[%s4137_s2 + $0x198] sm:$0xff] }
  0xb9   : > { %1335 = vmatmul.bf16.gmra.mxu1 %v3754_v41  ;;  %v1054_v43 = vrot.slane %v1052_v36, 1  ;;  %v754_v6 = vunpack.c.l.b16 %v662_v20  ;;  %v3067_v31 = vld [vmem:[%s4137_s2 + $0x1e8] sm:$0xff]  ;;  %v3074_v36 = vld [vmem:[%s4137_s2 + $0x220] sm:$0xff]  ;;  %v3073_v20 = vld [vmem:[%s4137_s2 + $0x218] sm:$0xff] }
  0xba   : > { %v694_v45 = vpack.c.b16 %v684_v22, %v684_v22  ;;  %2006 = vmatpush.bf16.msra.mxu2 %v3059_v29 }
  0xbb   : > { %v1055_v18 = vor.u32 %v1054_v43, %v1050_v19  ;;  %v764_v46 = vpack.c.b16 %v754_v6, %v684_v22  ;;  %v864_v48 = vpack.c.b16 %v754_v6, %v754_v6  ;;  %2054 = vmatpush.bf16.msra.mxu3 %v3068_v26  ;;  %v3026_v19 = vld [vmem:[%s4137_s2 + $0xa0] sm:$0xff] }
  0xbc   : > { %v719_v1 = vshrl.u32 %v694_v45, 16  ;;  %1703 = vmatpush.bf16.msra.mxu1 %v3027_v32 }
  0xbd   : > { %v3767_v54 = vsel %vm988_vm5, %v1055_v18, %v1059_v44  ;;  %v817_v59 = vshrl.u32 %v764_v46, 16  ;;  %v820_v60 = vshll.u32 %v764_v46, 16  ;;  %v896_v61 = vshll.u32 %v864_v48, 16 }
  0xbe   : > { %1345 = vmatmul.bf16.gmra.mxu2 %v3767_v54 }
  0xbf   : > { %v819_v4 = vrot.slane %v817_v59, 7  ;;  %v898_v7 = vrot.slane %v896_v61, 3  ;;  %2055 = vmatpush.bf16.msra.mxu3 %v3067_v31  ;;  %v3056_v59 = vld [vmem:[%s4137_s2 + $0x190] sm:$0xff] }
  0xc0   : > { %1704 = vmatpush.bf16.msra.mxu1 %v3026_v19  ;;  %v3024_v61 = vld [vmem:[%s4137_s2 + $0x90] sm:$0xff] }
  0xc1   : > { %v822_v9 = vor.u32 %v820_v60, %v819_v4  ;;  %v3775_v10 = vsel %vm3576_vm6, %v819_v4, %v898_v7  ;;  %v3064_v60 = vld [vmem:[%s4137_s2 + $0x1d0] sm:$0xff]  ;;  %v3166_v4 = vld [vmem:[%s3473_s27 + $0x48] sm:$0xff]  }
  0xc2   : > { %v1081_v5 = vshll.u32 %v3775_v10, 16 }
  0xc3   : > { %v3780_v12 = vsel %vm3576_vm6, %v719_v1, %v822_v9  ;;  %2056 = vmatpush.bf16.msra.mxu3 %v3066_v34  ;;  %v3116_v9 = vunpack.c.l.bf16 %v3166_v4 }
  0xc4   : > { %v1074_v0 = vshrl.u32 %v3780_v12, 16  ;;  %v1076_v13 = vshll.u32 %v3780_v12, 16  ;;  %v1083_v16 = vrot.slane %v1081_v5, 1  ;;  %v3117_v5 = vunpack.c.h.bf16 %v3166_v4 }
  0xc6   : > { %1660 = vmatmul.bf16.vlgmr.msrb.gmra.mxu0 %v3693_v42  ;;  %v1078_v14 = vrot.slane %v1076_v13, 1  ;;  %v600_v13 = vmul.f32 %v3117_v5, %v3485_v62 }
  0xc7   : > { %2057 = vmatpush.bf16.msra.mxu3 %v3065_v39  ;;  %v3063_v39 = vld [vmem:[%s4137_s2 + $0x1c8] sm:$0xff] }
  0xc8   : > { %v1079_v23 = vor.u32 %v1078_v14, %v1074_v0  ;;  %v599_v0 = vmul.f32 %v3116_v9, %v3485_v62  ;;  %v626_v27 = vadd.f32 %v3499_v15, %v600_v13 }
  0xc9   : > { %1369 = vmatmul.bf16.vlgmr.msrb.gmra.mxu1 %v1012_v3  ;;  %v3076_v3 = vld [vmem:[%s4137_s2 + $0x230] sm:$0xff] }
  0xca   : > { %v3786_v63 = vsel %vm988_vm5, %v1079_v23, %v1083_v16  ;;  %2103 = vmatpush.bf16.msra.mxu0 %v3076_v3  ;;  %v625_v26 = vadd.f32 %v3499_v15, %v599_v0  ;;  %v646_v29 = vmax.f32 %v626_v27, 0.0  ;;  %v3054_v0 = vld [vmem:[%s4137_s2 + $0x180] sm:$0xff] }
  0xcb   : > { %1355 = vmatmul.bf16.gmra.mxu3 %v3786_v63 }
  0xcc   : > { %2058 = vmatpush.bf16.msra.mxu3 %v3064_v60  ;;  %v645_v3 = vmax.f32 %v625_v26, 0.0  ;;  %v666_v34 = vpack.c.bf16 %v646_v29, %v646_v29 }
  0xce   : > { %1418 = vmatmul.bf16.vlgmr.msrb.gmra.mxu2 %v3634_v28  ;;  %2104 = vmatpush.bf16.msra.mxu0 %v3075_v17  ;;  %v756_v19 = vunpack.c.l.b16 %v666_v34 }
  0xd0   : > { %2059 = vmatpush.bf16.msra.mxu3 %v3063_v39 }
  0xd2   : > { %2105 = vmatpush.bf16.msra.mxu0 %v3074_v36 }
  0xd6   : > { %1665 = vmatmul.bf16.gmra.mxu0 %v3609_v56 }
  0xd7   : > { %2106 = vmatpush.bf16.msra.mxu0 %v3073_v20  ;;  %v3071_v20 = vld [vmem:[%s4137_s2 + $0x208] sm:$0xff] }
  0xd9   : > { %1374 = vmatmul.bf16.gmra.mxu1 %v3634_v28  ;;  %v3058_v28 = vld [vmem:[%s4137_s2 + $0x1a0] sm:$0xff] }
  0xda   : > { %2007 = vmatpush.bf16.msra.mxu2 %v3058_v28  ;;  %v665_v28 = vpack.c.bf16 %v645_v3, %v645_v3 }
  0xdb   : > { %1611 = vmatmul.bf16.vlgmr.msrb.gmra.mxu3 %v3602_v49 }
  0xde   : > { %1423 = vmatmul.bf16.gmra.mxu2 %v3754_v41 }
  0xdf   : > { %2008 = vmatpush.bf16.msra.mxu2 %v3057_v37 }
  0xe3   : > { %2009 = vmatpush.bf16.msra.mxu2 %v3056_v59 }
  0xe6   : > { %1670 = vmatmul.bf16.gmra.mxu0 %v3709_v58 }
  0xe9   : > { %1379 = vmatmul.bf16.gmra.mxu1 %v3754_v41  ;;  %v3025_v41 = vld [vmem:[%s4137_s2 + $0x98] sm:$0xff] }
  0xea   : > { %1705 = vmatpush.bf16.msra.mxu1 %v3025_v41 }
  0xeb   : > { %1616 = vmatmul.bf16.gmra.mxu3 %v3693_v42 }
  0xee   : > { %1428 = vmatmul.bf16.gmra.mxu2 %v3642_v35  ;;  %1706 = vmatpush.bf16.msra.mxu1 %v3024_v61 }
  0xf6   : > { %1675 = vmatmul.bf16.gmra.mxu0 %v3615_v2 }
  0xf9   : > { %1384 = vmatmul.bf16.gmra.mxu1 %v3642_v35  ;;  %v3165_v35 = vld [vmem:[%s3473_s27 + $0x40] sm:$0xff]  }
  0xfa   : > { %v3112_v43 = vunpack.c.l.bf16 %v3165_v35  ;;  %v3113_v44 = vunpack.c.h.bf16 %v3165_v35 }
  0xfb   : > { %1621 = vmatmul.bf16.gmra.mxu3 %v3609_v56 }
  0xfc   : > { %v597_v22 = vmul.f32 %v3112_v43, %v3485_v62  ;;  %v598_v6 = vmul.f32 %v3113_v44, %v3485_v62  ;;  %v686_v62 = vunpack.c.l.b16 %v665_v28 }
  0xfe   : > { %1433 = vmatmul.bf16.gmra.mxu2 %v3767_v54  ;;  %v623_v18 = vadd.f32 %v3499_v15, %v597_v22  ;;  %v624_v45 = vadd.f32 %v3499_v15, %v598_v6  ;;  %v3055_v15 = vld [vmem:[%s4137_s2 + $0x188] sm:$0xff]  ;;  %v766_v41 = vpack.c.b16 %v756_v19, %v686_v62 }
  0xff   : > { %2010 = vmatpush.bf16.msra.mxu2 %v3055_v15  ;;  %v1778_v15 = vrot.slane %v3596_v47, 1 }
 0x100   : > { %v643_v46 = vmax.f32 %v623_v18, 0.0  ;;  %v644_v48 = vmax.f32 %v624_v45, 0.0  ;;  %v831_v22 = vshrl.u32 %v766_v41, 16 }
 0x102   : > { %v663_v50 = vpack.c.bf16 %v643_v46, %v643_v46  ;;  %v664_v52 = vpack.c.bf16 %v644_v48, %v644_v48  ;;  %v696_v48 = vpack.c.b16 %v686_v62, %v686_v62 }
 0x103   : > { %2011 = vmatpush.bf16.msra.mxu2 %v3054_v0 }
 0x104   : > { %v685_v53 = vunpack.c.l.b16 %v663_v50  ;;  %v755_v55 = vunpack.c.l.b16 %v664_v52  ;;  %v833_v50 = vrot.slane %v831_v22, 7  ;;  %v834_v52 = vshll.u32 %v766_v41, 16 }
 0x105   : > { %v725_v60 = vshrl.u32 %v696_v48, 16  ;;  %v1772_v22 = vrot.slane %v3585_v40, 1  ;;  %v1780_v40 = vrot.slane %v3709_v58, 1 }
 0x106   : > { %1680 = vmatmul.bf16.gmra.mxu0 %v3739_v30  ;;  %v765_v1 = vpack.c.b16 %v755_v55, %v685_v53  ;;  %v695_v14 = vpack.c.b16 %v685_v53, %v685_v53  ;;  %v865_v16 = vpack.c.b16 %v755_v55, %v755_v55  ;;  %v866_v53 = vpack.c.b16 %v756_v19, %v756_v19 }
 0x107   : > { %v836_v61 = vor.u32 %v834_v52, %v833_v50 }
 0x108   : > { %v824_v7 = vshrl.u32 %v765_v1, 16  ;;  %v827_v24 = vshll.u32 %v765_v1, 16  ;;  %v722_v31 = vshrl.u32 %v695_v14, 16  ;;  %v900_v17 = vshll.u32 %v865_v16, 16  ;;  %v3022_v16 = vld [vmem:[%s4137_s2 + $0x80] sm:$0xff] }
 0x109   : > { %1389 = vmatmul.bf16.gmra.mxu1 %v3767_v54  ;;  %v3072_v54 = vld [vmem:[%s4137_s2 + $0x210] sm:$0xff]  ;;  %v904_v1 = vshll.u32 %v866_v53, 16  ;;  %v3915_v5 = vsel %vm3576_vm6, %v725_v60, %v836_v61  ;;  %v1774_v61 = vrot.slane %v3693_v42, 1  ;;  %v1784_v42 = vrot.slane %v3621_v8, 1 }
 0x10a   : > { %2107 = vmatpush.bf16.msra.mxu0 %v3072_v54  ;;  %v826_v23 = vrot.slane %v824_v7, 7  ;;  %v902_v36 = vrot.slane %v900_v17, 3  ;;  %v1100_v14 = vshll.u32 %v3915_v5, 16  ;;  %v1098_v27 = vshrl.u32 %v3915_v5, 16 }
 0x10b   : > { %1626 = vmatmul.bf16.gmra.mxu3 %v3709_v58  ;;  %v906_v9 = vrot.slane %v904_v1, 3 }
 0x10c   : > { %v829_v32 = vor.u32 %v827_v24, %v826_v23  ;;  %v3901_v44 = vsel %vm3576_vm6, %v826_v23, %v902_v36  ;;  %v3070_v23 = vld [vmem:[%s4137_s2 + $0x200] sm:$0xff]  ;;  %v1102_v3 = vrot.slane %v1100_v14, 1  ;;  %v1777_v36 = vrot.slane %v3609_v56, 1 }
 0x10d   : > { %v1093_v46 = vshll.u32 %v3901_v44, 16  ;;  %v3934_v24 = vsel %vm3576_vm6, %v833_v50, %v906_v9 }
 0x10e   : > { %1438 = vmatmul.bf16.gmra.mxu2 %v3662_v57  ;;  %v3881_v37 = vsel %vm3576_vm6, %v722_v31, %v829_v32  ;;  %2108 = vmatpush.bf16.msra.mxu0 %v3071_v20  ;;  %v1105_v29 = vshll.u32 %v3934_v24, 16  ;;  %v1103_v17 = vor.u32 %v1102_v3, %v1098_v27  ;;  %v1779_v41 = vsel %vm1770_vm7, %v1777_v36, %v1778_v15 }
 0x10f   : > { %v1088_v43 = vshll.u32 %v3881_v37, 16  ;;  %v1086_v18 = vshrl.u32 %v3881_v37, 16  ;;  %v1095_v59 = vrot.slane %v1093_v46, 1 }
 0x110   : > { %v1107_v28 = vrot.slane %v1105_v29, 1 }
 0x111   : > { %v1090_v45 = vrot.slane %v1088_v43, 1 }
 0x112   : > { %2109 = vmatpush.bf16.msra.mxu0 %v3070_v23  ;;  %v1108_v34 = vsel %vm988_vm5, %v1103_v17, %v1107_v28 }
 0x113   : > { %v1091_v55 = vor.u32 %v1090_v45, %v1086_v18  ;;  %v1771_v45 = vrot.slane %v3602_v49, 1 }
 0x115   : > { %v1096_v4 = vsel %vm988_vm5, %v1091_v55, %v1095_v59  ;;  %v1773_v47 = vsel %vm1770_vm7, %v1771_v45, %v1772_v22  ;;  %v1786_v45 = vrot.slane %v3739_v30, 1 }
 0x116   : > { %1685 = vmatmul.bf16.gmra.mxu0 %v3649_v38 }
 0x119   : > { %1394 = vmatmul.bf16.gmra.mxu1 %v3662_v57  ;;  %v3023_v57 = vld [vmem:[%s4137_s2 + $0x88] sm:$0xff] }
 0x11a   : > { %1707 = vmatpush.bf16.msra.mxu1 %v3023_v57 }
 0x11b   : > { %1631 = vmatmul.bf16.gmra.mxu3 %v3615_v2 }
 0x11c   : > { %v3896_v35 = vpop.f32.mrf.mxu0 }
 0x11d   : > { %v3903_v6 = vpop.f32.mrf.mxu1 }
 0x11e   : > { %1443 = vmatmul.bf16.gmra.mxu2 %v3786_v63  ;;  %1708 = vmatpush.bf16.msra.mxu1 %v3022_v16 }
 0x124   : > { %v1323_v54 = vpop.f32.mrf.mxu0 }
 0x125   : > { %v3911_v7 = vpop.f32.mrf.mxu1  ;;  %v3923_v13 = vpop.f32.mrf.mxu2 }
 0x126   : > { %1690 = vmatmul.bf16.gmra.mxu0 %v3780_v12 }
 0x129   : > { %1399 = vmatmul.bf16.gmra.mxu1 %v3786_v63  ;;  %v3062_v63 = vld [vmem:[%s4137_s2 + $0x1c0] sm:$0xff] }
 0x12a   : > { %2060 = vmatpush.bf16.msra.mxu3 %v3062_v63 }
 0x12b   : > { %1636 = vmatmul.bf16.gmra.mxu3 %v3739_v30 }
 0x12d   : > { %v3941_v32 = vpop.f32.mrf.mxu2  ;;  %v3943_v33 = vpop.f32.mrf.mxu3 }
 0x12e   : > { %1448 = vmatmul.bf16.gmra.mxu2 %v1096_v4 }
 0x133   : > { %v1326_v26 = vpop.f32.mrf.mxu0 }
 0x135   : > { %v3954_v20 = vpop.f32.mrf.mxu3 }
 0x136   : > { %v3938_v31 = vpop.f32.mrf.mxu1  ;;  %1695 = vmatmul.bf16.gmra.mxu0 %v3881_v37 }
 0x139   : > { %1404 = vmatmul.bf16.gmra.mxu1 %v1096_v4 }
 0x13b   : > { %v1328_v62 = vpop.f32.mrf.mxu0  ;;  %1641 = vmatmul.bf16.gmra.mxu3 %v3649_v38 }
 0x13e   : > { %1453 = vmatmul.bf16.gmra.mxu2 %v1108_v34  ;;  %v3947_v19 = vpop.f32.mrf.mxu1 }
 0x141   : > { %v3951_v39 = vpop.f32.mrf.mxu2 }
 0x143   : > { %v1661_v57 = vpop.f32.mrf.mxu0 }
 0x146   : > { %v1370_v43 = vpop.f32.mrf.mxu1  ;;  %2110 = vmatmul.bf16.vlgmr.msra.gmra.mxu0 %v1779_v41 }
 0x147   : > { %v1371_v18 = vadd.f32 %v1370_v43, %v3896_v35  ;;  %v1781_v35 = vrot.slane %v3705_v51, 1 }
 0x149   : > { %v3959_v46 = vpop.f32.mrf.mxu2  ;;  %1709 = vmatmul.bf16.vlgmr.msra.gmra.mxu1 %v3609_v56  ;;  %v1782_v60 = vsel %vm1770_vm7, %v1780_v40, %v1781_v35  ;;  %v1775_v56 = vrot.slane %v3676_v11, 1  ;;  %v1783_v11 = vrot.slane %v3615_v2, 1 }
 0x14b   : > { %v1663_v48 = vpop.f32.mrf.mxu0  ;;  %1646 = vmatmul.bf16.gmra.mxu3 %v3780_v12  ;;  %v1785_v28 = vsel %vm1770_vm7, %v1783_v11, %v1784_v42 }
 0x14e   : > { %2012 = vmatmul.bf16.vlgmr.msra.gmra.mxu2 %v1773_v47  ;;  %v1372_v50 = vpop.f32.mrf.mxu1  ;;  %v3964_v52 = vpop.f32.mrf.mxu3  ;;  %v1787_v47 = vrot.slane %v3732_v25, 1 }
 0x14f   : > { %v1373_v53 = vadd.f32 %v1372_v50, %v1323_v54  ;;  %v1776_v54 = vsel %vm1770_vm7, %v1774_v61, %v1775_v56 }
 0x151   : > { %v1419_v55 = vpop.f32.mrf.mxu2 }
 0x152   : > { %v1420_v49 = vadd.f32 %v1419_v55, %v1371_v18  ;;  %v1788_v55 = vsel %vm1770_vm7, %v1786_v45, %v1787_v47 }
 0x153   : > { %v1666_v59 = vpop.f32.mrf.mxu0 }
 0x156   : > { %v1375_v1 = vpop.f32.mrf.mxu1  ;;  %2115 = vmatmul.bf16.gmra.mxu0 %v1782_v60  ;;  %v3971_v4 = vpop.f32.mrf.mxu3 }
 0x157   : > { %v1376_v9 = vadd.f32 %v1375_v1, %v1326_v26 }
 0x159   : > { %v1421_v0 = vpop.f32.mrf.mxu2  ;;  %1714 = vmatmul.bf16.gmra.mxu1 %v3709_v58 }
 0x15a   : > { %v1422_v51 = vadd.f32 %v1421_v0, %v1373_v53  ;;  %v1789_v0 = vrot.slane %v3649_v38, 1 }
 0x15b   : > { %v1668_v63 = vpop.f32.mrf.mxu0  ;;  %2061 = vmatmul.bf16.vlgmr.msra.gmra.mxu3 %v1776_v54 }
 0x15e   : > { %2017 = vmatmul.bf16.gmra.mxu2 %v1776_v54  ;;  %v1377_v14 = vpop.f32.mrf.mxu1  ;;  %v1612_v16 = vpop.f32.mrf.mxu3 }
 0x15f   : > { %v1378_v23 = vadd.f32 %v1377_v14, %v1328_v62  ;;  %v1613_v27 = vadd.f32 %v1612_v16, %v1420_v49 }
 0x161   : > { %v1424_v3 = vpop.f32.mrf.mxu2  ;;  %v3977_v26 = vadd.f32 %v1661_v57, %v1613_v27 }
 0x162   : > { %v1425_v29 = vadd.f32 %v1424_v3, %v1376_v9 }
 0x163   : > { %v1671_v17 = vpop.f32.mrf.mxu0 }
 0x166   : > { %v1380_v58 = vpop.f32.mrf.mxu1  ;;  %2120 = vmatmul.bf16.gmra.mxu0 %v1785_v28  ;;  %v1614_v34 = vpop.f32.mrf.mxu3 }
 0x167   : > { %v1615_v36 = vadd.f32 %v1614_v34, %v1422_v51  ;;  %v1381_v53 = vadd.f32 %v1380_v58, %v3903_v6  ;;  %v1790_v51 = vrot.slane %v3653_v21, 1  ;;  %v1793_v34 = vrot.slane %v3775_v10, 1 }
 0x169   : > { %v1426_v15 = vpop.f32.mrf.mxu2  ;;  %1719 = vmatmul.bf16.gmra.mxu1 %v3615_v2  ;;  %v3981_v43 = vadd.f32 %v1663_v48, %v1615_v36 }
 0x16a   : > { %v1427_v62 = vadd.f32 %v1426_v15, %v1378_v23 }
 0x16b   : > { %v1673_v22 = vpop.f32.mrf.mxu0  ;;  %2066 = vmatmul.bf16.gmra.mxu3 %v1779_v41 }
 0x16e   : > { %2022 = vmatmul.bf16.gmra.mxu2 %v1779_v41  ;;  %v1382_v8 = vpop.f32.mrf.mxu1  ;;  %v1617_v18 = vpop.f32.mrf.mxu3 }
 0x16f   : > { %v1383_v57 = vadd.f32 %v1382_v8, %v3911_v7  ;;  %v1618_v50 = vadd.f32 %v1617_v18, %v1425_v29 }
 0x171   : > { %v1429_v40 = vpop.f32.mrf.mxu2  ;;  %v3987_v2 = vadd.f32 %v1666_v59, %v1618_v50 }
 0x172   : > { %v1430_v35 = vadd.f32 %v1429_v40, %v1381_v53 }
 0x173   : > { %v1676_v48 = vpop.f32.mrf.mxu0 }
 0x176   : > { %v1385_v49 = vpop.f32.mrf.mxu1  ;;  %2125 = vmatmul.bf16.gmra.mxu0 %v1788_v55  ;;  %v1619_v41 = vpop.f32.mrf.mxu3 }
 0x177   : > { %v1386_v56 = vadd.f32 %v1385_v49, %v3938_v31  ;;  %v1620_v7 = vadd.f32 %v1619_v41, %v1427_v62  ;;  %v1796_v49 = vrot.slane %v3901_v44, 1 }
 0x179   : > { %v1431_v61 = vpop.f32.mrf.mxu2  ;;  %1724 = vmatmul.bf16.gmra.mxu1 %v3739_v30  ;;  %v3992_v1 = vadd.f32 %v1668_v63, %v1620_v7  ;;  %v1791_v63 = vsel %vm1770_vm7, %v1789_v0, %v1790_v51 }
 0x17a   : > { %v1432_v25 = vadd.f32 %v1431_v61, %v1383_v57 }
 0x17b   : > { %v1678_v6 = vpop.f32.mrf.mxu0  ;;  %2071 = vmatmul.bf16.gmra.mxu3 %v1782_v60 }
 0x17e   : > { %2027 = vmatmul.bf16.gmra.mxu2 %v1782_v60  ;;  %v1387_v59 = vpop.f32.mrf.mxu1  ;;  %v1622_v9 = vpop.f32.mrf.mxu3 }
 0x17f   : > { %v1388_v54 = vadd.f32 %v1387_v59, %v3947_v19  ;;  %v1623_v14 = vadd.f32 %v1622_v9, %v1430_v35 }
 0x181   : > { %v1434_v31 = vpop.f32.mrf.mxu2  ;;  %v3997_v23 = vadd.f32 %v1671_v17, %v1623_v14  ;;  %v1792_v17 = vrot.slane %v3780_v12, 1 }
 0x182   : > { %v1435_v16 = vadd.f32 %v1434_v31, %v1386_v56  ;;  %v1798_v31 = vrot.slane %v3915_v5, 1 }
 0x183   : > { %v1681_v30 = vpop.f32.mrf.mxu0 }
 0x186   : > { %v1390_v11 = vpop.f32.mrf.mxu1  ;;  %2130 = vmatmul.bf16.gmra.mxu0 %v1791_v63  ;;  %v1624_v42 = vpop.f32.mrf.mxu3 }
 0x187   : > { %v1625_v60 = vadd.f32 %v1624_v42, %v1432_v25  ;;  %v1391_v15 = vadd.f32 %v1390_v11, %v3923_v13 }
 0x189   : > { %v1436_v27 = vpop.f32.mrf.mxu2  ;;  %1729 = vmatmul.bf16.gmra.mxu1 %v3649_v38  ;;  %v4001_v3 = vadd.f32 %v1673_v22, %v1625_v60  ;;  %v1794_v22 = vsel %vm1770_vm7, %v1792_v17, %v1793_v34 }
 0x18a   : > { %v1437_v19 = vadd.f32 %v1436_v27, %v1388_v54 }
 0x18b   : > { %v1683_v29 = vpop.f32.mrf.mxu0  ;;  %2076 = vmatmul.bf16.gmra.mxu3 %v1785_v28 }
 0x18e   : > { %2032 = vmatmul.bf16.gmra.mxu2 %v1785_v28  ;;  %v1392_v21 = vpop.f32.mrf.mxu1  ;;  %v1627_v58 = vpop.f32.mrf.mxu3 }
 0x18f   : > { %v1628_v36 = vadd.f32 %v1627_v58, %v1435_v16  ;;  %v1393_v47 = vadd.f32 %v1392_v21, %v3941_v32  ;;  %v1799_v16 = vrot.slane %v3934_v24, 1 }
 0x191   : > { %v1439_v62 = vpop.f32.mrf.mxu2  ;;  %v4006_v18 = vadd.f32 %v1676_v48, %v1628_v36  ;;  %v1795_v48 = vrot.slane %v3881_v37, 1  ;;  %v1800_v27 = vsel %vm1770_vm7, %v1798_v31, %v1799_v16 }
 0x192   : > { %v1440_v8 = vadd.f32 %v1439_v62, %v1391_v15 }
 0x193   : > { %v1686_v38 = vpop.f32.mrf.mxu0  ;;  %v1797_v25 = vsel %vm1770_vm7, %v1795_v48, %v1796_v49 }
 0x196   : > { %v1395_v57 = vpop.f32.mrf.mxu1  ;;  %2135 = vmatmul.bf16.gmra.mxu0 %v1794_v22  ;;  %v1629_v45 = vpop.f32.mrf.mxu3 }
 0x197   : > { %v1630_v28 = vadd.f32 %v1629_v45, %v1437_v19  ;;  %v1396_v56 = vadd.f32 %v1395_v57, %v3951_v39 }
 0x199   : > { %v1441_v50 = vpop.f32.mrf.mxu2  ;;  %1734 = vmatmul.bf16.gmra.mxu1 %v3780_v12  ;;  %v4011_v53 = vadd.f32 %v1678_v6, %v1630_v28 }
 0x19a   : > { %v1442_v10 = vadd.f32 %v1441_v50, %v1393_v47 }
 0x19b   : > { %v1688_v13 = vpop.f32.mrf.mxu0  ;;  %2081 = vmatmul.bf16.gmra.mxu3 %v1788_v55 }
 0x19e   : > { %2037 = vmatmul.bf16.gmra.mxu2 %v1788_v55  ;;  %v1397_v40 = vpop.f32.mrf.mxu1  ;;  %v1632_v35 = vpop.f32.mrf.mxu3 }
 0x19f   : > { %v1633_v41 = vadd.f32 %v1632_v35, %v1440_v8  ;;  %v1398_v9 = vadd.f32 %v1397_v40, %v3959_v46 }
 0x1a1   : > { %v1444_v7 = vpop.f32.mrf.mxu2  ;;  %v4016_v61 = vadd.f32 %v1681_v30, %v1633_v41 }
 0x1a2   : > { %v1445_v32 = vadd.f32 %v1444_v7, %v1396_v56 }
 0x1a3   : > { %v1691_v12 = vpop.f32.mrf.mxu0 }
 0x1a6   : > { %v1400_v6 = vpop.f32.mrf.mxu1  ;;  %2140 = vmatmul.bf16.gmra.mxu0 %v1797_v25  ;;  %v1634_v59 = vpop.f32.mrf.mxu3 }
 0x1a7   : > { %v1635_v55 = vadd.f32 %v1634_v59, %v1442_v10  ;;  %v1401_v11 = vadd.f32 %v1400_v6, %v3943_v33 }
 0x1a9   : > { %v1446_v54 = vpop.f32.mrf.mxu2  ;;  %1739 = vmatmul.bf16.gmra.mxu1 %v3881_v37  ;;  %v4021_v0 = vadd.f32 %v1683_v29, %v1635_v55 }
 0x1aa   : > { %v1447_v44 = vadd.f32 %v1446_v54, %v1398_v9 }
 0x1ab   : > { %v1693_v39 = vpop.f32.mrf.mxu0  ;;  %2086 = vmatmul.bf16.gmra.mxu3 %v1791_v63 }
 0x1ae   : > { %2042 = vmatmul.bf16.gmra.mxu2 %v1791_v63  ;;  %v1402_v51 = vpop.f32.mrf.mxu1  ;;  %v1637_v14 = vpop.f32.mrf.mxu3 }
 0x1af   : > { %v1638_v30 = vadd.f32 %v1637_v14, %v1445_v32  ;;  %v1403_v21 = vadd.f32 %v1402_v51, %v3954_v20 }
 0x1b1   : > { %v1449_v42 = vpop.f32.mrf.mxu2  ;;  %v4026_v60 = vadd.f32 %v1686_v38, %v1638_v30 }
 0x1b2   : > { %v1450_v46 = vadd.f32 %v1449_v42, %v1401_v11 }
 0x1b3   : > { %v1696_v37 = vpop.f32.mrf.mxu0 }
 0x1b6   : > { %v1405_v19 = vpop.f32.mrf.mxu1  ;;  %2145 = vmatmul.bf16.gmra.mxu0 %v1800_v27  ;;  %v1639_v29 = vpop.f32.mrf.mxu3 }
 0x1b7   : > { %v1640_v63 = vadd.f32 %v1639_v29, %v1447_v44  ;;  %v1406_v62 = vadd.f32 %v1405_v19, %v3964_v52 }
 0x1b9   : > { %v1451_v58 = vpop.f32.mrf.mxu2  ;;  %1744 = vmatmul.bf16.gmra.mxu1 %v3915_v5  ;;  %v4031_v17 = vadd.f32 %v1688_v13, %v1640_v63 }
 0x1ba   : > { %v1452_v24 = vadd.f32 %v1451_v58, %v1403_v21 }
 0x1bb   : > { %v1698_v33 = vpop.f32.mrf.mxu0  ;;  %2091 = vmatmul.bf16.gmra.mxu3 %v1794_v22 }
 0x1be   : > { %2047 = vmatmul.bf16.gmra.mxu2 %v1794_v22  ;;  %v1407_v34 = vpop.f32.mrf.mxu1  ;;  %v1642_v36 = vpop.f32.mrf.mxu3 }
 0x1bf   : > { %v1643_v15 = vadd.f32 %v1642_v36, %v1450_v46  ;;  %v1408_v5 = vadd.f32 %v1407_v34, %v3971_v4 }
 0x1c1   : > { %v1454_v8 = vpop.f32.mrf.mxu2  ;;  %v4034_v57 = vadd.f32 %v1691_v12, %v1643_v15 }
 0x1c2   : > { %v1455_v38 = vadd.f32 %v1454_v8, %v1406_v62 }
 0x1c3   : > { %v2111_v45 = vpop.f32.mrf.mxu0 }
 0x1c6   : > { %v1710_v20 = vpop.f32.mrf.mxu1  ;;  %v1644_v28 = vpop.f32.mrf.mxu3 }
 0x1c7   : > { %v1645_v47 = vadd.f32 %v1644_v28, %v1452_v24  ;;  %v1711_v31 = vadd.f32 %v1710_v20, %v3977_v26 }
 0x1c9   : > { %v1456_v50 = vpop.f32.mrf.mxu2  ;;  %v4037_v13 = vadd.f32 %v1693_v39, %v1645_v47 }
 0x1ca   : > { %v1457_v10 = vadd.f32 %v1456_v50, %v1408_v5 }
 0x1cb   : > { %2096 = vmatmul.bf16.gmra.mxu3 %v1797_v25  ;;  %v2113_v22 = vpop.f32.mrf.mxu0 }
 0x1ce   : > { %v1712_v40 = vpop.f32.mrf.mxu1  ;;  %v1647_v35 = vpop.f32.mrf.mxu3 }
 0x1cf   : > { %v1648_v48 = vadd.f32 %v1647_v35, %v1455_v38  ;;  %v1713_v16 = vadd.f32 %v1712_v40, %v3981_v43 }
 0x1d1   : > { %v2013_v52 = vpop.f32.mrf.mxu2  ;;  %v4039_v49 = vadd.f32 %v1696_v37, %v1648_v48 }
 0x1d3   : > { %v2116_v7 = vpop.f32.mrf.mxu0 }
 0x1d6   : > { %v1715_v41 = vpop.f32.mrf.mxu1  ;;  %v1649_v56 = vpop.f32.mrf.mxu3 }
 0x1d7   : > { %v1650_v32 = vadd.f32 %v1649_v56, %v1457_v10 }
 0x1d9   : > { %v2015_v12 = vpop.f32.mrf.mxu2  ;;  %v4041_v6 = vadd.f32 %v1698_v33, %v1650_v32  ;;  %v1716_v33 = vadd.f32 %v1715_v41, %v3987_v2 }
 0x1db   : > { %v2118_v9 = vpop.f32.mrf.mxu0 }
 0x1de   : > { %v2062_v4 = vpop.f32.mrf.mxu3  ;;  %v1717_v59 = vpop.f32.mrf.mxu1 }
 0x1df   : > { %v2063_v25 = vadd.f32 %v2062_v4, %v2013_v52  ;;  %v1718_v34 = vadd.f32 %v1717_v59, %v3992_v1 }
 0x1e1   : > { %v2018_v55 = vpop.f32.mrf.mxu2  ;;  %v2112_v44 = vadd.f32 %v2111_v45, %v2063_v25 }
 0x1e3   : > { %v2121_v11 = vpop.f32.mrf.mxu0  ;;  %v4045_v42 = vadd.f32 %v2112_v44, %v1711_v31 }
 0x1e6   : > { %v2064_v54 = vpop.f32.mrf.mxu3  ;;  %v1720_v14 = vpop.f32.mrf.mxu1 }
 0x1e7   : > { %v2065_v39 = vadd.f32 %v2064_v54, %v2015_v12  ;;  %v1721_v40 = vadd.f32 %v1720_v14, %v3997_v23 }
 0x1e9   : > { %v2020_v51 = vpop.f32.mrf.mxu2  ;;  %v2114_v30 = vadd.f32 %v2113_v22, %v2065_v39 }
 0x1eb   : > { %v4047_v46 = vadd.f32 %v2114_v30, %v1713_v16  ;;  %v2123_v21 = vpop.f32.mrf.mxu0 }
 0x1ed   : > { %v3121_v37 = vpack.c.bf16 %v4047_v46, %v4045_v42 }
 0x1ee   : > { %v2067_v27 = vpop.f32.mrf.mxu3  ;;  %v1722_v29 = vpop.f32.mrf.mxu1 }
 0x1ef   : > { %3122 = vst [vmem:[%s3368_s11] sm:$0xff] %v3121_v37   ;;  %v2068_v63 = vadd.f32 %v2067_v27, %v2018_v55  ;;  %v1723_v35 = vadd.f32 %v1722_v29, %v4001_v3 }
 0x1f1   : > { %v2023_v19 = vpop.f32.mrf.mxu2  ;;  %v2117_v26 = vadd.f32 %v2116_v7, %v2068_v63  ;;  %v2199_v63 = vadd.f32 %v4047_v46, %v4045_v42 }
 0x1f3   : > { %v4054_v15 = vadd.f32 %v2117_v26, %v1716_v33  ;;  %v2126_v20 = vpop.f32.mrf.mxu0 }
 0x1f6   : > { %v2069_v58 = vpop.f32.mrf.mxu3  ;;  %v1725_v8 = vpop.f32.mrf.mxu1 }
 0x1f7   : > { %v2070_v24 = vadd.f32 %v2069_v58, %v2020_v51  ;;  %v1726_v3 = vadd.f32 %v1725_v8, %v4006_v18 }
 0x1f9   : > { %v2025_v43 = vpop.f32.mrf.mxu2  ;;  %v2119_v36 = vadd.f32 %v2118_v9, %v2070_v24  ;;  %v2200_v24 = vadd.f32 %v2199_v63, %v4054_v15 }
 0x1fb   : > { %v4056_v62 = vadd.f32 %v2119_v36, %v1718_v34  ;;  %v2128_v1 = vpop.f32.mrf.mxu0 }
 0x1fd   : > { %v3126_v38 = vpack.c.bf16 %v4056_v62, %v4054_v15  ;;  %v2201_v36 = vadd.f32 %v2200_v24, %v4056_v62 }
 0x1fe   : > { %v2072_v45 = vpop.f32.mrf.mxu3  ;;  %v1727_v50 = vpop.f32.mrf.mxu1 }
 0x1ff   : > { %3167 = vst [vmem:[%s3368_s11 + $0x8] sm:$0xff] %v3126_v38   ;;  %v2073_v47 = vadd.f32 %v2072_v45, %v2023_v19  ;;  %v1728_v54 = vadd.f32 %v1727_v50, %v4011_v53 }
 0x201   : > { %v2028_v28 = vpop.f32.mrf.mxu2  ;;  %v2122_v2 = vadd.f32 %v2121_v11, %v2073_v47 }
 0x203   : > { %v4063_v52 = vadd.f32 %v2122_v2, %v1721_v40  ;;  %v2131_v4 = vpop.f32.mrf.mxu0 }
 0x206   : > { %v2074_v5 = vpop.f32.mrf.mxu3  ;;  %v1730_v32 = vpop.f32.mrf.mxu1 }
 0x207   : > { %v2075_v10 = vadd.f32 %v2074_v5, %v2025_v43 }
 0x209   : > { %v2030_v22 = vpop.f32.mrf.mxu2  ;;  %v2124_v48 = vadd.f32 %v2123_v21, %v2075_v10  ;;  %v1731_v21 = vadd.f32 %v1730_v32, %v4016_v61 }
 0x20b   : > { %v4065_v41 = vadd.f32 %v2124_v48, %v1723_v35  ;;  %v2133_v31 = vpop.f32.mrf.mxu0 }
 0x20d   : > { %v3131_v56 = vpack.c.bf16 %v4065_v41, %v4063_v52 }
 0x20e   : > { %v2077_v7 = vpop.f32.mrf.mxu3  ;;  %v1732_v39 = vpop.f32.mrf.mxu1 }
 0x20f   : > { %3168 = vst [vmem:[%s3368_s11 + $0x10] sm:$0xff] %v3131_v56   ;;  %v2078_v59 = vadd.f32 %v2077_v7, %v2028_v28  ;;  %v1733_v58 = vadd.f32 %v1732_v39, %v4021_v0 }
 0x211   : > { %v2033_v12 = vpop.f32.mrf.mxu2  ;;  %v2127_v9 = vadd.f32 %v2126_v20, %v2078_v59  ;;  %v2202_v20 = vadd.f32 %v2201_v36, %v4063_v52 }
 0x213   : > { %v4072_v51 = vadd.f32 %v2127_v9, %v1726_v3  ;;  %v2136_v29 = vpop.f32.mrf.mxu0  ;;  %v2203_v28 = vadd.f32 %v2202_v20, %v4065_v41 }
 0x215   : > { %v2204_v47 = vadd.f32 %v2203_v28, %v4072_v51 }
 0x216   : > { %v2079_v55 = vpop.f32.mrf.mxu3  ;;  %v1735_v27 = vpop.f32.mrf.mxu1 }
 0x217   : > { %v2080_v23 = vadd.f32 %v2079_v55, %v2030_v22  ;;  %v1736_v2 = vadd.f32 %v1735_v27, %v4026_v60 }
 0x219   : > { %v2035_v25 = vpop.f32.mrf.mxu2  ;;  %v2129_v44 = vadd.f32 %v2128_v1, %v2080_v23 }
 0x21b   : > { %v4074_v14 = vadd.f32 %v2129_v44, %v1728_v54  ;;  %v2138_v0 = vpop.f32.mrf.mxu0 }
 0x21d   : > { %v3136_v16 = vpack.c.bf16 %v4074_v14, %v4072_v51  ;;  %v2205_v50 = vadd.f32 %v2204_v47, %v4074_v14 }
 0x21e   : > { %v2082_v30 = vpop.f32.mrf.mxu3  ;;  %v1737_v45 = vpop.f32.mrf.mxu1 }
 0x21f   : > { %3169 = vst [vmem:[%s3368_s11 + $0x18] sm:$0xff] %v3136_v16   ;;  %v2083_v37 = vadd.f32 %v2082_v30, %v2033_v12  ;;  %v1738_v7 = vadd.f32 %v1737_v45, %v4031_v17 }
 0x221   : > { %v2038_v11 = vpop.f32.mrf.mxu2  ;;  %v2132_v18 = vadd.f32 %v2131_v4, %v2083_v37 }
 0x223   : > { %v4084_v43 = vadd.f32 %v2132_v18, %v1731_v21  ;;  %v2141_v12 = vpop.f32.mrf.mxu0 }
 0x225   : > { %v2206_v22 = vadd.f32 %v2205_v50, %v4084_v43 }
 0x226   : > { %v2084_v19 = vpop.f32.mrf.mxu3  ;;  %v1740_v48 = vpop.f32.mrf.mxu1 }
 0x227   : > { %v2085_v53 = vadd.f32 %v2084_v19, %v2035_v25  ;;  %v1741_v3 = vadd.f32 %v1740_v48, %v4034_v57 }
 0x229   : > { %v2134_v26 = vadd.f32 %v2133_v31, %v2085_v53  ;;  %v2040_v34 = vpop.f32.mrf.mxu2 }
 0x22b   : > { %v4086_v33 = vadd.f32 %v2134_v26, %v1733_v58  ;;  %v2143_v31 = vpop.f32.mrf.mxu0 }
 0x22d   : > { %v3141_v8 = vpack.c.bf16 %v4086_v33, %v4084_v43  ;;  %v2207_v56 = vadd.f32 %v2206_v22, %v4086_v33 }
 0x22e   : > { %v2087_v38 = vpop.f32.mrf.mxu3  ;;  %v1742_v44 = vpop.f32.mrf.mxu1 }
 0x22f   : > { %3170 = vst [vmem:[%s3368_s11 + $0x20] sm:$0xff] %v3141_v8   ;;  %v2088_v61 = vadd.f32 %v2087_v38, %v2038_v11  ;;  %v1743_v11 = vadd.f32 %v1742_v44, %v4037_v13 }
 0x231   : > { %v2137_v5 = vadd.f32 %v2136_v29, %v2088_v61  ;;  %v2043_v1 = vpop.f32.mrf.mxu2 }
 0x233   : > { %v2161_v40 = vadd.f32 %v2137_v5, %v1736_v2  ;;  %v2146_v63 = vpop.f32.mrf.mxu0 }
 0x235   : > { %v2208_v4 = vadd.f32 %v2207_v56, %v2161_v40 }
 0x236   : > { %v2089_v10 = vpop.f32.mrf.mxu3  ;;  %v1745_v29 = vpop.f32.mrf.mxu1 }
 0x237   : > { %v2090_v35 = vadd.f32 %v2089_v10, %v2040_v34  ;;  %v1746_v58 = vadd.f32 %v1745_v29, %v4039_v49 }
 0x239   : > { %v2139_v32 = vadd.f32 %v2138_v0, %v2090_v35  ;;  %v2045_v25 = vpop.f32.mrf.mxu2 }
 0x23b   : > { %v2162_v59 = vadd.f32 %v2139_v32, %v1738_v7  ;;  %v2148_v45 = vpop.f32.mrf.mxu0 }
 0x23d   : > { %v3146_v55 = vpack.c.bf16 %v2162_v59, %v2161_v40  ;;  %v2209_v9 = vadd.f32 %v2208_v4, %v2162_v59 }
 0x23e   : > { %v2092_v23 = vpop.f32.mrf.mxu3  ;;  %v1747_v8 = vpop.f32.mrf.mxu1 }
 0x23f   : > { %3171 = vst [vmem:[%s3368_s11 + $0x28] sm:$0xff] %v3146_v55   ;;  %v2093_v60 = vadd.f32 %v2092_v23, %v2043_v1  ;;  %v1748_v20 = vadd.f32 %v1747_v8, %v4041_v6 }
 0x241   : > { %v2142_v54 = vadd.f32 %v2141_v12, %v2093_v60  ;;  %v2048_v27 = vpop.f32.mrf.mxu2 }
 0x243   : > { %v2163_v39 = vadd.f32 %v2142_v54, %v1741_v3 }
 0x245   : > { %v2210_v16 = vadd.f32 %v2209_v9, %v2163_v39 }
 0x246   : > { %v2094_v30 = vpop.f32.mrf.mxu3 }
 0x247   : > { %v2095_v17 = vadd.f32 %v2094_v30, %v2045_v25 }
 0x249   : > { %v2144_v37 = vadd.f32 %v2143_v31, %v2095_v17  ;;  %v2050_v34 = vpop.f32.mrf.mxu2 }
 0x24b   : > { %v2164_v19 = vadd.f32 %v2144_v37, %v1743_v11 }
 0x24d   : > { %v3151_v18 = vpack.c.bf16 %v2164_v19, %v2163_v39  ;;  %v2211_v53 = vadd.f32 %v2210_v16, %v2164_v19 }
 0x24e   : > { %v2097_v21 = vpop.f32.mrf.mxu3 }
 0x24f   : > { %3172 = vst [vmem:[%s3368_s11 + $0x30] sm:$0xff] %v3151_v18   ;;  %v2098_v57 = vadd.f32 %v2097_v21, %v2048_v27 }
 0x251   : > { %v2147_v26 = vadd.f32 %v2146_v63, %v2098_v57 }
 0x253   : > { %v2165_v24 = vadd.f32 %v2147_v26, %v1746_v58 }
 0x255   : > { %v2212_v36 = vadd.f32 %v2211_v53, %v2165_v24 }
 0x256   : > { %v2099_v38 = vpop.f32.mrf.mxu3 }
 0x257   : > { %v2100_v13 = vadd.f32 %v2099_v38, %v2050_v34 }
 0x259   : > { %v2149_v61 = vadd.f32 %v2148_v45, %v2100_v13 }
 0x25b   : > { %v2166_v0 = vadd.f32 %v2149_v61, %v1748_v20 }
 0x25d   : > { %v3156_v28 = vpack.c.bf16 %v2166_v0, %v2165_v24  ;;  %v2213_v47 = vadd.f32 %v2212_v36, %v2166_v0 }
 0x25f   : > { %3173 = vst [vmem:[%s3368_s11 + $0x38] sm:$0xff] %v3156_v28   ;;  %v2214_v5 = vrot.slane %v2213_v47, 4  ;;  %v2276_v28 = vld [vmem:[%s3363_s8] sm:$0x7] }
 0x261   : > { %v2215_v50 = vadd.f32 %v2214_v5, %v2213_v47 }
 0x263   : > { %v2216_v2 = vrot.slane %v2215_v50, 2 }
 0x265   : > { %v2217_v10 = vadd.f32 %v2216_v2, %v2215_v50 }
 0x267   : > { %v2218_v49 = vrot.slane %v2217_v10, 1 }
 0x269   : > { %v2219_v1 = vadd.f32 %v2218_v49, %v2217_v10 }
 0x26b   : > { %v2220_v22 = vmul.f32 0.0078125, %v2219_v1 }
 0x26d   : > { %v2221_v35 = vsub.f32 %v4045_v42, %v2220_v22  ;;  %v2222_v48 = vsub.f32 %v4047_v46, %v2220_v22  ;;  %v2231_v56 = vsub.f32 %v2161_v40, %v2220_v22  ;;  %v2232_v7 = vsub.f32 %v2162_v59, %v2220_v22 }
 0x26e   : > { %v2233_v32 = vsub.f32 %v2163_v39, %v2220_v22  ;;  %v2234_v6 = vsub.f32 %v2164_v19, %v2220_v22  ;;  %v2235_v12 = vsub.f32 %v2165_v24, %v2220_v22  ;;  %v2236_v4 = vsub.f32 %v2166_v0, %v2220_v22 }
 0x26f   : > { %v2223_v55 = vsub.f32 %v4054_v15, %v2220_v22  ;;  %v2237_v9 = vmul.f32 %v2221_v35, %v2221_v35  ;;  %v2238_v23 = vmul.f32 %v2222_v48, %v2222_v48  ;;  %v2224_v60 = vsub.f32 %v4056_v62, %v2220_v22 }
 0x270   : > { %v2225_v25 = vsub.f32 %v4063_v52, %v2220_v22  ;;  %v2226_v42 = vsub.f32 %v4065_v41, %v2220_v22  ;;  %v2227_v40 = vsub.f32 %v4072_v51, %v2220_v22  ;;  %v2228_v31 = vsub.f32 %v4074_v14, %v2220_v22 }
 0x271   : > { %v2239_v3 = vmul.f32 %v2223_v55, %v2223_v55  ;;  %v2253_v54 = vadd.f32 %v2238_v23, %v2237_v9  ;;  %v2240_v44 = vmul.f32 %v2224_v60, %v2224_v60  ;;  %v2229_v30 = vsub.f32 %v4084_v43, %v2220_v22 }
 0x272   : > { %v2241_v59 = vmul.f32 %v2225_v25, %v2225_v25  ;;  %v2242_v16 = vmul.f32 %v2226_v42, %v2226_v42  ;;  %v2243_v17 = vmul.f32 %v2227_v40, %v2227_v40  ;;  %v2230_v52 = vsub.f32 %v4086_v33, %v2220_v22 }
 0x273   : > { %v2254_v46 = vadd.f32 %v2253_v54, %v2239_v3  ;;  %v2244_v11 = vmul.f32 %v2228_v31, %v2228_v31  ;;  %v2245_v27 = vmul.f32 %v2229_v30, %v2229_v30  ;;  %v2247_v18 = vmul.f32 %v2231_v56, %v2231_v56 }
 0x274   : > { %v2246_v19 = vmul.f32 %v2230_v52, %v2230_v52  ;;  %v2248_v53 = vmul.f32 %v2232_v7, %v2232_v7  ;;  %v2249_v21 = vmul.f32 %v2233_v32, %v2233_v32  ;;  %v2250_v57 = vmul.f32 %v2234_v6, %v2234_v6 }
 0x275   : > { %v2255_v39 = vadd.f32 %v2254_v46, %v2240_v44  ;;  %v2251_v43 = vmul.f32 %v2235_v12, %v2235_v12  ;;  %v2252_v24 = vmul.f32 %v2236_v4, %v2236_v4  ;;  %v2274_v45 = vmul.f32 128.0, %v2220_v22 }
 0x277   : > { %v2256_v15 = vadd.f32 %v2255_v39, %v2241_v59  ;;  %v2275_v0 = vmul.f32 %v2274_v45, %v2220_v22 }
 0x279   : > { %v2257_v62 = vadd.f32 %v2256_v15, %v2242_v16 }
 0x27b   : > { %v2258_v37 = vadd.f32 %v2257_v62, %v2243_v17 }
 0x27d   : > { %v2259_v41 = vadd.f32 %v2258_v37, %v2244_v11 }
 0x27f   : > { %v2260_v29 = vadd.f32 %v2259_v41, %v2245_v27 }
 0x281   : > { %v2261_v51 = vadd.f32 %v2260_v29, %v2246_v19 }
 0x283   : > { %v2262_v63 = vadd.f32 %v2261_v51, %v2247_v18 }
 0x285   : > { %v2263_v14 = vadd.f32 %v2262_v63, %v2248_v53 }
 0x287   : > { %v2264_v58 = vadd.f32 %v2263_v14, %v2249_v21 }
 0x289   : > { %v2265_v26 = vadd.f32 %v2264_v58, %v2250_v57 }
 0x28b   : > { %v2266_v33 = vadd.f32 %v2265_v26, %v2251_v43 }
 0x28d   : > { %v2267_v34 = vadd.f32 %v2266_v33, %v2252_v24 }
 0x28f   : > { %v2268_v36 = vrot.slane %v2267_v34, 4 }
 0x291   : > { %v2269_v8 = vadd.f32 %v2268_v36, %v2267_v34 }
 0x293   : > { %v2270_v38 = vrot.slane %v2269_v8, 2 }
 0x295   : > { %v2271_v13 = vadd.f32 %v2270_v38, %v2269_v8 }
 0x297   : > { %v2272_v20 = vrot.slane %v2271_v13, 1 }
 0x299   : > { %v2273_v61 = vadd.f32 %v2272_v20, %v2271_v13 }
 0x29b   : > { %v2278_v47 = vsel %vm917_vm3, %v2219_v1, %v2273_v61 }
 0x29c   : > { %v2280_v5 = vsel %vm2279_vm8, %v2278_v47, %v2275_v0 }
 0x29d   : > { %v2281_v50 = vadd.f32 %v2280_v5, %v2276_v28 }
 0x29f   : > { %2282 = vst [vmem:[%s3363_s8] sm:$0x7] %v2281_v50 }
 0x2a0 PF: > { %s15_s19 = sadd.s32 1, %s3285_s19   ;;  %s4146_s15 = smov %s3277_s17 }
 0x2a1   : > { %p12_p0 = scmp.ge.s32.totalorder %s15_s19, 6   ;;  %s4147_s16 = smov %s3281_s18 }
 0x2a2   : > { %s4148_s17 = smov %s4151_s20  ;;  %s4149_s18 = smov %s4155_s21 }
 0x2a3   :  { %14 = sbr.rel (!%p12_p0) target bundleno = 4 (0x4), region = 309 }
 0x2a8   :  { %2327 = vsyncmov [#allocation3] }
 0x2ab   :  { %s2328_s8 = vpop.sfrf %2327 }
 0x2ac   :  { %p2993_p1 = scmp.ne.s32.totalorder %s2328_s8, 0 }
 0x2ae   :  { %2332 = shalt.err (%p2993_p1)  }
 0x2af   :  { %2334 = vsyncmov [#allocation3 + $0x1] }
 0x2b2   :  { %s2335_s11 = vpop.sfrf %2334 }
 0x2b3   :  { %p2994_p2 = scmp.ne.s32.totalorder %s2335_s11, 0 }
 0x2b5   :  { %2339 = shalt.err (%p2994_p2)  }
 0x2b6   :  { %2341 = vsyncmov [#allocation3 + $0x2] }
 0x2b9   :  { %s2342_s25 = vpop.sfrf %2341 }
 0x2ba   :  { %p2995_p3 = scmp.ne.s32.totalorder %s2342_s25, 0 }
 0x2bc   :  { %2346 = shalt.err (%p2995_p3)  }
 0x2bd   :  { %2348 = vsyncmov [#allocation3 + $0x3] }
 0x2c0   :  { %s2349_s13 = vpop.sfrf %2348 }
 0x2c1   :  { %p2996_p4 = scmp.ne.s32.totalorder %s2349_s13, 0 }
 0x2c3   :  { %2353 = shalt.err (%p2996_p4)  }
 0x2c4   :  { %2355 = vsyncmov [#allocation3 + $0x4] }
 0x2c7   :  { %s2356_s20 = vpop.sfrf %2355 }
 0x2c8   :  { %p2997_p5 = scmp.ne.s32.totalorder %s2356_s20, 0 }
 0x2ca   :  { %2360 = shalt.err (%p2997_p5)  }
 0x2cb   :  { %2362 = vsyncmov [#allocation3 + $0x5] }
 0x2ce   :  { %s2363_s0 = vpop.sfrf %2362 }
 0x2cf   :  { %p2998_p6 = scmp.ne.s32.totalorder %s2363_s0, 0 }
 0x2d1   :  { %2367 = shalt.err (%p2998_p6)  }

</bundles_post_ra>
